<compile_context>
chip_gen: v5e
topology: v5e:2x2
jax: 0.10.0
libtpu: 0.0.40
codegen_flags: <defaults>
</compile_context>

<pallas_src>
import functools

import jax
import jax.numpy as jnp
from jax import lax
from jax.experimental import pallas as pl
from jax.experimental.pallas import tpu as pltpu

_MXU_DTYPE = jnp.bfloat16   # MXU operand + gate-scratch dtype (f32 accumulation)


# ----------------------------------------------------------------------------
# Kernel
# ----------------------------------------------------------------------------

def _bilstm_layer_body(in_ref, wih_ref, whh_f_ref, whh_b_ref, b_ref,
                       res_ref, out_ref, xg_scr, *, S, H, U):
    """One bidirectional LSTM layer over the full sequence (+ fused residual)."""
    # Fused input projection for BOTH directions, biases folded in; gate
    # scratch stored in bf16 (dominant VMEM consumer), math in f32.
    xg_scr[...] = (jnp.dot(in_ref[...].astype(_MXU_DTYPE), wih_ref[...],
                           preferred_element_type=jnp.float32)
                   + b_ref[...]).astype(_MXU_DTYPE)

    # Hoist hidden weights out of the recurrence loop (small -> live in vregs).
    whh_f = whh_f_ref[...]
    whh_b = whh_b_ref[...]

    def step(xg_row, h, c, whh):
        gates = xg_row.astype(jnp.float32) + jnp.dot(
            h.astype(_MXU_DTYPE), whh, preferred_element_type=jnp.float32)
        act = jax.nn.sigmoid(gates[:, 0:3 * H])        # [i | f | o] one EUP pass
        g = jnp.tanh(gates[:, 3 * H:4 * H])
        c_new = act[:, H:2 * H] * c + act[:, 0:H] * g  # f*c + i*g
        h_new = act[:, 2 * H:3 * H] * jnp.tanh(c_new)  # o*tanh(c)
        return h_new, c_new

    h0 = jnp.zeros((1, H), jnp.float32)
    c0 = jnp.zeros((1, H), jnp.float32)

    def chunk_body(ci, carry):
        hf, cf, hb, cb = carry
        base = pl.multiple_of(ci * U, U)            # fwd rows base .. base+U-1
        rbase = pl.multiple_of(S - U - ci * U, U)   # bwd rows rbase .. rbase+U-1
        # One (U, 4H) slab load per direction per chunk; static row picks below.
        xg_f = xg_scr[pl.ds(base, U), 0:4 * H]
        xg_b = xg_scr[pl.ds(rbase, U), 4 * H:8 * H]
        hf_rows, hb_rows = [], []
        for u in range(U):                          # fwd+bwd dep-chains co-issue
            hf, cf = step(xg_f[u:u + 1, :], hf, cf, whh_f)
            hf_rows.append(hf)
            hb, cb = step(xg_b[U - 1 - u:U - u, :], hb, cb, whh_b)
            hb_rows.append(hb)
        f_tile = jnp.concatenate(hf_rows, axis=0)
        b_tile = jnp.concatenate(hb_rows[::-1], axis=0)
        if res_ref is not None:                     # residual fused into stores
            f_tile = f_tile + res_ref[pl.ds(base, U), 0:H]
            b_tile = b_tile + res_ref[pl.ds(rbase, U), H:2 * H]
        out_ref[pl.ds(base, U), 0:H] = f_tile
        out_ref[pl.ds(rbase, U), H:2 * H] = b_tile
        return hf, cf, hb, cb

    lax.fori_loop(0, S // U, chunk_body, (h0, c0, h0, c0))


def _stack_kernel(x_ref, w_init_ref, *rest, S, H, depth, residual, unroll):
    """Whole stack fused: initial projection + all biLSTM layers + residuals."""
    param_refs = rest[:4 * depth]
    out_refs = rest[4 * depth:4 * depth + depth + 1]
    xg_scr = rest[-1]

    # Initial nn.Linear(dim_in -> 2H, bias=False) projection -> layer-0 output.
    out_refs[0][...] = jnp.dot(x_ref[...].astype(_MXU_DTYPE), w_init_ref[...],
                               preferred_element_type=jnp.float32)

    for n in range(depth):
        wih_ref, whh_f_ref, whh_b_ref, b_ref = param_refs[4 * n:4 * n + 4]
        # PyTorch: X = X + output_list[-residual]  iff  n > n - residual >= 0
        add_res = residual > 0 and n >= residual
        res_ref = out_refs[n + 1 - residual] if add_res else None
        _bilstm_layer_body(out_refs[n], wih_ref, whh_f_ref, whh_b_ref, b_ref,
                           res_ref, out_refs[n + 1], xg_scr, S=S, H=H, U=unroll)


# ----------------------------------------------------------------------------
# pallas_call wrapper (cached per shape / config)
# ----------------------------------------------------------------------------

def _vmem_spec():
    return pl.BlockSpec(memory_space=pltpu.MemorySpace.VMEM)


def _pick_unroll(S):
    for u in (8, 4, 2):
        if S % u == 0:
            return u
    return 1


def _resident_vmem_bytes(S, dim_in, H, depth):
    f32, bf = 4, 2
    nbytes = S * dim_in * f32                              # x
    nbytes += dim_in * 2 * H * bf                          # w_init
    nbytes += depth * ((2 * H) * (8 * H) * bf              # wih
                       + 2 * H * 4 * H * bf                # whh_f + whh_b
                       + 8 * H * f32)                      # b
    nbytes += (depth + 1) * S * 2 * H * f32                # per-layer outputs
    nbytes += S * 8 * H * bf                               # fused gate scratch
    return nbytes


@functools.lru_cache(maxsize=None)
def _build_stack_call(S, dim_in, H, depth, residual, unroll):
    kernel = functools.partial(_stack_kernel, S=S, H=H, depth=depth,
                               residual=residual, unroll=unroll)
    n_in = 2 + 4 * depth
    vmem_limit = min(64 << 20,
                     max(2 * _resident_vmem_bytes(S, dim_in, H, depth) + (2 << 20),
                         16 << 20))
    return pl.pallas_call(
        kernel,
        out_shape=tuple(jax.ShapeDtypeStruct((S, 2 * H), jnp.float32)
                        for _ in range(depth + 1)),
        in_specs=[_vmem_spec() for _ in range(n_in)],
        out_specs=tuple(_vmem_spec() for _ in range(depth + 1)),
        scratch_shapes=[pltpu.VMEM((S, 8 * H), _MXU_DTYPE)],
        compiler_params=pltpu.CompilerParams(vmem_limit_bytes=vmem_limit),
    )


def _reorder_gates(w, H):
    # PyTorch gate order [i, f, g, o] -> kernel order [i, f, o, g] (last axis).
    return jnp.concatenate([w[..., 0:2 * H], w[..., 3 * H:4 * H],
                            w[..., 2 * H:3 * H]], axis=-1)


def _pack_layer_params(p):
    H = p["whh_f"].shape[0]
    wih = jnp.concatenate([_reorder_gates(p["wih_f"], H),
                           _reorder_gates(p["wih_b"], H)],
                          axis=1).astype(_MXU_DTYPE)
    whh_f = _reorder_gates(p["whh_f"], H).astype(_MXU_DTYPE)
    whh_b = _reorder_gates(p["whh_b"], H).astype(_MXU_DTYPE)
    b = jnp.concatenate([_reorder_gates(p["b_f"], H),
                         _reorder_gates(p["b_b"], H)],
                        axis=1).astype(jnp.float32)
    return wih, whh_f, whh_b, b


def lstm_stack_forward(x, w_init, layers, residual=1):
    """Mirrors LSTMStack.forward (batch=False, depth=-1, default args).

    Returns depth+1 arrays of shape (S, dim_lstm_stack):
    [initial projection, lstm_1 output (+res), ..., lstm_depth output (+res)].
    """
    S, dim_in = x.shape
    depth = len(layers)
    H = layers[0]["whh_f"].shape[0] if layers else w_init.shape[1] // 2
    U = _pick_unroll(S)
    call = _build_stack_call(S, dim_in, H, depth, residual, U)
    flat = []
    for p in layers:
        flat.extend(_pack_layer_params(p))
    outs = call(x, w_init.astype(_MXU_DTYPE), *flat)
    return list(outs)


# ----------------------------------------------------------------------------
# Deterministic parameter initialisation (shapes match the PyTorch module,
# canonical PyTorch gate order [i, f, g, o], f32)
# ----------------------------------------------------------------------------

def init_params(key, depth, dim_in, dim_stack):
    H = dim_stack // 2
    keys = jax.random.split(key, 1 + depth)

    lim = (6.0 / (dim_in + dim_stack)) ** 0.5
    w_init = jax.random.uniform(keys[0], (dim_in, dim_stack), jnp.float32,
                                -lim, lim)

    def u(k, shape):
        m = (6.0 / sum(shape)) ** 0.5  # same rule as LSTMStack.initialize_parameters
        return jax.random.uniform(k, shape, jnp.float32, -m, m)

    layers = []
    for n in range(depth):
        lk = jax.random.split(keys[1 + n], 8)
        in_dim = dim_stack  # after the initial transform, all layers see dim_stack
        wih_f = u(lk[0], (4 * H, in_dim)).T
        whh_f = u(lk[1], (4 * H, H)).T
        b_f = (u(lk[2], (4 * H,)) + u(lk[3], (4 * H,))).reshape(1, 4 * H)
        wih_b = u(lk[4], (4 * H, in_dim)).T
        whh_b = u(lk[5], (4 * H, H)).T
        b_b = (u(lk[6], (4 * H,)) + u(lk[7], (4 * H,))).reshape(1, 4 * H)
        layers.append(dict(wih_f=wih_f, whh_f=whh_f, b_f=b_f,
                           wih_b=wih_b, whh_b=whh_b, b_b=b_b))
    return w_init, layers


# ----------------------------------------------------------------------------
# Pure-JAX f32 golden reference
# ----------------------------------------------------------------------------

def _ref_bilstm(x, p):
    def run(wih, whh, b, rev):
        H = whh.shape[0]
        xs = x[::-1] if rev else x
        xg = xs @ wih + b[0]

        def f(carry, xg_t):
            h, c = carry
            g = xg_t + h @ whh
            i = jax.nn.sigmoid(g[:H])
            ff = jax.nn.sigmoid(g[H:2 * H])
            gg = jnp.tanh(g[2 * H:3 * H])
            o = jax.nn.sigmoid(g[3 * H:])
            c = ff * c + i * gg
            h = o * jnp.tanh(c)
            return (h, c), h

        init = (jnp.zeros((H,), jnp.float32), jnp.zeros((H,), jnp.float32))
        _, hs = lax.scan(f, init, xg)
        return hs[::-1] if rev else hs

    hf = run(p["wih_f"], p["whh_f"], p["b_f"], False)
    hb = run(p["wih_b"], p["whh_b"], p["b_b"], True)
    return jnp.concatenate([hf, hb], axis=-1)


def _ref_forward(x, w_init, layers, residual=1):
    X = x @ w_init
    outs = [X]
    for n, p in enumerate(layers):
        out = _ref_bilstm(outs[-1], p)
        if residual > 0 and n >= residual:
            out = out + outs[-residual]
        outs.append(out)
    return outs


# ----------------------------------------------------------------------------
# Demo
# ----------------------------------------------------------------------------

if __name__ == "__main__":
    key = jax.random.PRNGKey(0)
    kxa, kpa, kxb, kpb = jax.random.split(key, 4)

    TOL = 7.5e-2   # bf16 MXU / bf16 gate-scratch vs f32 golden

    # ---- config A: S multiple of 8 (U=8 tiled stores), depth=3, residual=2
    #      exercises deeper residual indexing (layers 0,1 no residual, layer 2
    #      adds output_list[-2]).
    S, dim_in, dim_stack, depth, residual = 16, 8, 32, 3, 2
    x = jax.random.normal(kxa, (S, dim_in), jnp.float32)
    w_init, layers = init_params(kpa, depth, dim_in, dim_stack)

    outs = lstm_stack_forward(x, w_init, layers, residual=residual)
    outs = [jax.block_until_ready(o) for o in outs]
    refs = _ref_forward(x, w_init, layers, residual=residual)
    assert len(outs) == depth + 1
    for o, r in zip(outs, refs):
        assert o.shape == r.shape, (o.shape, r.shape)
        max_err = float(jnp.max(jnp.abs(o - r)))
        assert max_err < TOL, max_err

    # ---- config B: odd S exercises the U=1 fallback, residual=1
    S2, depth2, residual2 = 7, 2, 1
    x2 = jax.random.normal(kxb, (S2, dim_in), jnp.float32)
    w_init2, layers2 = init_params(kpb, depth2, dim_in, dim_stack)

    outs2 = lstm_stack_forward(x2, w_init2, layers2, residual=residual2)
    outs2 = [jax.block_until_ready(o) for o in outs2]
    refs2 = _ref_forward(x2, w_init2, layers2, residual=residual2)
    assert len(outs2) == depth2 + 1
    for o, r in zip(outs2, refs2):
        assert o.shape == r.shape, (o.shape, r.shape)
        max_err = float(jnp.max(jnp.abs(o - r)))
        assert max_err < TOL, max_err

    print("KERNEL_OK")
</pallas_src>

<mosaic_0001>
module attributes {stable_mosaic.version = 11 : i64} {
  func.func @_stack_kernel(%arg0: memref<16x8xf32, #tpu.memory_space<vmem>>, %arg1: memref<8x32xbf16, #tpu.memory_space<vmem>>, %arg2: memref<32x128xbf16, #tpu.memory_space<vmem>>, %arg3: memref<16x64xbf16, #tpu.memory_space<vmem>>, %arg4: memref<16x64xbf16, #tpu.memory_space<vmem>>, %arg5: memref<1x128xf32, #tpu.memory_space<vmem>>, %arg6: memref<32x128xbf16, #tpu.memory_space<vmem>>, %arg7: memref<16x64xbf16, #tpu.memory_space<vmem>>, %arg8: memref<16x64xbf16, #tpu.memory_space<vmem>>, %arg9: memref<1x128xf32, #tpu.memory_space<vmem>>, %arg10: memref<32x128xbf16, #tpu.memory_space<vmem>>, %arg11: memref<16x64xbf16, #tpu.memory_space<vmem>>, %arg12: memref<16x64xbf16, #tpu.memory_space<vmem>>, %arg13: memref<1x128xf32, #tpu.memory_space<vmem>>, %arg14: memref<16x32xf32, #tpu.memory_space<vmem>>, %arg15: memref<16x32xf32, #tpu.memory_space<vmem>>, %arg16: memref<16x32xf32, #tpu.memory_space<vmem>>, %arg17: memref<16x32xf32, #tpu.memory_space<vmem>>, %arg18: memref<16x128xbf16, #tpu.memory_space<vmem>>) attributes {dimension_semantics = [], scalar_prefetch = 0 : i64, scratch_operands = 1 : i64, tpu.core_type = #tpu.core_type<tc>} {
    %c0 = arith.constant 0 : index
    %c0_0 = arith.constant 0 : index
    %0 = vector.load %arg0[%c0, %c0_0] : memref<16x8xf32, #tpu.memory_space<vmem>>, vector<16x8xf32>
    %1 = arith.truncf %0 : vector<16x8xf32> to vector<16x8xbf16>
    %c0_1 = arith.constant 0 : index
    %c0_2 = arith.constant 0 : index
    %2 = vector.load %arg1[%c0_1, %c0_2] : memref<8x32xbf16, #tpu.memory_space<vmem>>, vector<8x32xbf16>
    %cst = arith.constant dense<0.000000e+00> : vector<16x32xf32>
    %3 = tpu.matmul %1, %2, %cst {dimension_numbers = #tpu.dot_dimension_numbers<[1], [0], [0], [1], [0, 0, 1, 1], [], []>} : vector<16x8xbf16>, vector<8x32xbf16>, vector<16x32xf32> -> vector<16x32xf32>
    %c0_3 = arith.constant 0 : index
    %c0_4 = arith.constant 0 : index
    %4 = vector.load %arg14[%c0_3, %c0_4] : memref<16x32xf32, #tpu.memory_space<vmem>>, vector<16x32xf32>
    tpu.vector_store %arg14[%c0_3, %c0_4], %3 {strides = array<i32>} : memref<16x32xf32, #tpu.memory_space<vmem>>, vector<16x32xf32>,
    %c0_5 = arith.constant 0 : index
    %c0_6 = arith.constant 0 : index
    %5 = vector.load %arg14[%c0_5, %c0_6] : memref<16x32xf32, #tpu.memory_space<vmem>>, vector<16x32xf32>
    %6 = arith.truncf %5 : vector<16x32xf32> to vector<16x32xbf16>
    %c0_7 = arith.constant 0 : index
    %c0_8 = arith.constant 0 : index
    %7 = vector.load %arg2[%c0_7, %c0_8] : memref<32x128xbf16, #tpu.memory_space<vmem>>, vector<32x128xbf16>
    %cst_9 = arith.constant dense<0.000000e+00> : vector<16x128xf32>
    %8 = tpu.matmul %6, %7, %cst_9 {dimension_numbers = #tpu.dot_dimension_numbers<[1], [0], [0], [1], [0, 0, 1, 1], [], []>} : vector<16x32xbf16>, vector<32x128xbf16>, vector<16x128xf32> -> vector<16x128xf32>
    %c0_10 = arith.constant 0 : index
    %c0_11 = arith.constant 0 : index
    %9 = vector.load %arg5[%c0_10, %c0_11] : memref<1x128xf32, #tpu.memory_space<vmem>>, vector<1x128xf32>
    %10 = vector.broadcast %9 : vector<1x128xf32> to vector<16x128xf32>
    %11 = arith.addf %8, %10 : vector<16x128xf32>
    %12 = arith.truncf %11 : vector<16x128xf32> to vector<16x128xbf16>
    %c0_12 = arith.constant 0 : index
    %c0_13 = arith.constant 0 : index
    %13 = vector.load %arg18[%c0_12, %c0_13] : memref<16x128xbf16, #tpu.memory_space<vmem>>, vector<16x128xbf16>
    tpu.vector_store %arg18[%c0_12, %c0_13], %12 {strides = array<i32>} : memref<16x128xbf16, #tpu.memory_space<vmem>>, vector<16x128xbf16>,
    %c0_14 = arith.constant 0 : index
    %c0_15 = arith.constant 0 : index
    %14 = vector.load %arg3[%c0_14, %c0_15] : memref<16x64xbf16, #tpu.memory_space<vmem>>, vector<16x64xbf16>
    %c0_16 = arith.constant 0 : index
    %c0_17 = arith.constant 0 : index
    %15 = vector.load %arg4[%c0_16, %c0_17] : memref<16x64xbf16, #tpu.memory_space<vmem>>, vector<16x64xbf16>
    %cst_18 = arith.constant 0.000000e+00 : f32
    %16 = vector.broadcast %cst_18 : f32 to vector<1x16xf32>
    %cst_19 = arith.constant 0.000000e+00 : f32
    %17 = vector.broadcast %cst_19 : f32 to vector<1x16xf32>
    %c0_i32 = arith.constant 0 : i32
    %c2_i32 = arith.constant 2 : i32
    %18 = arith.addi %c0_i32, %c2_i32 : i32
    %c1_i32 = arith.constant 1 : i32
    %19:4 = scf.for %arg19 = %c0_i32 to %18 step %c1_i32 iter_args(%arg20 = %16, %arg21 = %17, %arg22 = %16, %arg23 = %17) -> (vector<1x16xf32>, vector<1x16xf32>, vector<1x16xf32>, vector<1x16xf32>)  : i32 {
      %c8_i32 = arith.constant 8 : i32
      %50 = arith.muli %arg19, %c8_i32 : i32
      %51 = tpu.assume_multiple %50, 8 : i32
      %c8_i32_59 = arith.constant 8 : i32
      %52 = arith.muli %arg19, %c8_i32_59 : i32
      %c8_i32_60 = arith.constant 8 : i32
      %53 = arith.subi %c8_i32_60, %52 : i32
      %54 = tpu.assume_multiple %53, 8 : i32
      %55 = arith.index_cast %51 : i32 to index
      %c0_61 = arith.constant 0 : index
      %56 = vector.load %arg18[%55, %c0_61] : memref<16x128xbf16, #tpu.memory_space<vmem>>, vector<8x64xbf16>
      %57 = arith.index_cast %54 : i32 to index
      %c64 = arith.constant 64 : index
      %58 = vector.load %arg18[%57, %c64] : memref<16x128xbf16, #tpu.memory_space<vmem>>, vector<8x64xbf16>
      %59 = vector.extract_strided_slice %56 {offsets = [0, 0], sizes = [1, 64], strides = [1, 1]} : vector<8x64xbf16> to vector<1x64xbf16>
      %60 = arith.extf %59 : vector<1x64xbf16> to vector<1x64xf32>
      %61 = arith.truncf %arg20 : vector<1x16xf32> to vector<1x16xbf16>
      %cst_62 = arith.constant dense<0.000000e+00> : vector<1x64xf32>
      %62 = tpu.matmul %61, %14, %cst_62 {dimension_numbers = #tpu.dot_dimension_numbers<[1], [0], [0], [1], [0, 0, 1, 1], [], []>} : vector<1x16xbf16>, vector<16x64xbf16>, vector<1x64xf32> -> vector<1x64xf32>
      %63 = arith.addf %60, %62 : vector<1x64xf32>
      %64 = vector.extract_strided_slice %63 {offsets = [0, 0], sizes = [1, 48], strides = [1, 1]} : vector<1x64xf32> to vector<1x48xf32>
      %65 = arith.negf %64 : vector<1x48xf32>
      %66 = math.exp %65 : vector<1x48xf32>
      %cst_63 = arith.constant 1.000000e+00 : f32
      %67 = vector.broadcast %cst_63 : f32 to vector<1x48xf32>
      %68 = arith.addf %67, %66 : vector<1x48xf32>
      %69 = arith.divf %67, %68 : vector<1x48xf32>
      %70 = vector.extract_strided_slice %63 {offsets = [0, 48], sizes = [1, 16], strides = [1, 1]} : vector<1x64xf32> to vector<1x16xf32>
      %71 = math.tanh %70 : vector<1x16xf32>
      %72 = vector.extract_strided_slice %69 {offsets = [0, 16], sizes = [1, 16], strides = [1, 1]} : vector<1x48xf32> to vector<1x16xf32>
      %73 = arith.mulf %72, %arg21 : vector<1x16xf32>
      %74 = vector.extract_strided_slice %69 {offsets = [0, 0], sizes = [1, 16], strides = [1, 1]} : vector<1x48xf32> to vector<1x16xf32>
      %75 = arith.mulf %74, %71 : vector<1x16xf32>
      %76 = arith.addf %73, %75 : vector<1x16xf32>
      %77 = vector.extract_strided_slice %69 {offsets = [0, 32], sizes = [1, 16], strides = [1, 1]} : vector<1x48xf32> to vector<1x16xf32>
      %78 = math.tanh %76 : vector<1x16xf32>
      %79 = arith.mulf %77, %78 : vector<1x16xf32>
      %80 = vector.extract_strided_slice %58 {offsets = [7, 0], sizes = [1, 64], strides = [1, 1]} : vector<8x64xbf16> to vector<1x64xbf16>
      %81 = arith.extf %80 : vector<1x64xbf16> to vector<1x64xf32>
      %82 = arith.truncf %arg22 : vector<1x16xf32> to vector<1x16xbf16>
      %cst_64 = arith.constant dense<0.000000e+00> : vector<1x64xf32>
      %83 = tpu.matmul %82, %15, %cst_64 {dimension_numbers = #tpu.dot_dimension_numbers<[1], [0], [0], [1], [0, 0, 1, 1], [], []>} : vector<1x16xbf16>, vector<16x64xbf16>, vector<1x64xf32> -> vector<1x64xf32>
      %84 = arith.addf %81, %83 : vector<1x64xf32>
      %85 = vector.extract_strided_slice %84 {offsets = [0, 0], sizes = [1, 48], strides = [1, 1]} : vector<1x64xf32> to vector<1x48xf32>
      %86 = arith.negf %85 : vector<1x48xf32>
      %87 = math.exp %86 : vector<1x48xf32>
      %cst_65 = arith.constant 1.000000e+00 : f32
      %88 = vector.broadcast %cst_65 : f32 to vector<1x48xf32>
      %89 = arith.addf %88, %87 : vector<1x48xf32>
      %90 = arith.divf %88, %89 : vector<1x48xf32>
      %91 = vector.extract_strided_slice %84 {offsets = [0, 48], sizes = [1, 16], strides = [1, 1]} : vector<1x64xf32> to vector<1x16xf32>
      %92 = math.tanh %91 : vector<1x16xf32>
      %93 = vector.extract_strided_slice %90 {offsets = [0, 16], sizes = [1, 16], strides = [1, 1]} : vector<1x48xf32> to vector<1x16xf32>
      %94 = arith.mulf %93, %arg23 : vector<1x16xf32>
      %95 = vector.extract_strided_slice %90 {offsets = [0, 0], sizes = [1, 16], strides = [1, 1]} : vector<1x48xf32> to vector<1x16xf32>
      %96 = arith.mulf %95, %92 : vector<1x16xf32>
      %97 = arith.addf %94, %96 : vector<1x16xf32>
      %98 = vector.extract_strided_slice %90 {offsets = [0, 32], sizes = [1, 16], strides = [1, 1]} : vector<1x48xf32> to vector<1x16xf32>
      %99 = math.tanh %97 : vector<1x16xf32>
      %100 = arith.mulf %98, %99 : vector<1x16xf32>
      %101 = vector.extract_strided_slice %56 {offsets = [1, 0], sizes = [1, 64], strides = [1, 1]} : vector<8x64xbf16> to vector<1x64xbf16>
      %102 = arith.extf %101 : vector<1x64xbf16> to vector<1x64xf32>
      %103 = arith.truncf %79 : vector<1x16xf32> to vector<1x16xbf16>
      %cst_66 = arith.constant dense<0.000000e+00> : vector<1x64xf32>
      %104 = tpu.matmul %103, %14, %cst_66 {dimension_numbers = #tpu.dot_dimension_numbers<[1], [0], [0], [1], [0, 0, 1, 1], [], []>} : vector<1x16xbf16>, vector<16x64xbf16>, vector<1x64xf32> -> vector<1x64xf32>
      %105 = arith.addf %102, %104 : vector<1x64xf32>
      %106 = vector.extract_strided_slice %105 {offsets = [0, 0], sizes = [1, 48], strides = [1, 1]} : vector<1x64xf32> to vector<1x48xf32>
      %107 = arith.negf %106 : vector<1x48xf32>
      %108 = math.exp %107 : vector<1x48xf32>
      %cst_67 = arith.constant 1.000000e+00 : f32
      %109 = vector.broadcast %cst_67 : f32 to vector<1x48xf32>
      %110 = arith.addf %109, %108 : vector<1x48xf32>
      %111 = arith.divf %109, %110 : vector<1x48xf32>
      %112 = vector.extract_strided_slice %105 {offsets = [0, 48], sizes = [1, 16], strides = [1, 1]} : vector<1x64xf32> to vector<1x16xf32>
      %113 = math.tanh %112 : vector<1x16xf32>
      %114 = vector.extract_strided_slice %111 {offsets = [0, 16], sizes = [1, 16], strides = [1, 1]} : vector<1x48xf32> to vector<1x16xf32>
      %115 = arith.mulf %114, %76 : vector<1x16xf32>
      %116 = vector.extract_strided_slice %111 {offsets = [0, 0], sizes = [1, 16], strides = [1, 1]} : vector<1x48xf32> to vector<1x16xf32>
      %117 = arith.mulf %116, %113 : vector<1x16xf32>
      %118 = arith.addf %115, %117 : vector<1x16xf32>
      %119 = vector.extract_strided_slice %111 {offsets = [0, 32], sizes = [1, 16], strides = [1, 1]} : vector<1x48xf32> to vector<1x16xf32>
      %120 = math.tanh %118 : vector<1x16xf32>
      %121 = arith.mulf %119, %120 : vector<1x16xf32>
      %122 = vector.extract_strided_slice %58 {offsets = [6, 0], sizes = [1, 64], strides = [1, 1]} : vector<8x64xbf16> to vector<1x64xbf16>
      %123 = arith.extf %122 : vector<1x64xbf16> to vector<1x64xf32>
      %124 = arith.truncf %100 : vector<1x16xf32> to vector<1x16xbf16>
      %cst_68 = arith.constant dense<0.000000e+00> : vector<1x64xf32>
      %125 = tpu.matmul %124, %15, %cst_68 {dimension_numbers = #tpu.dot_dimension_numbers<[1], [0], [0], [1], [0, 0, 1, 1], [], []>} : vector<1x16xbf16>, vector<16x64xbf16>, vector<1x64xf32> -> vector<1x64xf32>
      %126 = arith.addf %123, %125 : vector<1x64xf32>
      %127 = vector.extract_strided_slice %126 {offsets = [0, 0], sizes = [1, 48], strides = [1, 1]} : vector<1x64xf32> to vector<1x48xf32>
      %128 = arith.negf %127 : vector<1x48xf32>
      %129 = math.exp %128 : vector<1x48xf32>
      %cst_69 = arith.constant 1.000000e+00 : f32
      %130 = vector.broadcast %cst_69 : f32 to vector<1x48xf32>
      %131 = arith.addf %130, %129 : vector<1x48xf32>
      %132 = arith.divf %130, %131 : vector<1x48xf32>
      %133 = vector.extract_strided_slice %126 {offsets = [0, 48], sizes = [1, 16], strides = [1, 1]} : vector<1x64xf32> to vector<1x16xf32>
      %134 = math.tanh %133 : vector<1x16xf32>
      %135 = vector.extract_strided_slice %132 {offsets = [0, 16], sizes = [1, 16], strides = [1, 1]} : vector<1x48xf32> to vector<1x16xf32>
      %136 = arith.mulf %135, %97 : vector<1x16xf32>
      %137 = vector.extract_strided_slice %132 {offsets = [0, 0], sizes = [1, 16], strides = [1, 1]} : vector<1x48xf32> to vector<1x16xf32>
      %138 = arith.mulf %137, %134 : vector<1x16xf32>
      %139 = arith.addf %136, %138 : vector<1x16xf32>
      %140 = vector.extract_strided_slice %132 {offsets = [0, 32], sizes = [1, 16], strides = [1, 1]} : vector<1x48xf32> to vector<1x16xf32>
      %141 = math.tanh %139 : vector<1x16xf32>
      %142 = arith.mulf %140, %141 : vector<1x16xf32>
      %143 = vector.extract_strided_slice %56 {offsets = [2, 0], sizes = [1, 64], strides = [1, 1]} : vector<8x64xbf16> to vector<1x64xbf16>
      %144 = arith.extf %143 : vector<1x64xbf16> to vector<1x64xf32>
      %145 = arith.truncf %121 : vector<1x16xf32> to vector<1x16xbf16>
      %cst_70 = arith.constant dense<0.000000e+00> : vector<1x64xf32>
      %146 = tpu.matmul %145, %14, %cst_70 {dimension_numbers = #tpu.dot_dimension_numbers<[1], [0], [0], [1], [0, 0, 1, 1], [], []>} : vector<1x16xbf16>, vector<16x64xbf16>, vector<1x64xf32> -> vector<1x64xf32>
      %147 = arith.addf %144, %146 : vector<1x64xf32>
      %148 = vector.extract_strided_slice %147 {offsets = [0, 0], sizes = [1, 48], strides = [1, 1]} : vector<1x64xf32> to vector<1x48xf32>
      %149 = arith.negf %148 : vector<1x48xf32>
      %150 = math.exp %149 : vector<1x48xf32>
      %cst_71 = arith.constant 1.000000e+00 : f32
      %151 = vector.broadcast %cst_71 : f32 to vector<1x48xf32>
      %152 = arith.addf %151, %150 : vector<1x48xf32>
      %153 = arith.divf %151, %152 : vector<1x48xf32>
      %154 = vector.extract_strided_slice %147 {offsets = [0, 48], sizes = [1, 16], strides = [1, 1]} : vector<1x64xf32> to vector<1x16xf32>
      %155 = math.tanh %154 : vector<1x16xf32>
      %156 = vector.extract_strided_slice %153 {offsets = [0, 16], sizes = [1, 16], strides = [1, 1]} : vector<1x48xf32> to vector<1x16xf32>
      %157 = arith.mulf %156, %118 : vector<1x16xf32>
      %158 = vector.extract_strided_slice %153 {offsets = [0, 0], sizes = [1, 16], strides = [1, 1]} : vector<1x48xf32> to vector<1x16xf32>
      %159 = arith.mulf %158, %155 : vector<1x16xf32>
      %160 = arith.addf %157, %159 : vector<1x16xf32>
      %161 = vector.extract_strided_slice %153 {offsets = [0, 32], sizes = [1, 16], strides = [1, 1]} : vector<1x48xf32> to vector<1x16xf32>
      %162 = math.tanh %160 : vector<1x16xf32>
      %163 = arith.mulf %161, %162 : vector<1x16xf32>
      %164 = vector.extract_strided_slice %58 {offsets = [5, 0], sizes = [1, 64], strides = [1, 1]} : vector<8x64xbf16> to vector<1x64xbf16>
      %165 = arith.extf %164 : vector<1x64xbf16> to vector<1x64xf32>
      %166 = arith.truncf %142 : vector<1x16xf32> to vector<1x16xbf16>
      %cst_72 = arith.constant dense<0.000000e+00> : vector<1x64xf32>
      %167 = tpu.matmul %166, %15, %cst_72 {dimension_numbers = #tpu.dot_dimension_numbers<[1], [0], [0], [1], [0, 0, 1, 1], [], []>} : vector<1x16xbf16>, vector<16x64xbf16>, vector<1x64xf32> -> vector<1x64xf32>
      %168 = arith.addf %165, %167 : vector<1x64xf32>
      %169 = vector.extract_strided_slice %168 {offsets = [0, 0], sizes = [1, 48], strides = [1, 1]} : vector<1x64xf32> to vector<1x48xf32>
      %170 = arith.negf %169 : vector<1x48xf32>
      %171 = math.exp %170 : vector<1x48xf32>
      %cst_73 = arith.constant 1.000000e+00 : f32
      %172 = vector.broadcast %cst_73 : f32 to vector<1x48xf32>
      %173 = arith.addf %172, %171 : vector<1x48xf32>
      %174 = arith.divf %172, %173 : vector<1x48xf32>
      %175 = vector.extract_strided_slice %168 {offsets = [0, 48], sizes = [1, 16], strides = [1, 1]} : vector<1x64xf32> to vector<1x16xf32>
      %176 = math.tanh %175 : vector<1x16xf32>
      %177 = vector.extract_strided_slice %174 {offsets = [0, 16], sizes = [1, 16], strides = [1, 1]} : vector<1x48xf32> to vector<1x16xf32>
      %178 = arith.mulf %177, %139 : vector<1x16xf32>
      %179 = vector.extract_strided_slice %174 {offsets = [0, 0], sizes = [1, 16], strides = [1, 1]} : vector<1x48xf32> to vector<1x16xf32>
      %180 = arith.mulf %179, %176 : vector<1x16xf32>
      %181 = arith.addf %178, %180 : vector<1x16xf32>
      %182 = vector.extract_strided_slice %174 {offsets = [0, 32], sizes = [1, 16], strides = [1, 1]} : vector<1x48xf32> to vector<1x16xf32>
      %183 = math.tanh %181 : vector<1x16xf32>
      %184 = arith.mulf %182, %183 : vector<1x16xf32>
      %185 = vector.extract_strided_slice %56 {offsets = [3, 0], sizes = [1, 64], strides = [1, 1]} : vector<8x64xbf16> to vector<1x64xbf16>
      %186 = arith.extf %185 : vector<1x64xbf16> to vector<1x64xf32>
      %187 = arith.truncf %163 : vector<1x16xf32> to vector<1x16xbf16>
      %cst_74 = arith.constant dense<0.000000e+00> : vector<1x64xf32>
      %188 = tpu.matmul %187, %14, %cst_74 {dimension_numbers = #tpu.dot_dimension_numbers<[1], [0], [0], [1], [0, 0, 1, 1], [], []>} : vector<1x16xbf16>, vector<16x64xbf16>, vector<1x64xf32> -> vector<1x64xf32>
      %189 = arith.addf %186, %188 : vector<1x64xf32>
      %190 = vector.extract_strided_slice %189 {offsets = [0, 0], sizes = [1, 48], strides = [1, 1]} : vector<1x64xf32> to vector<1x48xf32>
      %191 = arith.negf %190 : vector<1x48xf32>
      %192 = math.exp %191 : vector<1x48xf32>
      %cst_75 = arith.constant 1.000000e+00 : f32
      %193 = vector.broadcast %cst_75 : f32 to vector<1x48xf32>
      %194 = arith.addf %193, %192 : vector<1x48xf32>
      %195 = arith.divf %193, %194 : vector<1x48xf32>
      %196 = vector.extract_strided_slice %189 {offsets = [0, 48], sizes = [1, 16], strides = [1, 1]} : vector<1x64xf32> to vector<1x16xf32>
      %197 = math.tanh %196 : vector<1x16xf32>
      %198 = vector.extract_strided_slice %195 {offsets = [0, 16], sizes = [1, 16], strides = [1, 1]} : vector<1x48xf32> to vector<1x16xf32>
      %199 = arith.mulf %198, %160 : vector<1x16xf32>
      %200 = vector.extract_strided_slice %195 {offsets = [0, 0], sizes = [1, 16], strides = [1, 1]} : vector<1x48xf32> to vector<1x16xf32>
      %201 = arith.mulf %200, %197 : vector<1x16xf32>
      %202 = arith.addf %199, %201 : vector<1x16xf32>
      %203 = vector.extract_strided_slice %195 {offsets = [0, 32], sizes = [1, 16], strides = [1, 1]} : vector<1x48xf32> to vector<1x16xf32>
      %204 = math.tanh %202 : vector<1x16xf32>
      %205 = arith.mulf %203, %204 : vector<1x16xf32>
      %206 = vector.extract_strided_slice %58 {offsets = [4, 0], sizes = [1, 64], strides = [1, 1]} : vector<8x64xbf16> to vector<1x64xbf16>
      %207 = arith.extf %206 : vector<1x64xbf16> to vector<1x64xf32>
      %208 = arith.truncf %184 : vector<1x16xf32> to vector<1x16xbf16>
      %cst_76 = arith.constant dense<0.000000e+00> : vector<1x64xf32>
      %209 = tpu.matmul %208, %15, %cst_76 {dimension_numbers = #tpu.dot_dimension_numbers<[1], [0], [0], [1], [0, 0, 1, 1], [], []>} : vector<1x16xbf16>, vector<16x64xbf16>, vector<1x64xf32> -> vector<1x64xf32>
      %210 = arith.addf %207, %209 : vector<1x64xf32>
      %211 = vector.extract_strided_slice %210 {offsets = [0, 0], sizes = [1, 48], strides = [1, 1]} : vector<1x64xf32> to vector<1x48xf32>
      %212 = arith.negf %211 : vector<1x48xf32>
      %213 = math.exp %212 : vector<1x48xf32>
      %cst_77 = arith.constant 1.000000e+00 : f32
      %214 = vector.broadcast %cst_77 : f32 to vector<1x48xf32>
      %215 = arith.addf %214, %213 : vector<1x48xf32>
      %216 = arith.divf %214, %215 : vector<1x48xf32>
      %217 = vector.extract_strided_slice %210 {offsets = [0, 48], sizes = [1, 16], strides = [1, 1]} : vector<1x64xf32> to vector<1x16xf32>
      %218 = math.tanh %217 : vector<1x16xf32>
      %219 = vector.extract_strided_slice %216 {offsets = [0, 16], sizes = [1, 16], strides = [1, 1]} : vector<1x48xf32> to vector<1x16xf32>
      %220 = arith.mulf %219, %181 : vector<1x16xf32>
      %221 = vector.extract_strided_slice %216 {offsets = [0, 0], sizes = [1, 16], strides = [1, 1]} : vector<1x48xf32> to vector<1x16xf32>
      %222 = arith.mulf %221, %218 : vector<1x16xf32>
      %223 = arith.addf %220, %222 : vector<1x16xf32>
      %224 = vector.extract_strided_slice %216 {offsets = [0, 32], sizes = [1, 16], strides = [1, 1]} : vector<1x48xf32> to vector<1x16xf32>
      %225 = math.tanh %223 : vector<1x16xf32>
      %226 = arith.mulf %224, %225 : vector<1x16xf32>
      %227 = vector.extract_strided_slice %56 {offsets = [4, 0], sizes = [1, 64], strides = [1, 1]} : vector<8x64xbf16> to vector<1x64xbf16>
      %228 = arith.extf %227 : vector<1x64xbf16> to vector<1x64xf32>
      %229 = arith.truncf %205 : vector<1x16xf32> to vector<1x16xbf16>
      %cst_78 = arith.constant dense<0.000000e+00> : vector<1x64xf32>
      %230 = tpu.matmul %229, %14, %cst_78 {dimension_numbers = #tpu.dot_dimension_numbers<[1], [0], [0], [1], [0, 0, 1, 1], [], []>} : vector<1x16xbf16>, vector<16x64xbf16>, vector<1x64xf32> -> vector<1x64xf32>
      %231 = arith.addf %228, %230 : vector<1x64xf32>
      %232 = vector.extract_strided_slice %231 {offsets = [0, 0], sizes = [1, 48], strides = [1, 1]} : vector<1x64xf32> to vector<1x48xf32>
      %233 = arith.negf %232 : vector<1x48xf32>
      %234 = math.exp %233 : vector<1x48xf32>
      %cst_79 = arith.constant 1.000000e+00 : f32
      %235 = vector.broadcast %cst_79 : f32 to vector<1x48xf32>
      %236 = arith.addf %235, %234 : vector<1x48xf32>
      %237 = arith.divf %235, %236 : vector<1x48xf32>
      %238 = vector.extract_strided_slice %231 {offsets = [0, 48], sizes = [1, 16], strides = [1, 1]} : vector<1x64xf32> to vector<1x16xf32>
      %239 = math.tanh %238 : vector<1x16xf32>
      %240 = vector.extract_strided_slice %237 {offsets = [0, 16], sizes = [1, 16], strides = [1, 1]} : vector<1x48xf32> to vector<1x16xf32>
      %241 = arith.mulf %240, %202 : vector<1x16xf32>
      %242 = vector.extract_strided_slice %237 {offsets = [0, 0], sizes = [1, 16], strides = [1, 1]} : vector<1x48xf32> to vector<1x16xf32>
      %243 = arith.mulf %242, %239 : vector<1x16xf32>
      %244 = arith.addf %241, %243 : vector<1x16xf32>
      %245 = vector.extract_strided_slice %237 {offsets = [0, 32], sizes = [1, 16], strides = [1, 1]} : vector<1x48xf32> to vector<1x16xf32>
      %246 = math.tanh %244 : vector<1x16xf32>
      %247 = arith.mulf %245, %246 : vector<1x16xf32>
      %248 = vector.extract_strided_slice %58 {offsets = [3, 0], sizes = [1, 64], strides = [1, 1]} : vector<8x64xbf16> to vector<1x64xbf16>
      %249 = arith.extf %248 : vector<1x64xbf16> to vector<1x64xf32>
      %250 = arith.truncf %226 : vector<1x16xf32> to vector<1x16xbf16>
      %cst_80 = arith.constant dense<0.000000e+00> : vector<1x64xf32>
      %251 = tpu.matmul %250, %15, %cst_80 {dimension_numbers = #tpu.dot_dimension_numbers<[1], [0], [0], [1], [0, 0, 1, 1], [], []>} : vector<1x16xbf16>, vector<16x64xbf16>, vector<1x64xf32> -> vector<1x64xf32>
      %252 = arith.addf %249, %251 : vector<1x64xf32>
      %253 = vector.extract_strided_slice %252 {offsets = [0, 0], sizes = [1, 48], strides = [1, 1]} : vector<1x64xf32> to vector<1x48xf32>
      %254 = arith.negf %253 : vector<1x48xf32>
      %255 = math.exp %254 : vector<1x48xf32>
      %cst_81 = arith.constant 1.000000e+00 : f32
      %256 = vector.broadcast %cst_81 : f32 to vector<1x48xf32>
      %257 = arith.addf %256, %255 : vector<1x48xf32>
      %258 = arith.divf %256, %257 : vector<1x48xf32>
      %259 = vector.extract_strided_slice %252 {offsets = [0, 48], sizes = [1, 16], strides = [1, 1]} : vector<1x64xf32> to vector<1x16xf32>
      %260 = math.tanh %259 : vector<1x16xf32>
      %261 = vector.extract_strided_slice %258 {offsets = [0, 16], sizes = [1, 16], strides = [1, 1]} : vector<1x48xf32> to vector<1x16xf32>
      %262 = arith.mulf %261, %223 : vector<1x16xf32>
      %263 = vector.extract_strided_slice %258 {offsets = [0, 0], sizes = [1, 16], strides = [1, 1]} : vector<1x48xf32> to vector<1x16xf32>
      %264 = arith.mulf %263, %260 : vector<1x16xf32>
      %265 = arith.addf %262, %264 : vector<1x16xf32>
      %266 = vector.extract_strided_slice %258 {offsets = [0, 32], sizes = [1, 16], strides = [1, 1]} : vector<1x48xf32> to vector<1x16xf32>
      %267 = math.tanh %265 : vector<1x16xf32>
      %268 = arith.mulf %266, %267 : vector<1x16xf32>
      %269 = vector.extract_strided_slice %56 {offsets = [5, 0], sizes = [1, 64], strides = [1, 1]} : vector<8x64xbf16> to vector<1x64xbf16>
      %270 = arith.extf %269 : vector<1x64xbf16> to vector<1x64xf32>
      %271 = arith.truncf %247 : vector<1x16xf32> to vector<1x16xbf16>
      %cst_82 = arith.constant dense<0.000000e+00> : vector<1x64xf32>
      %272 = tpu.matmul %271, %14, %cst_82 {dimension_numbers = #tpu.dot_dimension_numbers<[1], [0], [0], [1], [0, 0, 1, 1], [], []>} : vector<1x16xbf16>, vector<16x64xbf16>, vector<1x64xf32> -> vector<1x64xf32>
      %273 = arith.addf %270, %272 : vector<1x64xf32>
      %274 = vector.extract_strided_slice %273 {offsets = [0, 0], sizes = [1, 48], strides = [1, 1]} : vector<1x64xf32> to vector<1x48xf32>
      %275 = arith.negf %274 : vector<1x48xf32>
      %276 = math.exp %275 : vector<1x48xf32>
      %cst_83 = arith.constant 1.000000e+00 : f32
      %277 = vector.broadcast %cst_83 : f32 to vector<1x48xf32>
      %278 = arith.addf %277, %276 : vector<1x48xf32>
      %279 = arith.divf %277, %278 : vector<1x48xf32>
      %280 = vector.extract_strided_slice %273 {offsets = [0, 48], sizes = [1, 16], strides = [1, 1]} : vector<1x64xf32> to vector<1x16xf32>
      %281 = math.tanh %280 : vector<1x16xf32>
      %282 = vector.extract_strided_slice %279 {offsets = [0, 16], sizes = [1, 16], strides = [1, 1]} : vector<1x48xf32> to vector<1x16xf32>
      %283 = arith.mulf %282, %244 : vector<1x16xf32>
      %284 = vector.extract_strided_slice %279 {offsets = [0, 0], sizes = [1, 16], strides = [1, 1]} : vector<1x48xf32> to vector<1x16xf32>
      %285 = arith.mulf %284, %281 : vector<1x16xf32>
      %286 = arith.addf %283, %285 : vector<1x16xf32>
      %287 = vector.extract_strided_slice %279 {offsets = [0, 32], sizes = [1, 16], strides = [1, 1]} : vector<1x48xf32> to vector<1x16xf32>
      %288 = math.tanh %286 : vector<1x16xf32>
      %289 = arith.mulf %287, %288 : vector<1x16xf32>
      %290 = vector.extract_strided_slice %58 {offsets = [2, 0], sizes = [1, 64], strides = [1, 1]} : vector<8x64xbf16> to vector<1x64xbf16>
      %291 = arith.extf %290 : vector<1x64xbf16> to vector<1x64xf32>
      %292 = arith.truncf %268 : vector<1x16xf32> to vector<1x16xbf16>
      %cst_84 = arith.constant dense<0.000000e+00> : vector<1x64xf32>
      %293 = tpu.matmul %292, %15, %cst_84 {dimension_numbers = #tpu.dot_dimension_numbers<[1], [0], [0], [1], [0, 0, 1, 1], [], []>} : vector<1x16xbf16>, vector<16x64xbf16>, vector<1x64xf32> -> vector<1x64xf32>
      %294 = arith.addf %291, %293 : vector<1x64xf32>
      %295 = vector.extract_strided_slice %294 {offsets = [0, 0], sizes = [1, 48], strides = [1, 1]} : vector<1x64xf32> to vector<1x48xf32>
      %296 = arith.negf %295 : vector<1x48xf32>
      %297 = math.exp %296 : vector<1x48xf32>
      %cst_85 = arith.constant 1.000000e+00 : f32
      %298 = vector.broadcast %cst_85 : f32 to vector<1x48xf32>
      %299 = arith.addf %298, %297 : vector<1x48xf32>
      %300 = arith.divf %298, %299 : vector<1x48xf32>
      %301 = vector.extract_strided_slice %294 {offsets = [0, 48], sizes = [1, 16], strides = [1, 1]} : vector<1x64xf32> to vector<1x16xf32>
      %302 = math.tanh %301 : vector<1x16xf32>
      %303 = vector.extract_strided_slice %300 {offsets = [0, 16], sizes = [1, 16], strides = [1, 1]} : vector<1x48xf32> to vector<1x16xf32>
      %304 = arith.mulf %303, %265 : vector<1x16xf32>
      %305 = vector.extract_strided_slice %300 {offsets = [0, 0], sizes = [1, 16], strides = [1, 1]} : vector<1x48xf32> to vector<1x16xf32>
      %306 = arith.mulf %305, %302 : vector<1x16xf32>
      %307 = arith.addf %304, %306 : vector<1x16xf32>
      %308 = vector.extract_strided_slice %300 {offsets = [0, 32], sizes = [1, 16], strides = [1, 1]} : vector<1x48xf32> to vector<1x16xf32>
      %309 = math.tanh %307 : vector<1x16xf32>
      %310 = arith.mulf %308, %309 : vector<1x16xf32>
      %311 = vector.extract_strided_slice %56 {offsets = [6, 0], sizes = [1, 64], strides = [1, 1]} : vector<8x64xbf16> to vector<1x64xbf16>
      %312 = arith.extf %311 : vector<1x64xbf16> to vector<1x64xf32>
      %313 = arith.truncf %289 : vector<1x16xf32> to vector<1x16xbf16>
      %cst_86 = arith.constant dense<0.000000e+00> : vector<1x64xf32>
      %314 = tpu.matmul %313, %14, %cst_86 {dimension_numbers = #tpu.dot_dimension_numbers<[1], [0], [0], [1], [0, 0, 1, 1], [], []>} : vector<1x16xbf16>, vector<16x64xbf16>, vector<1x64xf32> -> vector<1x64xf32>
      %315 = arith.addf %312, %314 : vector<1x64xf32>
      %316 = vector.extract_strided_slice %315 {offsets = [0, 0], sizes = [1, 48], strides = [1, 1]} : vector<1x64xf32> to vector<1x48xf32>
      %317 = arith.negf %316 : vector<1x48xf32>
      %318 = math.exp %317 : vector<1x48xf32>
      %cst_87 = arith.constant 1.000000e+00 : f32
      %319 = vector.broadcast %cst_87 : f32 to vector<1x48xf32>
      %320 = arith.addf %319, %318 : vector<1x48xf32>
      %321 = arith.divf %319, %320 : vector<1x48xf32>
      %322 = vector.extract_strided_slice %315 {offsets = [0, 48], sizes = [1, 16], strides = [1, 1]} : vector<1x64xf32> to vector<1x16xf32>
      %323 = math.tanh %322 : vector<1x16xf32>
      %324 = vector.extract_strided_slice %321 {offsets = [0, 16], sizes = [1, 16], strides = [1, 1]} : vector<1x48xf32> to vector<1x16xf32>
      %325 = arith.mulf %324, %286 : vector<1x16xf32>
      %326 = vector.extract_strided_slice %321 {offsets = [0, 0], sizes = [1, 16], strides = [1, 1]} : vector<1x48xf32> to vector<1x16xf32>
      %327 = arith.mulf %326, %323 : vector<1x16xf32>
      %328 = arith.addf %325, %327 : vector<1x16xf32>
      %329 = vector.extract_strided_slice %321 {offsets = [0, 32], sizes = [1, 16], strides = [1, 1]} : vector<1x48xf32> to vector<1x16xf32>
      %330 = math.tanh %328 : vector<1x16xf32>
      %331 = arith.mulf %329, %330 : vector<1x16xf32>
      %332 = vector.extract_strided_slice %58 {offsets = [1, 0], sizes = [1, 64], strides = [1, 1]} : vector<8x64xbf16> to vector<1x64xbf16>
      %333 = arith.extf %332 : vector<1x64xbf16> to vector<1x64xf32>
      %334 = arith.truncf %310 : vector<1x16xf32> to vector<1x16xbf16>
      %cst_88 = arith.constant dense<0.000000e+00> : vector<1x64xf32>
      %335 = tpu.matmul %334, %15, %cst_88 {dimension_numbers = #tpu.dot_dimension_numbers<[1], [0], [0], [1], [0, 0, 1, 1], [], []>} : vector<1x16xbf16>, vector<16x64xbf16>, vector<1x64xf32> -> vector<1x64xf32>
      %336 = arith.addf %333, %335 : vector<1x64xf32>
      %337 = vector.extract_strided_slice %336 {offsets = [0, 0], sizes = [1, 48], strides = [1, 1]} : vector<1x64xf32> to vector<1x48xf32>
      %338 = arith.negf %337 : vector<1x48xf32>
      %339 = math.exp %338 : vector<1x48xf32>
      %cst_89 = arith.constant 1.000000e+00 : f32
      %340 = vector.broadcast %cst_89 : f32 to vector<1x48xf32>
      %341 = arith.addf %340, %339 : vector<1x48xf32>
      %342 = arith.divf %340, %341 : vector<1x48xf32>
      %343 = vector.extract_strided_slice %336 {offsets = [0, 48], sizes = [1, 16], strides = [1, 1]} : vector<1x64xf32> to vector<1x16xf32>
      %344 = math.tanh %343 : vector<1x16xf32>
      %345 = vector.extract_strided_slice %342 {offsets = [0, 16], sizes = [1, 16], strides = [1, 1]} : vector<1x48xf32> to vector<1x16xf32>
      %346 = arith.mulf %345, %307 : vector<1x16xf32>
      %347 = vector.extract_strided_slice %342 {offsets = [0, 0], sizes = [1, 16], strides = [1, 1]} : vector<1x48xf32> to vector<1x16xf32>
      %348 = arith.mulf %347, %344 : vector<1x16xf32>
      %349 = arith.addf %346, %348 : vector<1x16xf32>
      %350 = vector.extract_strided_slice %342 {offsets = [0, 32], sizes = [1, 16], strides = [1, 1]} : vector<1x48xf32> to vector<1x16xf32>
      %351 = math.tanh %349 : vector<1x16xf32>
      %352 = arith.mulf %350, %351 : vector<1x16xf32>
      %353 = vector.extract_strided_slice %56 {offsets = [7, 0], sizes = [1, 64], strides = [1, 1]} : vector<8x64xbf16> to vector<1x64xbf16>
      %354 = arith.extf %353 : vector<1x64xbf16> to vector<1x64xf32>
      %355 = arith.truncf %331 : vector<1x16xf32> to vector<1x16xbf16>
      %cst_90 = arith.constant dense<0.000000e+00> : vector<1x64xf32>
      %356 = tpu.matmul %355, %14, %cst_90 {dimension_numbers = #tpu.dot_dimension_numbers<[1], [0], [0], [1], [0, 0, 1, 1], [], []>} : vector<1x16xbf16>, vector<16x64xbf16>, vector<1x64xf32> -> vector<1x64xf32>
      %357 = arith.addf %354, %356 : vector<1x64xf32>
      %358 = vector.extract_strided_slice %357 {offsets = [0, 0], sizes = [1, 48], strides = [1, 1]} : vector<1x64xf32> to vector<1x48xf32>
      %359 = arith.negf %358 : vector<1x48xf32>
      %360 = math.exp %359 : vector<1x48xf32>
      %cst_91 = arith.constant 1.000000e+00 : f32
      %361 = vector.broadcast %cst_91 : f32 to vector<1x48xf32>
      %362 = arith.addf %361, %360 : vector<1x48xf32>
      %363 = arith.divf %361, %362 : vector<1x48xf32>
      %364 = vector.extract_strided_slice %357 {offsets = [0, 48], sizes = [1, 16], strides = [1, 1]} : vector<1x64xf32> to vector<1x16xf32>
      %365 = math.tanh %364 : vector<1x16xf32>
      %366 = vector.extract_strided_slice %363 {offsets = [0, 16], sizes = [1, 16], strides = [1, 1]} : vector<1x48xf32> to vector<1x16xf32>
      %367 = arith.mulf %366, %328 : vector<1x16xf32>
      %368 = vector.extract_strided_slice %363 {offsets = [0, 0], sizes = [1, 16], strides = [1, 1]} : vector<1x48xf32> to vector<1x16xf32>
      %369 = arith.mulf %368, %365 : vector<1x16xf32>
      %370 = arith.addf %367, %369 : vector<1x16xf32>
      %371 = vector.extract_strided_slice %363 {offsets = [0, 32], sizes = [1, 16], strides = [1, 1]} : vector<1x48xf32> to vector<1x16xf32>
      %372 = math.tanh %370 : vector<1x16xf32>
      %373 = arith.mulf %371, %372 : vector<1x16xf32>
      %374 = vector.extract_strided_slice %58 {offsets = [0, 0], sizes = [1, 64], strides = [1, 1]} : vector<8x64xbf16> to vector<1x64xbf16>
      %375 = arith.extf %374 : vector<1x64xbf16> to vector<1x64xf32>
      %376 = arith.truncf %352 : vector<1x16xf32> to vector<1x16xbf16>
      %cst_92 = arith.constant dense<0.000000e+00> : vector<1x64xf32>
      %377 = tpu.matmul %376, %15, %cst_92 {dimension_numbers = #tpu.dot_dimension_numbers<[1], [0], [0], [1], [0, 0, 1, 1], [], []>} : vector<1x16xbf16>, vector<16x64xbf16>, vector<1x64xf32> -> vector<1x64xf32>
      %378 = arith.addf %375, %377 : vector<1x64xf32>
      %379 = vector.extract_strided_slice %378 {offsets = [0, 0], sizes = [1, 48], strides = [1, 1]} : vector<1x64xf32> to vector<1x48xf32>
      %380 = arith.negf %379 : vector<1x48xf32>
      %381 = math.exp %380 : vector<1x48xf32>
      %cst_93 = arith.constant 1.000000e+00 : f32
      %382 = vector.broadcast %cst_93 : f32 to vector<1x48xf32>
      %383 = arith.addf %382, %381 : vector<1x48xf32>
      %384 = arith.divf %382, %383 : vector<1x48xf32>
      %385 = vector.extract_strided_slice %378 {offsets = [0, 48], sizes = [1, 16], strides = [1, 1]} : vector<1x64xf32> to vector<1x16xf32>
      %386 = math.tanh %385 : vector<1x16xf32>
      %387 = vector.extract_strided_slice %384 {offsets = [0, 16], sizes = [1, 16], strides = [1, 1]} : vector<1x48xf32> to vector<1x16xf32>
      %388 = arith.mulf %387, %349 : vector<1x16xf32>
      %389 = vector.extract_strided_slice %384 {offsets = [0, 0], sizes = [1, 16], strides = [1, 1]} : vector<1x48xf32> to vector<1x16xf32>
      %390 = arith.mulf %389, %386 : vector<1x16xf32>
      %391 = arith.addf %388, %390 : vector<1x16xf32>
      %392 = vector.extract_strided_slice %384 {offsets = [0, 32], sizes = [1, 16], strides = [1, 1]} : vector<1x48xf32> to vector<1x16xf32>
      %393 = math.tanh %391 : vector<1x16xf32>
      %394 = arith.mulf %392, %393 : vector<1x16xf32>
      %395 = tpu.concatenate %79, %121, %163, %205, %247, %289, %331, %373 in 0 : vector<1x16xf32>, vector<1x16xf32>, vector<1x16xf32>, vector<1x16xf32>, vector<1x16xf32>, vector<1x16xf32>, vector<1x16xf32>, vector<1x16xf32> -> vector<8x16xf32>
      %396 = tpu.concatenate %394, %352, %310, %268, %226, %184, %142, %100 in 0 : vector<1x16xf32>, vector<1x16xf32>, vector<1x16xf32>, vector<1x16xf32>, vector<1x16xf32>, vector<1x16xf32>, vector<1x16xf32>, vector<1x16xf32> -> vector<8x16xf32>
      %397 = arith.index_cast %51 : i32 to index
      %c0_94 = arith.constant 0 : index
      %398 = vector.load %arg15[%397, %c0_94] : memref<16x32xf32, #tpu.memory_space<vmem>>, vector<8x16xf32>
      tpu.vector_store %arg15[%397, %c0_94], %395 {strides = array<i32>} : memref<16x32xf32, #tpu.memory_space<vmem>>, vector<8x16xf32>,
      %399 = arith.index_cast %54 : i32 to index
      %c16 = arith.constant 16 : index
      %400 = vector.load %arg15[%399, %c16] : memref<16x32xf32, #tpu.memory_space<vmem>>, vector<8x16xf32>
      tpu.vector_store %arg15[%399, %c16], %396 {strides = array<i32>} : memref<16x32xf32, #tpu.memory_space<vmem>>, vector<8x16xf32>,
      scf.yield %373, %370, %394, %391 : vector<1x16xf32>, vector<1x16xf32>, vector<1x16xf32>, vector<1x16xf32>
    }
    %c2_i32_20 = arith.constant 2 : i32
    %c0_21 = arith.constant 0 : index
    %c0_22 = arith.constant 0 : index
    %20 = vector.load %arg15[%c0_21, %c0_22] : memref<16x32xf32, #tpu.memory_space<vmem>>, vector<16x32xf32>
    %21 = arith.truncf %20 : vector<16x32xf32> to vector<16x32xbf16>
    %c0_23 = arith.constant 0 : index
    %c0_24 = arith.constant 0 : index
    %22 = vector.load %arg6[%c0_23, %c0_24] : memref<32x128xbf16, #tpu.memory_space<vmem>>, vector<32x128xbf16>
    %cst_25 = arith.constant dense<0.000000e+00> : vector<16x128xf32>
    %23 = tpu.matmul %21, %22, %cst_25 {dimension_numbers = #tpu.dot_dimension_numbers<[1], [0], [0], [1], [0, 0, 1, 1], [], []>} : vector<16x32xbf16>, vector<32x128xbf16>, vector<16x128xf32> -> vector<16x128xf32>
    %c0_26 = arith.constant 0 : index
    %c0_27 = arith.constant 0 : index
    %24 = vector.load %arg9[%c0_26, %c0_27] : memref<1x128xf32, #tpu.memory_space<vmem>>, vector<1x128xf32>
    %25 = vector.broadcast %24 : vector<1x128xf32> to vector<16x128xf32>
    %26 = arith.addf %23, %25 : vector<16x128xf32>
    %27 = arith.truncf %26 : vector<16x128xf32> to vector<16x128xbf16>
    %c0_28 = arith.constant 0 : index
    %c0_29 = arith.constant 0 : index
    %28 = vector.load %arg18[%c0_28, %c0_29] : memref<16x128xbf16, #tpu.memory_space<vmem>>, vector<16x128xbf16>
    tpu.vector_store %arg18[%c0_28, %c0_29], %27 {strides = array<i32>} : memref<16x128xbf16, #tpu.memory_space<vmem>>, vector<16x128xbf16>,
    %c0_30 = arith.constant 0 : index
    %c0_31 = arith.constant 0 : index
    %29 = vector.load %arg7[%c0_30, %c0_31] : memref<16x64xbf16, #tpu.memory_space<vmem>>, vector<16x64xbf16>
    %c0_32 = arith.constant 0 : index
    %c0_33 = arith.constant 0 : index
    %30 = vector.load %arg8[%c0_32, %c0_33] : memref<16x64xbf16, #tpu.memory_space<vmem>>, vector<16x64xbf16>
    %cst_34 = arith.constant 0.000000e+00 : f32
    %31 = vector.broadcast %cst_34 : f32 to vector<1x16xf32>
    %cst_35 = arith.constant 0.000000e+00 : f32
    %32 = vector.broadcast %cst_35 : f32 to vector<1x16xf32>
    %c0_i32_36 = arith.constant 0 : i32
    %c2_i32_37 = arith.constant 2 : i32
    %33 = arith.addi %c0_i32_36, %c2_i32_37 : i32
    %c1_i32_38 = arith.constant 1 : i32
    %34:4 = scf.for %arg19 = %c0_i32_36 to %33 step %c1_i32_38 iter_args(%arg20 = %31, %arg21 = %32, %arg22 = %31, %arg23 = %32) -> (vector<1x16xf32>, vector<1x16xf32>, vector<1x16xf32>, vector<1x16xf32>)  : i32 {
      %c8_i32 = arith.constant 8 : i32
      %50 = arith.muli %arg19, %c8_i32 : i32
      %51 = tpu.assume_multiple %50, 8 : i32
      %c8_i32_59 = arith.constant 8 : i32
      %52 = arith.muli %arg19, %c8_i32_59 : i32
      %c8_i32_60 = arith.constant 8 : i32
      %53 = arith.subi %c8_i32_60, %52 : i32
      %54 = tpu.assume_multiple %53, 8 : i32
      %55 = arith.index_cast %51 : i32 to index
      %c0_61 = arith.constant 0 : index
      %56 = vector.load %arg18[%55, %c0_61] : memref<16x128xbf16, #tpu.memory_space<vmem>>, vector<8x64xbf16>
      %57 = arith.index_cast %54 : i32 to index
      %c64 = arith.constant 64 : index
      %58 = vector.load %arg18[%57, %c64] : memref<16x128xbf16, #tpu.memory_space<vmem>>, vector<8x64xbf16>
      %59 = vector.extract_strided_slice %56 {offsets = [0, 0], sizes = [1, 64], strides = [1, 1]} : vector<8x64xbf16> to vector<1x64xbf16>
      %60 = arith.extf %59 : vector<1x64xbf16> to vector<1x64xf32>
      %61 = arith.truncf %arg20 : vector<1x16xf32> to vector<1x16xbf16>
      %cst_62 = arith.constant dense<0.000000e+00> : vector<1x64xf32>
      %62 = tpu.matmul %61, %29, %cst_62 {dimension_numbers = #tpu.dot_dimension_numbers<[1], [0], [0], [1], [0, 0, 1, 1], [], []>} : vector<1x16xbf16>, vector<16x64xbf16>, vector<1x64xf32> -> vector<1x64xf32>
      %63 = arith.addf %60, %62 : vector<1x64xf32>
      %64 = vector.extract_strided_slice %63 {offsets = [0, 0], sizes = [1, 48], strides = [1, 1]} : vector<1x64xf32> to vector<1x48xf32>
      %65 = arith.negf %64 : vector<1x48xf32>
      %66 = math.exp %65 : vector<1x48xf32>
      %cst_63 = arith.constant 1.000000e+00 : f32
      %67 = vector.broadcast %cst_63 : f32 to vector<1x48xf32>
      %68 = arith.addf %67, %66 : vector<1x48xf32>
      %69 = arith.divf %67, %68 : vector<1x48xf32>
      %70 = vector.extract_strided_slice %63 {offsets = [0, 48], sizes = [1, 16], strides = [1, 1]} : vector<1x64xf32> to vector<1x16xf32>
      %71 = math.tanh %70 : vector<1x16xf32>
      %72 = vector.extract_strided_slice %69 {offsets = [0, 16], sizes = [1, 16], strides = [1, 1]} : vector<1x48xf32> to vector<1x16xf32>
      %73 = arith.mulf %72, %arg21 : vector<1x16xf32>
      %74 = vector.extract_strided_slice %69 {offsets = [0, 0], sizes = [1, 16], strides = [1, 1]} : vector<1x48xf32> to vector<1x16xf32>
      %75 = arith.mulf %74, %71 : vector<1x16xf32>
      %76 = arith.addf %73, %75 : vector<1x16xf32>
      %77 = vector.extract_strided_slice %69 {offsets = [0, 32], sizes = [1, 16], strides = [1, 1]} : vector<1x48xf32> to vector<1x16xf32>
      %78 = math.tanh %76 : vector<1x16xf32>
      %79 = arith.mulf %77, %78 : vector<1x16xf32>
      %80 = vector.extract_strided_slice %58 {offsets = [7, 0], sizes = [1, 64], strides = [1, 1]} : vector<8x64xbf16> to vector<1x64xbf16>
      %81 = arith.extf %80 : vector<1x64xbf16> to vector<1x64xf32>
      %82 = arith.truncf %arg22 : vector<1x16xf32> to vector<1x16xbf16>
      %cst_64 = arith.constant dense<0.000000e+00> : vector<1x64xf32>
      %83 = tpu.matmul %82, %30, %cst_64 {dimension_numbers = #tpu.dot_dimension_numbers<[1], [0], [0], [1], [0, 0, 1, 1], [], []>} : vector<1x16xbf16>, vector<16x64xbf16>, vector<1x64xf32> -> vector<1x64xf32>
      %84 = arith.addf %81, %83 : vector<1x64xf32>
      %85 = vector.extract_strided_slice %84 {offsets = [0, 0], sizes = [1, 48], strides = [1, 1]} : vector<1x64xf32> to vector<1x48xf32>
      %86 = arith.negf %85 : vector<1x48xf32>
      %87 = math.exp %86 : vector<1x48xf32>
      %cst_65 = arith.constant 1.000000e+00 : f32
      %88 = vector.broadcast %cst_65 : f32 to vector<1x48xf32>
      %89 = arith.addf %88, %87 : vector<1x48xf32>
      %90 = arith.divf %88, %89 : vector<1x48xf32>
      %91 = vector.extract_strided_slice %84 {offsets = [0, 48], sizes = [1, 16], strides = [1, 1]} : vector<1x64xf32> to vector<1x16xf32>
      %92 = math.tanh %91 : vector<1x16xf32>
      %93 = vector.extract_strided_slice %90 {offsets = [0, 16], sizes = [1, 16], strides = [1, 1]} : vector<1x48xf32> to vector<1x16xf32>
      %94 = arith.mulf %93, %arg23 : vector<1x16xf32>
      %95 = vector.extract_strided_slice %90 {offsets = [0, 0], sizes = [1, 16], strides = [1, 1]} : vector<1x48xf32> to vector<1x16xf32>
      %96 = arith.mulf %95, %92 : vector<1x16xf32>
      %97 = arith.addf %94, %96 : vector<1x16xf32>
      %98 = vector.extract_strided_slice %90 {offsets = [0, 32], sizes = [1, 16], strides = [1, 1]} : vector<1x48xf32> to vector<1x16xf32>
      %99 = math.tanh %97 : vector<1x16xf32>
      %100 = arith.mulf %98, %99 : vector<1x16xf32>
      %101 = vector.extract_strided_slice %56 {offsets = [1, 0], sizes = [1, 64], strides = [1, 1]} : vector<8x64xbf16> to vector<1x64xbf16>
      %102 = arith.extf %101 : vector<1x64xbf16> to vector<1x64xf32>
      %103 = arith.truncf %79 : vector<1x16xf32> to vector<1x16xbf16>
      %cst_66 = arith.constant dense<0.000000e+00> : vector<1x64xf32>
      %104 = tpu.matmul %103, %29, %cst_66 {dimension_numbers = #tpu.dot_dimension_numbers<[1], [0], [0], [1], [0, 0, 1, 1], [], []>} : vector<1x16xbf16>, vector<16x64xbf16>, vector<1x64xf32> -> vector<1x64xf32>
      %105 = arith.addf %102, %104 : vector<1x64xf32>
      %106 = vector.extract_strided_slice %105 {offsets = [0, 0], sizes = [1, 48], strides = [1, 1]} : vector<1x64xf32> to vector<1x48xf32>
      %107 = arith.negf %106 : vector<1x48xf32>
      %108 = math.exp %107 : vector<1x48xf32>
      %cst_67 = arith.constant 1.000000e+00 : f32
      %109 = vector.broadcast %cst_67 : f32 to vector<1x48xf32>
      %110 = arith.addf %109, %108 : vector<1x48xf32>
      %111 = arith.divf %109, %110 : vector<1x48xf32>
      %112 = vector.extract_strided_slice %105 {offsets = [0, 48], sizes = [1, 16], strides = [1, 1]} : vector<1x64xf32> to vector<1x16xf32>
      %113 = math.tanh %112 : vector<1x16xf32>
      %114 = vector.extract_strided_slice %111 {offsets = [0, 16], sizes = [1, 16], strides = [1, 1]} : vector<1x48xf32> to vector<1x16xf32>
      %115 = arith.mulf %114, %76 : vector<1x16xf32>
      %116 = vector.extract_strided_slice %111 {offsets = [0, 0], sizes = [1, 16], strides = [1, 1]} : vector<1x48xf32> to vector<1x16xf32>
      %117 = arith.mulf %116, %113 : vector<1x16xf32>
      %118 = arith.addf %115, %117 : vector<1x16xf32>
      %119 = vector.extract_strided_slice %111 {offsets = [0, 32], sizes = [1, 16], strides = [1, 1]} : vector<1x48xf32> to vector<1x16xf32>
      %120 = math.tanh %118 : vector<1x16xf32>
      %121 = arith.mulf %119, %120 : vector<1x16xf32>
      %122 = vector.extract_strided_slice %58 {offsets = [6, 0], sizes = [1, 64], strides = [1, 1]} : vector<8x64xbf16> to vector<1x64xbf16>
      %123 = arith.extf %122 : vector<1x64xbf16> to vector<1x64xf32>
      %124 = arith.truncf %100 : vector<1x16xf32> to vector<1x16xbf16>
      %cst_68 = arith.constant dense<0.000000e+00> : vector<1x64xf32>
      %125 = tpu.matmul %124, %30, %cst_68 {dimension_numbers = #tpu.dot_dimension_numbers<[1], [0], [0], [1], [0, 0, 1, 1], [], []>} : vector<1x16xbf16>, vector<16x64xbf16>, vector<1x64xf32> -> vector<1x64xf32>
      %126 = arith.addf %123, %125 : vector<1x64xf32>
      %127 = vector.extract_strided_slice %126 {offsets = [0, 0], sizes = [1, 48], strides = [1, 1]} : vector<1x64xf32> to vector<1x48xf32>
      %128 = arith.negf %127 : vector<1x48xf32>
      %129 = math.exp %128 : vector<1x48xf32>
      %cst_69 = arith.constant 1.000000e+00 : f32
      %130 = vector.broadcast %cst_69 : f32 to vector<1x48xf32>
      %131 = arith.addf %130, %129 : vector<1x48xf32>
      %132 = arith.divf %130, %131 : vector<1x48xf32>
      %133 = vector.extract_strided_slice %126 {offsets = [0, 48], sizes = [1, 16], strides = [1, 1]} : vector<1x64xf32> to vector<1x16xf32>
      %134 = math.tanh %133 : vector<1x16xf32>
      %135 = vector.extract_strided_slice %132 {offsets = [0, 16], sizes = [1, 16], strides = [1, 1]} : vector<1x48xf32> to vector<1x16xf32>
      %136 = arith.mulf %135, %97 : vector<1x16xf32>
      %137 = vector.extract_strided_slice %132 {offsets = [0, 0], sizes = [1, 16], strides = [1, 1]} : vector<1x48xf32> to vector<1x16xf32>
      %138 = arith.mulf %137, %134 : vector<1x16xf32>
      %139 = arith.addf %136, %138 : vector<1x16xf32>
      %140 = vector.extract_strided_slice %132 {offsets = [0, 32], sizes = [1, 16], strides = [1, 1]} : vector<1x48xf32> to vector<1x16xf32>
      %141 = math.tanh %139 : vector<1x16xf32>
      %142 = arith.mulf %140, %141 : vector<1x16xf32>
      %143 = vector.extract_strided_slice %56 {offsets = [2, 0], sizes = [1, 64], strides = [1, 1]} : vector<8x64xbf16> to vector<1x64xbf16>
      %144 = arith.extf %143 : vector<1x64xbf16> to vector<1x64xf32>
      %145 = arith.truncf %121 : vector<1x16xf32> to vector<1x16xbf16>
      %cst_70 = arith.constant dense<0.000000e+00> : vector<1x64xf32>
      %146 = tpu.matmul %145, %29, %cst_70 {dimension_numbers = #tpu.dot_dimension_numbers<[1], [0], [0], [1], [0, 0, 1, 1], [], []>} : vector<1x16xbf16>, vector<16x64xbf16>, vector<1x64xf32> -> vector<1x64xf32>
      %147 = arith.addf %144, %146 : vector<1x64xf32>
      %148 = vector.extract_strided_slice %147 {offsets = [0, 0], sizes = [1, 48], strides = [1, 1]} : vector<1x64xf32> to vector<1x48xf32>
      %149 = arith.negf %148 : vector<1x48xf32>
      %150 = math.exp %149 : vector<1x48xf32>
      %cst_71 = arith.constant 1.000000e+00 : f32
      %151 = vector.broadcast %cst_71 : f32 to vector<1x48xf32>
      %152 = arith.addf %151, %150 : vector<1x48xf32>
      %153 = arith.divf %151, %152 : vector<1x48xf32>
      %154 = vector.extract_strided_slice %147 {offsets = [0, 48], sizes = [1, 16], strides = [1, 1]} : vector<1x64xf32> to vector<1x16xf32>
      %155 = math.tanh %154 : vector<1x16xf32>
      %156 = vector.extract_strided_slice %153 {offsets = [0, 16], sizes = [1, 16], strides = [1, 1]} : vector<1x48xf32> to vector<1x16xf32>
      %157 = arith.mulf %156, %118 : vector<1x16xf32>
      %158 = vector.extract_strided_slice %153 {offsets = [0, 0], sizes = [1, 16], strides = [1, 1]} : vector<1x48xf32> to vector<1x16xf32>
      %159 = arith.mulf %158, %155 : vector<1x16xf32>
      %160 = arith.addf %157, %159 : vector<1x16xf32>
      %161 = vector.extract_strided_slice %153 {offsets = [0, 32], sizes = [1, 16], strides = [1, 1]} : vector<1x48xf32> to vector<1x16xf32>
      %162 = math.tanh %160 : vector<1x16xf32>
      %163 = arith.mulf %161, %162 : vector<1x16xf32>
      %164 = vector.extract_strided_slice %58 {offsets = [5, 0], sizes = [1, 64], strides = [1, 1]} : vector<8x64xbf16> to vector<1x64xbf16>
      %165 = arith.extf %164 : vector<1x64xbf16> to vector<1x64xf32>
      %166 = arith.truncf %142 : vector<1x16xf32> to vector<1x16xbf16>
      %cst_72 = arith.constant dense<0.000000e+00> : vector<1x64xf32>
      %167 = tpu.matmul %166, %30, %cst_72 {dimension_numbers = #tpu.dot_dimension_numbers<[1], [0], [0], [1], [0, 0, 1, 1], [], []>} : vector<1x16xbf16>, vector<16x64xbf16>, vector<1x64xf32> -> vector<1x64xf32>
      %168 = arith.addf %165, %167 : vector<1x64xf32>
      %169 = vector.extract_strided_slice %168 {offsets = [0, 0], sizes = [1, 48], strides = [1, 1]} : vector<1x64xf32> to vector<1x48xf32>
      %170 = arith.negf %169 : vector<1x48xf32>
      %171 = math.exp %170 : vector<1x48xf32>
      %cst_73 = arith.constant 1.000000e+00 : f32
      %172 = vector.broadcast %cst_73 : f32 to vector<1x48xf32>
      %173 = arith.addf %172, %171 : vector<1x48xf32>
      %174 = arith.divf %172, %173 : vector<1x48xf32>
      %175 = vector.extract_strided_slice %168 {offsets = [0, 48], sizes = [1, 16], strides = [1, 1]} : vector<1x64xf32> to vector<1x16xf32>
      %176 = math.tanh %175 : vector<1x16xf32>
      %177 = vector.extract_strided_slice %174 {offsets = [0, 16], sizes = [1, 16], strides = [1, 1]} : vector<1x48xf32> to vector<1x16xf32>
      %178 = arith.mulf %177, %139 : vector<1x16xf32>
      %179 = vector.extract_strided_slice %174 {offsets = [0, 0], sizes = [1, 16], strides = [1, 1]} : vector<1x48xf32> to vector<1x16xf32>
      %180 = arith.mulf %179, %176 : vector<1x16xf32>
      %181 = arith.addf %178, %180 : vector<1x16xf32>
      %182 = vector.extract_strided_slice %174 {offsets = [0, 32], sizes = [1, 16], strides = [1, 1]} : vector<1x48xf32> to vector<1x16xf32>
      %183 = math.tanh %181 : vector<1x16xf32>
      %184 = arith.mulf %182, %183 : vector<1x16xf32>
      %185 = vector.extract_strided_slice %56 {offsets = [3, 0], sizes = [1, 64], strides = [1, 1]} : vector<8x64xbf16> to vector<1x64xbf16>
      %186 = arith.extf %185 : vector<1x64xbf16> to vector<1x64xf32>
      %187 = arith.truncf %163 : vector<1x16xf32> to vector<1x16xbf16>
      %cst_74 = arith.constant dense<0.000000e+00> : vector<1x64xf32>
      %188 = tpu.matmul %187, %29, %cst_74 {dimension_numbers = #tpu.dot_dimension_numbers<[1], [0], [0], [1], [0, 0, 1, 1], [], []>} : vector<1x16xbf16>, vector<16x64xbf16>, vector<1x64xf32> -> vector<1x64xf32>
      %189 = arith.addf %186, %188 : vector<1x64xf32>
      %190 = vector.extract_strided_slice %189 {offsets = [0, 0], sizes = [1, 48], strides = [1, 1]} : vector<1x64xf32> to vector<1x48xf32>
      %191 = arith.negf %190 : vector<1x48xf32>
      %192 = math.exp %191 : vector<1x48xf32>
      %cst_75 = arith.constant 1.000000e+00 : f32
      %193 = vector.broadcast %cst_75 : f32 to vector<1x48xf32>
      %194 = arith.addf %193, %192 : vector<1x48xf32>
      %195 = arith.divf %193, %194 : vector<1x48xf32>
      %196 = vector.extract_strided_slice %189 {offsets = [0, 48], sizes = [1, 16], strides = [1, 1]} : vector<1x64xf32> to vector<1x16xf32>
      %197 = math.tanh %196 : vector<1x16xf32>
      %198 = vector.extract_strided_slice %195 {offsets = [0, 16], sizes = [1, 16], strides = [1, 1]} : vector<1x48xf32> to vector<1x16xf32>
      %199 = arith.mulf %198, %160 : vector<1x16xf32>
      %200 = vector.extract_strided_slice %195 {offsets = [0, 0], sizes = [1, 16], strides = [1, 1]} : vector<1x48xf32> to vector<1x16xf32>
      %201 = arith.mulf %200, %197 : vector<1x16xf32>
      %202 = arith.addf %199, %201 : vector<1x16xf32>
      %203 = vector.extract_strided_slice %195 {offsets = [0, 32], sizes = [1, 16], strides = [1, 1]} : vector<1x48xf32> to vector<1x16xf32>
      %204 = math.tanh %202 : vector<1x16xf32>
      %205 = arith.mulf %203, %204 : vector<1x16xf32>
      %206 = vector.extract_strided_slice %58 {offsets = [4, 0], sizes = [1, 64], strides = [1, 1]} : vector<8x64xbf16> to vector<1x64xbf16>
      %207 = arith.extf %206 : vector<1x64xbf16> to vector<1x64xf32>
      %208 = arith.truncf %184 : vector<1x16xf32> to vector<1x16xbf16>
      %cst_76 = arith.constant dense<0.000000e+00> : vector<1x64xf32>
      %209 = tpu.matmul %208, %30, %cst_76 {dimension_numbers = #tpu.dot_dimension_numbers<[1], [0], [0], [1], [0, 0, 1, 1], [], []>} : vector<1x16xbf16>, vector<16x64xbf16>, vector<1x64xf32> -> vector<1x64xf32>
      %210 = arith.addf %207, %209 : vector<1x64xf32>
      %211 = vector.extract_strided_slice %210 {offsets = [0, 0], sizes = [1, 48], strides = [1, 1]} : vector<1x64xf32> to vector<1x48xf32>
      %212 = arith.negf %211 : vector<1x48xf32>
      %213 = math.exp %212 : vector<1x48xf32>
      %cst_77 = arith.constant 1.000000e+00 : f32
      %214 = vector.broadcast %cst_77 : f32 to vector<1x48xf32>
      %215 = arith.addf %214, %213 : vector<1x48xf32>
      %216 = arith.divf %214, %215 : vector<1x48xf32>
      %217 = vector.extract_strided_slice %210 {offsets = [0, 48], sizes = [1, 16], strides = [1, 1]} : vector<1x64xf32> to vector<1x16xf32>
      %218 = math.tanh %217 : vector<1x16xf32>
      %219 = vector.extract_strided_slice %216 {offsets = [0, 16], sizes = [1, 16], strides = [1, 1]} : vector<1x48xf32> to vector<1x16xf32>
      %220 = arith.mulf %219, %181 : vector<1x16xf32>
      %221 = vector.extract_strided_slice %216 {offsets = [0, 0], sizes = [1, 16], strides = [1, 1]} : vector<1x48xf32> to vector<1x16xf32>
      %222 = arith.mulf %221, %218 : vector<1x16xf32>
      %223 = arith.addf %220, %222 : vector<1x16xf32>
      %224 = vector.extract_strided_slice %216 {offsets = [0, 32], sizes = [1, 16], strides = [1, 1]} : vector<1x48xf32> to vector<1x16xf32>
      %225 = math.tanh %223 : vector<1x16xf32>
      %226 = arith.mulf %224, %225 : vector<1x16xf32>
      %227 = vector.extract_strided_slice %56 {offsets = [4, 0], sizes = [1, 64], strides = [1, 1]} : vector<8x64xbf16> to vector<1x64xbf16>
      %228 = arith.extf %227 : vector<1x64xbf16> to vector<1x64xf32>
      %229 = arith.truncf %205 : vector<1x16xf32> to vector<1x16xbf16>
      %cst_78 = arith.constant dense<0.000000e+00> : vector<1x64xf32>
      %230 = tpu.matmul %229, %29, %cst_78 {dimension_numbers = #tpu.dot_dimension_numbers<[1], [0], [0], [1], [0, 0, 1, 1], [], []>} : vector<1x16xbf16>, vector<16x64xbf16>, vector<1x64xf32> -> vector<1x64xf32>
      %231 = arith.addf %228, %230 : vector<1x64xf32>
      %232 = vector.extract_strided_slice %231 {offsets = [0, 0], sizes = [1, 48], strides = [1, 1]} : vector<1x64xf32> to vector<1x48xf32>
      %233 = arith.negf %232 : vector<1x48xf32>
      %234 = math.exp %233 : vector<1x48xf32>
      %cst_79 = arith.constant 1.000000e+00 : f32
      %235 = vector.broadcast %cst_79 : f32 to vector<1x48xf32>
      %236 = arith.addf %235, %234 : vector<1x48xf32>
      %237 = arith.divf %235, %236 : vector<1x48xf32>
      %238 = vector.extract_strided_slice %231 {offsets = [0, 48], sizes = [1, 16], strides = [1, 1]} : vector<1x64xf32> to vector<1x16xf32>
      %239 = math.tanh %238 : vector<1x16xf32>
      %240 = vector.extract_strided_slice %237 {offsets = [0, 16], sizes = [1, 16], strides = [1, 1]} : vector<1x48xf32> to vector<1x16xf32>
      %241 = arith.mulf %240, %202 : vector<1x16xf32>
      %242 = vector.extract_strided_slice %237 {offsets = [0, 0], sizes = [1, 16], strides = [1, 1]} : vector<1x48xf32> to vector<1x16xf32>
      %243 = arith.mulf %242, %239 : vector<1x16xf32>
      %244 = arith.addf %241, %243 : vector<1x16xf32>
      %245 = vector.extract_strided_slice %237 {offsets = [0, 32], sizes = [1, 16], strides = [1, 1]} : vector<1x48xf32> to vector<1x16xf32>
      %246 = math.tanh %244 : vector<1x16xf32>
      %247 = arith.mulf %245, %246 : vector<1x16xf32>
      %248 = vector.extract_strided_slice %58 {offsets = [3, 0], sizes = [1, 64], strides = [1, 1]} : vector<8x64xbf16> to vector<1x64xbf16>
      %249 = arith.extf %248 : vector<1x64xbf16> to vector<1x64xf32>
      %250 = arith.truncf %226 : vector<1x16xf32> to vector<1x16xbf16>
      %cst_80 = arith.constant dense<0.000000e+00> : vector<1x64xf32>
      %251 = tpu.matmul %250, %30, %cst_80 {dimension_numbers = #tpu.dot_dimension_numbers<[1], [0], [0], [1], [0, 0, 1, 1], [], []>} : vector<1x16xbf16>, vector<16x64xbf16>, vector<1x64xf32> -> vector<1x64xf32>
      %252 = arith.addf %249, %251 : vector<1x64xf32>
      %253 = vector.extract_strided_slice %252 {offsets = [0, 0], sizes = [1, 48], strides = [1, 1]} : vector<1x64xf32> to vector<1x48xf32>
      %254 = arith.negf %253 : vector<1x48xf32>
      %255 = math.exp %254 : vector<1x48xf32>
      %cst_81 = arith.constant 1.000000e+00 : f32
      %256 = vector.broadcast %cst_81 : f32 to vector<1x48xf32>
      %257 = arith.addf %256, %255 : vector<1x48xf32>
      %258 = arith.divf %256, %257 : vector<1x48xf32>
      %259 = vector.extract_strided_slice %252 {offsets = [0, 48], sizes = [1, 16], strides = [1, 1]} : vector<1x64xf32> to vector<1x16xf32>
      %260 = math.tanh %259 : vector<1x16xf32>
      %261 = vector.extract_strided_slice %258 {offsets = [0, 16], sizes = [1, 16], strides = [1, 1]} : vector<1x48xf32> to vector<1x16xf32>
      %262 = arith.mulf %261, %223 : vector<1x16xf32>
      %263 = vector.extract_strided_slice %258 {offsets = [0, 0], sizes = [1, 16], strides = [1, 1]} : vector<1x48xf32> to vector<1x16xf32>
      %264 = arith.mulf %263, %260 : vector<1x16xf32>
      %265 = arith.addf %262, %264 : vector<1x16xf32>
      %266 = vector.extract_strided_slice %258 {offsets = [0, 32], sizes = [1, 16], strides = [1, 1]} : vector<1x48xf32> to vector<1x16xf32>
      %267 = math.tanh %265 : vector<1x16xf32>
      %268 = arith.mulf %266, %267 : vector<1x16xf32>
      %269 = vector.extract_strided_slice %56 {offsets = [5, 0], sizes = [1, 64], strides = [1, 1]} : vector<8x64xbf16> to vector<1x64xbf16>
      %270 = arith.extf %269 : vector<1x64xbf16> to vector<1x64xf32>
      %271 = arith.truncf %247 : vector<1x16xf32> to vector<1x16xbf16>
      %cst_82 = arith.constant dense<0.000000e+00> : vector<1x64xf32>
      %272 = tpu.matmul %271, %29, %cst_82 {dimension_numbers = #tpu.dot_dimension_numbers<[1], [0], [0], [1], [0, 0, 1, 1], [], []>} : vector<1x16xbf16>, vector<16x64xbf16>, vector<1x64xf32> -> vector<1x64xf32>
      %273 = arith.addf %270, %272 : vector<1x64xf32>
      %274 = vector.extract_strided_slice %273 {offsets = [0, 0], sizes = [1, 48], strides = [1, 1]} : vector<1x64xf32> to vector<1x48xf32>
      %275 = arith.negf %274 : vector<1x48xf32>
      %276 = math.exp %275 : vector<1x48xf32>
      %cst_83 = arith.constant 1.000000e+00 : f32
      %277 = vector.broadcast %cst_83 : f32 to vector<1x48xf32>
      %278 = arith.addf %277, %276 : vector<1x48xf32>
      %279 = arith.divf %277, %278 : vector<1x48xf32>
      %280 = vector.extract_strided_slice %273 {offsets = [0, 48], sizes = [1, 16], strides = [1, 1]} : vector<1x64xf32> to vector<1x16xf32>
      %281 = math.tanh %280 : vector<1x16xf32>
      %282 = vector.extract_strided_slice %279 {offsets = [0, 16], sizes = [1, 16], strides = [1, 1]} : vector<1x48xf32> to vector<1x16xf32>
      %283 = arith.mulf %282, %244 : vector<1x16xf32>
      %284 = vector.extract_strided_slice %279 {offsets = [0, 0], sizes = [1, 16], strides = [1, 1]} : vector<1x48xf32> to vector<1x16xf32>
      %285 = arith.mulf %284, %281 : vector<1x16xf32>
      %286 = arith.addf %283, %285 : vector<1x16xf32>
      %287 = vector.extract_strided_slice %279 {offsets = [0, 32], sizes = [1, 16], strides = [1, 1]} : vector<1x48xf32> to vector<1x16xf32>
      %288 = math.tanh %286 : vector<1x16xf32>
      %289 = arith.mulf %287, %288 : vector<1x16xf32>
      %290 = vector.extract_strided_slice %58 {offsets = [2, 0], sizes = [1, 64], strides = [1, 1]} : vector<8x64xbf16> to vector<1x64xbf16>
      %291 = arith.extf %290 : vector<1x64xbf16> to vector<1x64xf32>
      %292 = arith.truncf %268 : vector<1x16xf32> to vector<1x16xbf16>
      %cst_84 = arith.constant dense<0.000000e+00> : vector<1x64xf32>
      %293 = tpu.matmul %292, %30, %cst_84 {dimension_numbers = #tpu.dot_dimension_numbers<[1], [0], [0], [1], [0, 0, 1, 1], [], []>} : vector<1x16xbf16>, vector<16x64xbf16>, vector<1x64xf32> -> vector<1x64xf32>
      %294 = arith.addf %291, %293 : vector<1x64xf32>
      %295 = vector.extract_strided_slice %294 {offsets = [0, 0], sizes = [1, 48], strides = [1, 1]} : vector<1x64xf32> to vector<1x48xf32>
      %296 = arith.negf %295 : vector<1x48xf32>
      %297 = math.exp %296 : vector<1x48xf32>
      %cst_85 = arith.constant 1.000000e+00 : f32
      %298 = vector.broadcast %cst_85 : f32 to vector<1x48xf32>
      %299 = arith.addf %298, %297 : vector<1x48xf32>
      %300 = arith.divf %298, %299 : vector<1x48xf32>
      %301 = vector.extract_strided_slice %294 {offsets = [0, 48], sizes = [1, 16], strides = [1, 1]} : vector<1x64xf32> to vector<1x16xf32>
      %302 = math.tanh %301 : vector<1x16xf32>
      %303 = vector.extract_strided_slice %300 {offsets = [0, 16], sizes = [1, 16], strides = [1, 1]} : vector<1x48xf32> to vector<1x16xf32>
      %304 = arith.mulf %303, %265 : vector<1x16xf32>
      %305 = vector.extract_strided_slice %300 {offsets = [0, 0], sizes = [1, 16], strides = [1, 1]} : vector<1x48xf32> to vector<1x16xf32>
      %306 = arith.mulf %305, %302 : vector<1x16xf32>
      %307 = arith.addf %304, %306 : vector<1x16xf32>
      %308 = vector.extract_strided_slice %300 {offsets = [0, 32], sizes = [1, 16], strides = [1, 1]} : vector<1x48xf32> to vector<1x16xf32>
      %309 = math.tanh %307 : vector<1x16xf32>
      %310 = arith.mulf %308, %309 : vector<1x16xf32>
      %311 = vector.extract_strided_slice %56 {offsets = [6, 0], sizes = [1, 64], strides = [1, 1]} : vector<8x64xbf16> to vector<1x64xbf16>
      %312 = arith.extf %311 : vector<1x64xbf16> to vector<1x64xf32>
      %313 = arith.truncf %289 : vector<1x16xf32> to vector<1x16xbf16>
      %cst_86 = arith.constant dense<0.000000e+00> : vector<1x64xf32>
      %314 = tpu.matmul %313, %29, %cst_86 {dimension_numbers = #tpu.dot_dimension_numbers<[1], [0], [0], [1], [0, 0, 1, 1], [], []>} : vector<1x16xbf16>, vector<16x64xbf16>, vector<1x64xf32> -> vector<1x64xf32>
      %315 = arith.addf %312, %314 : vector<1x64xf32>
      %316 = vector.extract_strided_slice %315 {offsets = [0, 0], sizes = [1, 48], strides = [1, 1]} : vector<1x64xf32> to vector<1x48xf32>
      %317 = arith.negf %316 : vector<1x48xf32>
      %318 = math.exp %317 : vector<1x48xf32>
      %cst_87 = arith.constant 1.000000e+00 : f32
      %319 = vector.broadcast %cst_87 : f32 to vector<1x48xf32>
      %320 = arith.addf %319, %318 : vector<1x48xf32>
      %321 = arith.divf %319, %320 : vector<1x48xf32>
      %322 = vector.extract_strided_slice %315 {offsets = [0, 48], sizes = [1, 16], strides = [1, 1]} : vector<1x64xf32> to vector<1x16xf32>
      %323 = math.tanh %322 : vector<1x16xf32>
      %324 = vector.extract_strided_slice %321 {offsets = [0, 16], sizes = [1, 16], strides = [1, 1]} : vector<1x48xf32> to vector<1x16xf32>
      %325 = arith.mulf %324, %286 : vector<1x16xf32>
      %326 = vector.extract_strided_slice %321 {offsets = [0, 0], sizes = [1, 16], strides = [1, 1]} : vector<1x48xf32> to vector<1x16xf32>
      %327 = arith.mulf %326, %323 : vector<1x16xf32>
      %328 = arith.addf %325, %327 : vector<1x16xf32>
      %329 = vector.extract_strided_slice %321 {offsets = [0, 32], sizes = [1, 16], strides = [1, 1]} : vector<1x48xf32> to vector<1x16xf32>
      %330 = math.tanh %328 : vector<1x16xf32>
      %331 = arith.mulf %329, %330 : vector<1x16xf32>
      %332 = vector.extract_strided_slice %58 {offsets = [1, 0], sizes = [1, 64], strides = [1, 1]} : vector<8x64xbf16> to vector<1x64xbf16>
      %333 = arith.extf %332 : vector<1x64xbf16> to vector<1x64xf32>
      %334 = arith.truncf %310 : vector<1x16xf32> to vector<1x16xbf16>
      %cst_88 = arith.constant dense<0.000000e+00> : vector<1x64xf32>
      %335 = tpu.matmul %334, %30, %cst_88 {dimension_numbers = #tpu.dot_dimension_numbers<[1], [0], [0], [1], [0, 0, 1, 1], [], []>} : vector<1x16xbf16>, vector<16x64xbf16>, vector<1x64xf32> -> vector<1x64xf32>
      %336 = arith.addf %333, %335 : vector<1x64xf32>
      %337 = vector.extract_strided_slice %336 {offsets = [0, 0], sizes = [1, 48], strides = [1, 1]} : vector<1x64xf32> to vector<1x48xf32>
      %338 = arith.negf %337 : vector<1x48xf32>
      %339 = math.exp %338 : vector<1x48xf32>
      %cst_89 = arith.constant 1.000000e+00 : f32
      %340 = vector.broadcast %cst_89 : f32 to vector<1x48xf32>
      %341 = arith.addf %340, %339 : vector<1x48xf32>
      %342 = arith.divf %340, %341 : vector<1x48xf32>
      %343 = vector.extract_strided_slice %336 {offsets = [0, 48], sizes = [1, 16], strides = [1, 1]} : vector<1x64xf32> to vector<1x16xf32>
      %344 = math.tanh %343 : vector<1x16xf32>
      %345 = vector.extract_strided_slice %342 {offsets = [0, 16], sizes = [1, 16], strides = [1, 1]} : vector<1x48xf32> to vector<1x16xf32>
      %346 = arith.mulf %345, %307 : vector<1x16xf32>
      %347 = vector.extract_strided_slice %342 {offsets = [0, 0], sizes = [1, 16], strides = [1, 1]} : vector<1x48xf32> to vector<1x16xf32>
      %348 = arith.mulf %347, %344 : vector<1x16xf32>
      %349 = arith.addf %346, %348 : vector<1x16xf32>
      %350 = vector.extract_strided_slice %342 {offsets = [0, 32], sizes = [1, 16], strides = [1, 1]} : vector<1x48xf32> to vector<1x16xf32>
      %351 = math.tanh %349 : vector<1x16xf32>
      %352 = arith.mulf %350, %351 : vector<1x16xf32>
      %353 = vector.extract_strided_slice %56 {offsets = [7, 0], sizes = [1, 64], strides = [1, 1]} : vector<8x64xbf16> to vector<1x64xbf16>
      %354 = arith.extf %353 : vector<1x64xbf16> to vector<1x64xf32>
      %355 = arith.truncf %331 : vector<1x16xf32> to vector<1x16xbf16>
      %cst_90 = arith.constant dense<0.000000e+00> : vector<1x64xf32>
      %356 = tpu.matmul %355, %29, %cst_90 {dimension_numbers = #tpu.dot_dimension_numbers<[1], [0], [0], [1], [0, 0, 1, 1], [], []>} : vector<1x16xbf16>, vector<16x64xbf16>, vector<1x64xf32> -> vector<1x64xf32>
      %357 = arith.addf %354, %356 : vector<1x64xf32>
      %358 = vector.extract_strided_slice %357 {offsets = [0, 0], sizes = [1, 48], strides = [1, 1]} : vector<1x64xf32> to vector<1x48xf32>
      %359 = arith.negf %358 : vector<1x48xf32>
      %360 = math.exp %359 : vector<1x48xf32>
      %cst_91 = arith.constant 1.000000e+00 : f32
      %361 = vector.broadcast %cst_91 : f32 to vector<1x48xf32>
      %362 = arith.addf %361, %360 : vector<1x48xf32>
      %363 = arith.divf %361, %362 : vector<1x48xf32>
      %364 = vector.extract_strided_slice %357 {offsets = [0, 48], sizes = [1, 16], strides = [1, 1]} : vector<1x64xf32> to vector<1x16xf32>
      %365 = math.tanh %364 : vector<1x16xf32>
      %366 = vector.extract_strided_slice %363 {offsets = [0, 16], sizes = [1, 16], strides = [1, 1]} : vector<1x48xf32> to vector<1x16xf32>
      %367 = arith.mulf %366, %328 : vector<1x16xf32>
      %368 = vector.extract_strided_slice %363 {offsets = [0, 0], sizes = [1, 16], strides = [1, 1]} : vector<1x48xf32> to vector<1x16xf32>
      %369 = arith.mulf %368, %365 : vector<1x16xf32>
      %370 = arith.addf %367, %369 : vector<1x16xf32>
      %371 = vector.extract_strided_slice %363 {offsets = [0, 32], sizes = [1, 16], strides = [1, 1]} : vector<1x48xf32> to vector<1x16xf32>
      %372 = math.tanh %370 : vector<1x16xf32>
      %373 = arith.mulf %371, %372 : vector<1x16xf32>
      %374 = vector.extract_strided_slice %58 {offsets = [0, 0], sizes = [1, 64], strides = [1, 1]} : vector<8x64xbf16> to vector<1x64xbf16>
      %375 = arith.extf %374 : vector<1x64xbf16> to vector<1x64xf32>
      %376 = arith.truncf %352 : vector<1x16xf32> to vector<1x16xbf16>
      %cst_92 = arith.constant dense<0.000000e+00> : vector<1x64xf32>
      %377 = tpu.matmul %376, %30, %cst_92 {dimension_numbers = #tpu.dot_dimension_numbers<[1], [0], [0], [1], [0, 0, 1, 1], [], []>} : vector<1x16xbf16>, vector<16x64xbf16>, vector<1x64xf32> -> vector<1x64xf32>
      %378 = arith.addf %375, %377 : vector<1x64xf32>
      %379 = vector.extract_strided_slice %378 {offsets = [0, 0], sizes = [1, 48], strides = [1, 1]} : vector<1x64xf32> to vector<1x48xf32>
      %380 = arith.negf %379 : vector<1x48xf32>
      %381 = math.exp %380 : vector<1x48xf32>
      %cst_93 = arith.constant 1.000000e+00 : f32
      %382 = vector.broadcast %cst_93 : f32 to vector<1x48xf32>
      %383 = arith.addf %382, %381 : vector<1x48xf32>
      %384 = arith.divf %382, %383 : vector<1x48xf32>
      %385 = vector.extract_strided_slice %378 {offsets = [0, 48], sizes = [1, 16], strides = [1, 1]} : vector<1x64xf32> to vector<1x16xf32>
      %386 = math.tanh %385 : vector<1x16xf32>
      %387 = vector.extract_strided_slice %384 {offsets = [0, 16], sizes = [1, 16], strides = [1, 1]} : vector<1x48xf32> to vector<1x16xf32>
      %388 = arith.mulf %387, %349 : vector<1x16xf32>
      %389 = vector.extract_strided_slice %384 {offsets = [0, 0], sizes = [1, 16], strides = [1, 1]} : vector<1x48xf32> to vector<1x16xf32>
      %390 = arith.mulf %389, %386 : vector<1x16xf32>
      %391 = arith.addf %388, %390 : vector<1x16xf32>
      %392 = vector.extract_strided_slice %384 {offsets = [0, 32], sizes = [1, 16], strides = [1, 1]} : vector<1x48xf32> to vector<1x16xf32>
      %393 = math.tanh %391 : vector<1x16xf32>
      %394 = arith.mulf %392, %393 : vector<1x16xf32>
      %395 = tpu.concatenate %79, %121, %163, %205, %247, %289, %331, %373 in 0 : vector<1x16xf32>, vector<1x16xf32>, vector<1x16xf32>, vector<1x16xf32>, vector<1x16xf32>, vector<1x16xf32>, vector<1x16xf32>, vector<1x16xf32> -> vector<8x16xf32>
      %396 = tpu.concatenate %394, %352, %310, %268, %226, %184, %142, %100 in 0 : vector<1x16xf32>, vector<1x16xf32>, vector<1x16xf32>, vector<1x16xf32>, vector<1x16xf32>, vector<1x16xf32>, vector<1x16xf32>, vector<1x16xf32> -> vector<8x16xf32>
      %397 = arith.index_cast %51 : i32 to index
      %c0_94 = arith.constant 0 : index
      %398 = vector.load %arg16[%397, %c0_94] : memref<16x32xf32, #tpu.memory_space<vmem>>, vector<8x16xf32>
      tpu.vector_store %arg16[%397, %c0_94], %395 {strides = array<i32>} : memref<16x32xf32, #tpu.memory_space<vmem>>, vector<8x16xf32>,
      %399 = arith.index_cast %54 : i32 to index
      %c16 = arith.constant 16 : index
      %400 = vector.load %arg16[%399, %c16] : memref<16x32xf32, #tpu.memory_space<vmem>>, vector<8x16xf32>
      tpu.vector_store %arg16[%399, %c16], %396 {strides = array<i32>} : memref<16x32xf32, #tpu.memory_space<vmem>>, vector<8x16xf32>,
      scf.yield %373, %370, %394, %391 : vector<1x16xf32>, vector<1x16xf32>, vector<1x16xf32>, vector<1x16xf32>
    }
    %c2_i32_39 = arith.constant 2 : i32
    %c0_40 = arith.constant 0 : index
    %c0_41 = arith.constant 0 : index
    %35 = vector.load %arg16[%c0_40, %c0_41] : memref<16x32xf32, #tpu.memory_space<vmem>>, vector<16x32xf32>
    %36 = arith.truncf %35 : vector<16x32xf32> to vector<16x32xbf16>
    %c0_42 = arith.constant 0 : index
    %c0_43 = arith.constant 0 : index
    %37 = vector.load %arg10[%c0_42, %c0_43] : memref<32x128xbf16, #tpu.memory_space<vmem>>, vector<32x128xbf16>
    %cst_44 = arith.constant dense<0.000000e+00> : vector<16x128xf32>
    %38 = tpu.matmul %36, %37, %cst_44 {dimension_numbers = #tpu.dot_dimension_numbers<[1], [0], [0], [1], [0, 0, 1, 1], [], []>} : vector<16x32xbf16>, vector<32x128xbf16>, vector<16x128xf32> -> vector<16x128xf32>
    %c0_45 = arith.constant 0 : index
    %c0_46 = arith.constant 0 : index
    %39 = vector.load %arg13[%c0_45, %c0_46] : memref<1x128xf32, #tpu.memory_space<vmem>>, vector<1x128xf32>
    %40 = vector.broadcast %39 : vector<1x128xf32> to vector<16x128xf32>
    %41 = arith.addf %38, %40 : vector<16x128xf32>
    %42 = arith.truncf %41 : vector<16x128xf32> to vector<16x128xbf16>
    %c0_47 = arith.constant 0 : index
    %c0_48 = arith.constant 0 : index
    %43 = vector.load %arg18[%c0_47, %c0_48] : memref<16x128xbf16, #tpu.memory_space<vmem>>, vector<16x128xbf16>
    tpu.vector_store %arg18[%c0_47, %c0_48], %42 {strides = array<i32>} : memref<16x128xbf16, #tpu.memory_space<vmem>>, vector<16x128xbf16>,
    %c0_49 = arith.constant 0 : index
    %c0_50 = arith.constant 0 : index
    %44 = vector.load %arg11[%c0_49, %c0_50] : memref<16x64xbf16, #tpu.memory_space<vmem>>, vector<16x64xbf16>
    %c0_51 = arith.constant 0 : index
    %c0_52 = arith.constant 0 : index
    %45 = vector.load %arg12[%c0_51, %c0_52] : memref<16x64xbf16, #tpu.memory_space<vmem>>, vector<16x64xbf16>
    %cst_53 = arith.constant 0.000000e+00 : f32
    %46 = vector.broadcast %cst_53 : f32 to vector<1x16xf32>
    %cst_54 = arith.constant 0.000000e+00 : f32
    %47 = vector.broadcast %cst_54 : f32 to vector<1x16xf32>
    %c0_i32_55 = arith.constant 0 : i32
    %c2_i32_56 = arith.constant 2 : i32
    %48 = arith.addi %c0_i32_55, %c2_i32_56 : i32
    %c1_i32_57 = arith.constant 1 : i32
    %49:4 = scf.for %arg19 = %c0_i32_55 to %48 step %c1_i32_57 iter_args(%arg20 = %46, %arg21 = %47, %arg22 = %46, %arg23 = %47) -> (vector<1x16xf32>, vector<1x16xf32>, vector<1x16xf32>, vector<1x16xf32>)  : i32 {
      %c8_i32 = arith.constant 8 : i32
      %50 = arith.muli %arg19, %c8_i32 : i32
      %51 = tpu.assume_multiple %50, 8 : i32
      %c8_i32_59 = arith.constant 8 : i32
      %52 = arith.muli %arg19, %c8_i32_59 : i32
      %c8_i32_60 = arith.constant 8 : i32
      %53 = arith.subi %c8_i32_60, %52 : i32
      %54 = tpu.assume_multiple %53, 8 : i32
      %55 = arith.index_cast %51 : i32 to index
      %c0_61 = arith.constant 0 : index
      %56 = vector.load %arg18[%55, %c0_61] : memref<16x128xbf16, #tpu.memory_space<vmem>>, vector<8x64xbf16>
      %57 = arith.index_cast %54 : i32 to index
      %c64 = arith.constant 64 : index
      %58 = vector.load %arg18[%57, %c64] : memref<16x128xbf16, #tpu.memory_space<vmem>>, vector<8x64xbf16>
      %59 = vector.extract_strided_slice %56 {offsets = [0, 0], sizes = [1, 64], strides = [1, 1]} : vector<8x64xbf16> to vector<1x64xbf16>
      %60 = arith.extf %59 : vector<1x64xbf16> to vector<1x64xf32>
      %61 = arith.truncf %arg20 : vector<1x16xf32> to vector<1x16xbf16>
      %cst_62 = arith.constant dense<0.000000e+00> : vector<1x64xf32>
      %62 = tpu.matmul %61, %44, %cst_62 {dimension_numbers = #tpu.dot_dimension_numbers<[1], [0], [0], [1], [0, 0, 1, 1], [], []>} : vector<1x16xbf16>, vector<16x64xbf16>, vector<1x64xf32> -> vector<1x64xf32>
      %63 = arith.addf %60, %62 : vector<1x64xf32>
      %64 = vector.extract_strided_slice %63 {offsets = [0, 0], sizes = [1, 48], strides = [1, 1]} : vector<1x64xf32> to vector<1x48xf32>
      %65 = arith.negf %64 : vector<1x48xf32>
      %66 = math.exp %65 : vector<1x48xf32>
      %cst_63 = arith.constant 1.000000e+00 : f32
      %67 = vector.broadcast %cst_63 : f32 to vector<1x48xf32>
      %68 = arith.addf %67, %66 : vector<1x48xf32>
      %69 = arith.divf %67, %68 : vector<1x48xf32>
      %70 = vector.extract_strided_slice %63 {offsets = [0, 48], sizes = [1, 16], strides = [1, 1]} : vector<1x64xf32> to vector<1x16xf32>
      %71 = math.tanh %70 : vector<1x16xf32>
      %72 = vector.extract_strided_slice %69 {offsets = [0, 16], sizes = [1, 16], strides = [1, 1]} : vector<1x48xf32> to vector<1x16xf32>
      %73 = arith.mulf %72, %arg21 : vector<1x16xf32>
      %74 = vector.extract_strided_slice %69 {offsets = [0, 0], sizes = [1, 16], strides = [1, 1]} : vector<1x48xf32> to vector<1x16xf32>
      %75 = arith.mulf %74, %71 : vector<1x16xf32>
      %76 = arith.addf %73, %75 : vector<1x16xf32>
      %77 = vector.extract_strided_slice %69 {offsets = [0, 32], sizes = [1, 16], strides = [1, 1]} : vector<1x48xf32> to vector<1x16xf32>
      %78 = math.tanh %76 : vector<1x16xf32>
      %79 = arith.mulf %77, %78 : vector<1x16xf32>
      %80 = vector.extract_strided_slice %58 {offsets = [7, 0], sizes = [1, 64], strides = [1, 1]} : vector<8x64xbf16> to vector<1x64xbf16>
      %81 = arith.extf %80 : vector<1x64xbf16> to vector<1x64xf32>
      %82 = arith.truncf %arg22 : vector<1x16xf32> to vector<1x16xbf16>
      %cst_64 = arith.constant dense<0.000000e+00> : vector<1x64xf32>
      %83 = tpu.matmul %82, %45, %cst_64 {dimension_numbers = #tpu.dot_dimension_numbers<[1], [0], [0], [1], [0, 0, 1, 1], [], []>} : vector<1x16xbf16>, vector<16x64xbf16>, vector<1x64xf32> -> vector<1x64xf32>
      %84 = arith.addf %81, %83 : vector<1x64xf32>
      %85 = vector.extract_strided_slice %84 {offsets = [0, 0], sizes = [1, 48], strides = [1, 1]} : vector<1x64xf32> to vector<1x48xf32>
      %86 = arith.negf %85 : vector<1x48xf32>
      %87 = math.exp %86 : vector<1x48xf32>
      %cst_65 = arith.constant 1.000000e+00 : f32
      %88 = vector.broadcast %cst_65 : f32 to vector<1x48xf32>
      %89 = arith.addf %88, %87 : vector<1x48xf32>
      %90 = arith.divf %88, %89 : vector<1x48xf32>
      %91 = vector.extract_strided_slice %84 {offsets = [0, 48], sizes = [1, 16], strides = [1, 1]} : vector<1x64xf32> to vector<1x16xf32>
      %92 = math.tanh %91 : vector<1x16xf32>
      %93 = vector.extract_strided_slice %90 {offsets = [0, 16], sizes = [1, 16], strides = [1, 1]} : vector<1x48xf32> to vector<1x16xf32>
      %94 = arith.mulf %93, %arg23 : vector<1x16xf32>
      %95 = vector.extract_strided_slice %90 {offsets = [0, 0], sizes = [1, 16], strides = [1, 1]} : vector<1x48xf32> to vector<1x16xf32>
      %96 = arith.mulf %95, %92 : vector<1x16xf32>
      %97 = arith.addf %94, %96 : vector<1x16xf32>
      %98 = vector.extract_strided_slice %90 {offsets = [0, 32], sizes = [1, 16], strides = [1, 1]} : vector<1x48xf32> to vector<1x16xf32>
      %99 = math.tanh %97 : vector<1x16xf32>
      %100 = arith.mulf %98, %99 : vector<1x16xf32>
      %101 = vector.extract_strided_slice %56 {offsets = [1, 0], sizes = [1, 64], strides = [1, 1]} : vector<8x64xbf16> to vector<1x64xbf16>
      %102 = arith.extf %101 : vector<1x64xbf16> to vector<1x64xf32>
      %103 = arith.truncf %79 : vector<1x16xf32> to vector<1x16xbf16>
      %cst_66 = arith.constant dense<0.000000e+00> : vector<1x64xf32>
      %104 = tpu.matmul %103, %44, %cst_66 {dimension_numbers = #tpu.dot_dimension_numbers<[1], [0], [0], [1], [0, 0, 1, 1], [], []>} : vector<1x16xbf16>, vector<16x64xbf16>, vector<1x64xf32> -> vector<1x64xf32>
      %105 = arith.addf %102, %104 : vector<1x64xf32>
      %106 = vector.extract_strided_slice %105 {offsets = [0, 0], sizes = [1, 48], strides = [1, 1]} : vector<1x64xf32> to vector<1x48xf32>
      %107 = arith.negf %106 : vector<1x48xf32>
      %108 = math.exp %107 : vector<1x48xf32>
      %cst_67 = arith.constant 1.000000e+00 : f32
      %109 = vector.broadcast %cst_67 : f32 to vector<1x48xf32>
      %110 = arith.addf %109, %108 : vector<1x48xf32>
      %111 = arith.divf %109, %110 : vector<1x48xf32>
      %112 = vector.extract_strided_slice %105 {offsets = [0, 48], sizes = [1, 16], strides = [1, 1]} : vector<1x64xf32> to vector<1x16xf32>
      %113 = math.tanh %112 : vector<1x16xf32>
      %114 = vector.extract_strided_slice %111 {offsets = [0, 16], sizes = [1, 16], strides = [1, 1]} : vector<1x48xf32> to vector<1x16xf32>
      %115 = arith.mulf %114, %76 : vector<1x16xf32>
      %116 = vector.extract_strided_slice %111 {offsets = [0, 0], sizes = [1, 16], strides = [1, 1]} : vector<1x48xf32> to vector<1x16xf32>
      %117 = arith.mulf %116, %113 : vector<1x16xf32>
      %118 = arith.addf %115, %117 : vector<1x16xf32>
      %119 = vector.extract_strided_slice %111 {offsets = [0, 32], sizes = [1, 16], strides = [1, 1]} : vector<1x48xf32> to vector<1x16xf32>
      %120 = math.tanh %118 : vector<1x16xf32>
      %121 = arith.mulf %119, %120 : vector<1x16xf32>
      %122 = vector.extract_strided_slice %58 {offsets = [6, 0], sizes = [1, 64], strides = [1, 1]} : vector<8x64xbf16> to vector<1x64xbf16>
      %123 = arith.extf %122 : vector<1x64xbf16> to vector<1x64xf32>
      %124 = arith.truncf %100 : vector<1x16xf32> to vector<1x16xbf16>
      %cst_68 = arith.constant dense<0.000000e+00> : vector<1x64xf32>
      %125 = tpu.matmul %124, %45, %cst_68 {dimension_numbers = #tpu.dot_dimension_numbers<[1], [0], [0], [1], [0, 0, 1, 1], [], []>} : vector<1x16xbf16>, vector<16x64xbf16>, vector<1x64xf32> -> vector<1x64xf32>
      %126 = arith.addf %123, %125 : vector<1x64xf32>
      %127 = vector.extract_strided_slice %126 {offsets = [0, 0], sizes = [1, 48], strides = [1, 1]} : vector<1x64xf32> to vector<1x48xf32>
      %128 = arith.negf %127 : vector<1x48xf32>
      %129 = math.exp %128 : vector<1x48xf32>
      %cst_69 = arith.constant 1.000000e+00 : f32
      %130 = vector.broadcast %cst_69 : f32 to vector<1x48xf32>
      %131 = arith.addf %130, %129 : vector<1x48xf32>
      %132 = arith.divf %130, %131 : vector<1x48xf32>
      %133 = vector.extract_strided_slice %126 {offsets = [0, 48], sizes = [1, 16], strides = [1, 1]} : vector<1x64xf32> to vector<1x16xf32>
      %134 = math.tanh %133 : vector<1x16xf32>
      %135 = vector.extract_strided_slice %132 {offsets = [0, 16], sizes = [1, 16], strides = [1, 1]} : vector<1x48xf32> to vector<1x16xf32>
      %136 = arith.mulf %135, %97 : vector<1x16xf32>
      %137 = vector.extract_strided_slice %132 {offsets = [0, 0], sizes = [1, 16], strides = [1, 1]} : vector<1x48xf32> to vector<1x16xf32>
      %138 = arith.mulf %137, %134 : vector<1x16xf32>
      %139 = arith.addf %136, %138 : vector<1x16xf32>
      %140 = vector.extract_strided_slice %132 {offsets = [0, 32], sizes = [1, 16], strides = [1, 1]} : vector<1x48xf32> to vector<1x16xf32>
      %141 = math.tanh %139 : vector<1x16xf32>
      %142 = arith.mulf %140, %141 : vector<1x16xf32>
      %143 = vector.extract_strided_slice %56 {offsets = [2, 0], sizes = [1, 64], strides = [1, 1]} : vector<8x64xbf16> to vector<1x64xbf16>
      %144 = arith.extf %143 : vector<1x64xbf16> to vector<1x64xf32>
      %145 = arith.truncf %121 : vector<1x16xf32> to vector<1x16xbf16>
      %cst_70 = arith.constant dense<0.000000e+00> : vector<1x64xf32>
      %146 = tpu.matmul %145, %44, %cst_70 {dimension_numbers = #tpu.dot_dimension_numbers<[1], [0], [0], [1], [0, 0, 1, 1], [], []>} : vector<1x16xbf16>, vector<16x64xbf16>, vector<1x64xf32> -> vector<1x64xf32>
      %147 = arith.addf %144, %146 : vector<1x64xf32>
      %148 = vector.extract_strided_slice %147 {offsets = [0, 0], sizes = [1, 48], strides = [1, 1]} : vector<1x64xf32> to vector<1x48xf32>
      %149 = arith.negf %148 : vector<1x48xf32>
      %150 = math.exp %149 : vector<1x48xf32>
      %cst_71 = arith.constant 1.000000e+00 : f32
      %151 = vector.broadcast %cst_71 : f32 to vector<1x48xf32>
      %152 = arith.addf %151, %150 : vector<1x48xf32>
      %153 = arith.divf %151, %152 : vector<1x48xf32>
      %154 = vector.extract_strided_slice %147 {offsets = [0, 48], sizes = [1, 16], strides = [1, 1]} : vector<1x64xf32> to vector<1x16xf32>
      %155 = math.tanh %154 : vector<1x16xf32>
      %156 = vector.extract_strided_slice %153 {offsets = [0, 16], sizes = [1, 16], strides = [1, 1]} : vector<1x48xf32> to vector<1x16xf32>
      %157 = arith.mulf %156, %118 : vector<1x16xf32>
      %158 = vector.extract_strided_slice %153 {offsets = [0, 0], sizes = [1, 16], strides = [1, 1]} : vector<1x48xf32> to vector<1x16xf32>
      %159 = arith.mulf %158, %155 : vector<1x16xf32>
      %160 = arith.addf %157, %159 : vector<1x16xf32>
      %161 = vector.extract_strided_slice %153 {offsets = [0, 32], sizes = [1, 16], strides = [1, 1]} : vector<1x48xf32> to vector<1x16xf32>
      %162 = math.tanh %160 : vector<1x16xf32>
      %163 = arith.mulf %161, %162 : vector<1x16xf32>
      %164 = vector.extract_strided_slice %58 {offsets = [5, 0], sizes = [1, 64], strides = [1, 1]} : vector<8x64xbf16> to vector<1x64xbf16>
      %165 = arith.extf %164 : vector<1x64xbf16> to vector<1x64xf32>
      %166 = arith.truncf %142 : vector<1x16xf32> to vector<1x16xbf16>
      %cst_72 = arith.constant dense<0.000000e+00> : vector<1x64xf32>
      %167 = tpu.matmul %166, %45, %cst_72 {dimension_numbers = #tpu.dot_dimension_numbers<[1], [0], [0], [1], [0, 0, 1, 1], [], []>} : vector<1x16xbf16>, vector<16x64xbf16>, vector<1x64xf32> -> vector<1x64xf32>
      %168 = arith.addf %165, %167 : vector<1x64xf32>
      %169 = vector.extract_strided_slice %168 {offsets = [0, 0], sizes = [1, 48], strides = [1, 1]} : vector<1x64xf32> to vector<1x48xf32>
      %170 = arith.negf %169 : vector<1x48xf32>
      %171 = math.exp %170 : vector<1x48xf32>
      %cst_73 = arith.constant 1.000000e+00 : f32
      %172 = vector.broadcast %cst_73 : f32 to vector<1x48xf32>
      %173 = arith.addf %172, %171 : vector<1x48xf32>
      %174 = arith.divf %172, %173 : vector<1x48xf32>
      %175 = vector.extract_strided_slice %168 {offsets = [0, 48], sizes = [1, 16], strides = [1, 1]} : vector<1x64xf32> to vector<1x16xf32>
      %176 = math.tanh %175 : vector<1x16xf32>
      %177 = vector.extract_strided_slice %174 {offsets = [0, 16], sizes = [1, 16], strides = [1, 1]} : vector<1x48xf32> to vector<1x16xf32>
      %178 = arith.mulf %177, %139 : vector<1x16xf32>
      %179 = vector.extract_strided_slice %174 {offsets = [0, 0], sizes = [1, 16], strides = [1, 1]} : vector<1x48xf32> to vector<1x16xf32>
      %180 = arith.mulf %179, %176 : vector<1x16xf32>
      %181 = arith.addf %178, %180 : vector<1x16xf32>
      %182 = vector.extract_strided_slice %174 {offsets = [0, 32], sizes = [1, 16], strides = [1, 1]} : vector<1x48xf32> to vector<1x16xf32>
      %183 = math.tanh %181 : vector<1x16xf32>
      %184 = arith.mulf %182, %183 : vector<1x16xf32>
      %185 = vector.extract_strided_slice %56 {offsets = [3, 0], sizes = [1, 64], strides = [1, 1]} : vector<8x64xbf16> to vector<1x64xbf16>
      %186 = arith.extf %185 : vector<1x64xbf16> to vector<1x64xf32>
      %187 = arith.truncf %163 : vector<1x16xf32> to vector<1x16xbf16>
      %cst_74 = arith.constant dense<0.000000e+00> : vector<1x64xf32>
      %188 = tpu.matmul %187, %44, %cst_74 {dimension_numbers = #tpu.dot_dimension_numbers<[1], [0], [0], [1], [0, 0, 1, 1], [], []>} : vector<1x16xbf16>, vector<16x64xbf16>, vector<1x64xf32> -> vector<1x64xf32>
      %189 = arith.addf %186, %188 : vector<1x64xf32>
      %190 = vector.extract_strided_slice %189 {offsets = [0, 0], sizes = [1, 48], strides = [1, 1]} : vector<1x64xf32> to vector<1x48xf32>
      %191 = arith.negf %190 : vector<1x48xf32>
      %192 = math.exp %191 : vector<1x48xf32>
      %cst_75 = arith.constant 1.000000e+00 : f32
      %193 = vector.broadcast %cst_75 : f32 to vector<1x48xf32>
      %194 = arith.addf %193, %192 : vector<1x48xf32>
      %195 = arith.divf %193, %194 : vector<1x48xf32>
      %196 = vector.extract_strided_slice %189 {offsets = [0, 48], sizes = [1, 16], strides = [1, 1]} : vector<1x64xf32> to vector<1x16xf32>
      %197 = math.tanh %196 : vector<1x16xf32>
      %198 = vector.extract_strided_slice %195 {offsets = [0, 16], sizes = [1, 16], strides = [1, 1]} : vector<1x48xf32> to vector<1x16xf32>
      %199 = arith.mulf %198, %160 : vector<1x16xf32>
      %200 = vector.extract_strided_slice %195 {offsets = [0, 0], sizes = [1, 16], strides = [1, 1]} : vector<1x48xf32> to vector<1x16xf32>
      %201 = arith.mulf %200, %197 : vector<1x16xf32>
      %202 = arith.addf %199, %201 : vector<1x16xf32>
      %203 = vector.extract_strided_slice %195 {offsets = [0, 32], sizes = [1, 16], strides = [1, 1]} : vector<1x48xf32> to vector<1x16xf32>
      %204 = math.tanh %202 : vector<1x16xf32>
      %205 = arith.mulf %203, %204 : vector<1x16xf32>
      %206 = vector.extract_strided_slice %58 {offsets = [4, 0], sizes = [1, 64], strides = [1, 1]} : vector<8x64xbf16> to vector<1x64xbf16>
      %207 = arith.extf %206 : vector<1x64xbf16> to vector<1x64xf32>
      %208 = arith.truncf %184 : vector<1x16xf32> to vector<1x16xbf16>
      %cst_76 = arith.constant dense<0.000000e+00> : vector<1x64xf32>
      %209 = tpu.matmul %208, %45, %cst_76 {dimension_numbers = #tpu.dot_dimension_numbers<[1], [0], [0], [1], [0, 0, 1, 1], [], []>} : vector<1x16xbf16>, vector<16x64xbf16>, vector<1x64xf32> -> vector<1x64xf32>
      %210 = arith.addf %207, %209 : vector<1x64xf32>
      %211 = vector.extract_strided_slice %210 {offsets = [0, 0], sizes = [1, 48], strides = [1, 1]} : vector<1x64xf32> to vector<1x48xf32>
      %212 = arith.negf %211 : vector<1x48xf32>
      %213 = math.exp %212 : vector<1x48xf32>
      %cst_77 = arith.constant 1.000000e+00 : f32
      %214 = vector.broadcast %cst_77 : f32 to vector<1x48xf32>
      %215 = arith.addf %214, %213 : vector<1x48xf32>
      %216 = arith.divf %214, %215 : vector<1x48xf32>
      %217 = vector.extract_strided_slice %210 {offsets = [0, 48], sizes = [1, 16], strides = [1, 1]} : vector<1x64xf32> to vector<1x16xf32>
      %218 = math.tanh %217 : vector<1x16xf32>
      %219 = vector.extract_strided_slice %216 {offsets = [0, 16], sizes = [1, 16], strides = [1, 1]} : vector<1x48xf32> to vector<1x16xf32>
      %220 = arith.mulf %219, %181 : vector<1x16xf32>
      %221 = vector.extract_strided_slice %216 {offsets = [0, 0], sizes = [1, 16], strides = [1, 1]} : vector<1x48xf32> to vector<1x16xf32>
      %222 = arith.mulf %221, %218 : vector<1x16xf32>
      %223 = arith.addf %220, %222 : vector<1x16xf32>
      %224 = vector.extract_strided_slice %216 {offsets = [0, 32], sizes = [1, 16], strides = [1, 1]} : vector<1x48xf32> to vector<1x16xf32>
      %225 = math.tanh %223 : vector<1x16xf32>
      %226 = arith.mulf %224, %225 : vector<1x16xf32>
      %227 = vector.extract_strided_slice %56 {offsets = [4, 0], sizes = [1, 64], strides = [1, 1]} : vector<8x64xbf16> to vector<1x64xbf16>
      %228 = arith.extf %227 : vector<1x64xbf16> to vector<1x64xf32>
      %229 = arith.truncf %205 : vector<1x16xf32> to vector<1x16xbf16>
      %cst_78 = arith.constant dense<0.000000e+00> : vector<1x64xf32>
      %230 = tpu.matmul %229, %44, %cst_78 {dimension_numbers = #tpu.dot_dimension_numbers<[1], [0], [0], [1], [0, 0, 1, 1], [], []>} : vector<1x16xbf16>, vector<16x64xbf16>, vector<1x64xf32> -> vector<1x64xf32>
      %231 = arith.addf %228, %230 : vector<1x64xf32>
      %232 = vector.extract_strided_slice %231 {offsets = [0, 0], sizes = [1, 48], strides = [1, 1]} : vector<1x64xf32> to vector<1x48xf32>
      %233 = arith.negf %232 : vector<1x48xf32>
      %234 = math.exp %233 : vector<1x48xf32>
      %cst_79 = arith.constant 1.000000e+00 : f32
      %235 = vector.broadcast %cst_79 : f32 to vector<1x48xf32>
      %236 = arith.addf %235, %234 : vector<1x48xf32>
      %237 = arith.divf %235, %236 : vector<1x48xf32>
      %238 = vector.extract_strided_slice %231 {offsets = [0, 48], sizes = [1, 16], strides = [1, 1]} : vector<1x64xf32> to vector<1x16xf32>
      %239 = math.tanh %238 : vector<1x16xf32>
      %240 = vector.extract_strided_slice %237 {offsets = [0, 16], sizes = [1, 16], strides = [1, 1]} : vector<1x48xf32> to vector<1x16xf32>
      %241 = arith.mulf %240, %202 : vector<1x16xf32>
      %242 = vector.extract_strided_slice %237 {offsets = [0, 0], sizes = [1, 16], strides = [1, 1]} : vector<1x48xf32> to vector<1x16xf32>
      %243 = arith.mulf %242, %239 : vector<1x16xf32>
      %244 = arith.addf %241, %243 : vector<1x16xf32>
      %245 = vector.extract_strided_slice %237 {offsets = [0, 32], sizes = [1, 16], strides = [1, 1]} : vector<1x48xf32> to vector<1x16xf32>
      %246 = math.tanh %244 : vector<1x16xf32>
      %247 = arith.mulf %245, %246 : vector<1x16xf32>
      %248 = vector.extract_strided_slice %58 {offsets = [3, 0], sizes = [1, 64], strides = [1, 1]} : vector<8x64xbf16> to vector<1x64xbf16>
      %249 = arith.extf %248 : vector<1x64xbf16> to vector<1x64xf32>
      %250 = arith.truncf %226 : vector<1x16xf32> to vector<1x16xbf16>
      %cst_80 = arith.constant dense<0.000000e+00> : vector<1x64xf32>
      %251 = tpu.matmul %250, %45, %cst_80 {dimension_numbers = #tpu.dot_dimension_numbers<[1], [0], [0], [1], [0, 0, 1, 1], [], []>} : vector<1x16xbf16>, vector<16x64xbf16>, vector<1x64xf32> -> vector<1x64xf32>
      %252 = arith.addf %249, %251 : vector<1x64xf32>
      %253 = vector.extract_strided_slice %252 {offsets = [0, 0], sizes = [1, 48], strides = [1, 1]} : vector<1x64xf32> to vector<1x48xf32>
      %254 = arith.negf %253 : vector<1x48xf32>
      %255 = math.exp %254 : vector<1x48xf32>
      %cst_81 = arith.constant 1.000000e+00 : f32
      %256 = vector.broadcast %cst_81 : f32 to vector<1x48xf32>
      %257 = arith.addf %256, %255 : vector<1x48xf32>
      %258 = arith.divf %256, %257 : vector<1x48xf32>
      %259 = vector.extract_strided_slice %252 {offsets = [0, 48], sizes = [1, 16], strides = [1, 1]} : vector<1x64xf32> to vector<1x16xf32>
      %260 = math.tanh %259 : vector<1x16xf32>
      %261 = vector.extract_strided_slice %258 {offsets = [0, 16], sizes = [1, 16], strides = [1, 1]} : vector<1x48xf32> to vector<1x16xf32>
      %262 = arith.mulf %261, %223 : vector<1x16xf32>
      %263 = vector.extract_strided_slice %258 {offsets = [0, 0], sizes = [1, 16], strides = [1, 1]} : vector<1x48xf32> to vector<1x16xf32>
      %264 = arith.mulf %263, %260 : vector<1x16xf32>
      %265 = arith.addf %262, %264 : vector<1x16xf32>
      %266 = vector.extract_strided_slice %258 {offsets = [0, 32], sizes = [1, 16], strides = [1, 1]} : vector<1x48xf32> to vector<1x16xf32>
      %267 = math.tanh %265 : vector<1x16xf32>
      %268 = arith.mulf %266, %267 : vector<1x16xf32>
      %269 = vector.extract_strided_slice %56 {offsets = [5, 0], sizes = [1, 64], strides = [1, 1]} : vector<8x64xbf16> to vector<1x64xbf16>
      %270 = arith.extf %269 : vector<1x64xbf16> to vector<1x64xf32>
      %271 = arith.truncf %247 : vector<1x16xf32> to vector<1x16xbf16>
      %cst_82 = arith.constant dense<0.000000e+00> : vector<1x64xf32>
      %272 = tpu.matmul %271, %44, %cst_82 {dimension_numbers = #tpu.dot_dimension_numbers<[1], [0], [0], [1], [0, 0, 1, 1], [], []>} : vector<1x16xbf16>, vector<16x64xbf16>, vector<1x64xf32> -> vector<1x64xf32>
      %273 = arith.addf %270, %272 : vector<1x64xf32>
      %274 = vector.extract_strided_slice %273 {offsets = [0, 0], sizes = [1, 48], strides = [1, 1]} : vector<1x64xf32> to vector<1x48xf32>
      %275 = arith.negf %274 : vector<1x48xf32>
      %276 = math.exp %275 : vector<1x48xf32>
      %cst_83 = arith.constant 1.000000e+00 : f32
      %277 = vector.broadcast %cst_83 : f32 to vector<1x48xf32>
      %278 = arith.addf %277, %276 : vector<1x48xf32>
      %279 = arith.divf %277, %278 : vector<1x48xf32>
      %280 = vector.extract_strided_slice %273 {offsets = [0, 48], sizes = [1, 16], strides = [1, 1]} : vector<1x64xf32> to vector<1x16xf32>
      %281 = math.tanh %280 : vector<1x16xf32>
      %282 = vector.extract_strided_slice %279 {offsets = [0, 16], sizes = [1, 16], strides = [1, 1]} : vector<1x48xf32> to vector<1x16xf32>
      %283 = arith.mulf %282, %244 : vector<1x16xf32>
      %284 = vector.extract_strided_slice %279 {offsets = [0, 0], sizes = [1, 16], strides = [1, 1]} : vector<1x48xf32> to vector<1x16xf32>
      %285 = arith.mulf %284, %281 : vector<1x16xf32>
      %286 = arith.addf %283, %285 : vector<1x16xf32>
      %287 = vector.extract_strided_slice %279 {offsets = [0, 32], sizes = [1, 16], strides = [1, 1]} : vector<1x48xf32> to vector<1x16xf32>
      %288 = math.tanh %286 : vector<1x16xf32>
      %289 = arith.mulf %287, %288 : vector<1x16xf32>
      %290 = vector.extract_strided_slice %58 {offsets = [2, 0], sizes = [1, 64], strides = [1, 1]} : vector<8x64xbf16> to vector<1x64xbf16>
      %291 = arith.extf %290 : vector<1x64xbf16> to vector<1x64xf32>
      %292 = arith.truncf %268 : vector<1x16xf32> to vector<1x16xbf16>
      %cst_84 = arith.constant dense<0.000000e+00> : vector<1x64xf32>
      %293 = tpu.matmul %292, %45, %cst_84 {dimension_numbers = #tpu.dot_dimension_numbers<[1], [0], [0], [1], [0, 0, 1, 1], [], []>} : vector<1x16xbf16>, vector<16x64xbf16>, vector<1x64xf32> -> vector<1x64xf32>
      %294 = arith.addf %291, %293 : vector<1x64xf32>
      %295 = vector.extract_strided_slice %294 {offsets = [0, 0], sizes = [1, 48], strides = [1, 1]} : vector<1x64xf32> to vector<1x48xf32>
      %296 = arith.negf %295 : vector<1x48xf32>
      %297 = math.exp %296 : vector<1x48xf32>
      %cst_85 = arith.constant 1.000000e+00 : f32
      %298 = vector.broadcast %cst_85 : f32 to vector<1x48xf32>
      %299 = arith.addf %298, %297 : vector<1x48xf32>
      %300 = arith.divf %298, %299 : vector<1x48xf32>
      %301 = vector.extract_strided_slice %294 {offsets = [0, 48], sizes = [1, 16], strides = [1, 1]} : vector<1x64xf32> to vector<1x16xf32>
      %302 = math.tanh %301 : vector<1x16xf32>
      %303 = vector.extract_strided_slice %300 {offsets = [0, 16], sizes = [1, 16], strides = [1, 1]} : vector<1x48xf32> to vector<1x16xf32>
      %304 = arith.mulf %303, %265 : vector<1x16xf32>
      %305 = vector.extract_strided_slice %300 {offsets = [0, 0], sizes = [1, 16], strides = [1, 1]} : vector<1x48xf32> to vector<1x16xf32>
      %306 = arith.mulf %305, %302 : vector<1x16xf32>
      %307 = arith.addf %304, %306 : vector<1x16xf32>
      %308 = vector.extract_strided_slice %300 {offsets = [0, 32], sizes = [1, 16], strides = [1, 1]} : vector<1x48xf32> to vector<1x16xf32>
      %309 = math.tanh %307 : vector<1x16xf32>
      %310 = arith.mulf %308, %309 : vector<1x16xf32>
      %311 = vector.extract_strided_slice %56 {offsets = [6, 0], sizes = [1, 64], strides = [1, 1]} : vector<8x64xbf16> to vector<1x64xbf16>
      %312 = arith.extf %311 : vector<1x64xbf16> to vector<1x64xf32>
      %313 = arith.truncf %289 : vector<1x16xf32> to vector<1x16xbf16>
      %cst_86 = arith.constant dense<0.000000e+00> : vector<1x64xf32>
      %314 = tpu.matmul %313, %44, %cst_86 {dimension_numbers = #tpu.dot_dimension_numbers<[1], [0], [0], [1], [0, 0, 1, 1], [], []>} : vector<1x16xbf16>, vector<16x64xbf16>, vector<1x64xf32> -> vector<1x64xf32>
      %315 = arith.addf %312, %314 : vector<1x64xf32>
      %316 = vector.extract_strided_slice %315 {offsets = [0, 0], sizes = [1, 48], strides = [1, 1]} : vector<1x64xf32> to vector<1x48xf32>
      %317 = arith.negf %316 : vector<1x48xf32>
      %318 = math.exp %317 : vector<1x48xf32>
      %cst_87 = arith.constant 1.000000e+00 : f32
      %319 = vector.broadcast %cst_87 : f32 to vector<1x48xf32>
      %320 = arith.addf %319, %318 : vector<1x48xf32>
      %321 = arith.divf %319, %320 : vector<1x48xf32>
      %322 = vector.extract_strided_slice %315 {offsets = [0, 48], sizes = [1, 16], strides = [1, 1]} : vector<1x64xf32> to vector<1x16xf32>
      %323 = math.tanh %322 : vector<1x16xf32>
      %324 = vector.extract_strided_slice %321 {offsets = [0, 16], sizes = [1, 16], strides = [1, 1]} : vector<1x48xf32> to vector<1x16xf32>
      %325 = arith.mulf %324, %286 : vector<1x16xf32>
      %326 = vector.extract_strided_slice %321 {offsets = [0, 0], sizes = [1, 16], strides = [1, 1]} : vector<1x48xf32> to vector<1x16xf32>
      %327 = arith.mulf %326, %323 : vector<1x16xf32>
      %328 = arith.addf %325, %327 : vector<1x16xf32>
      %329 = vector.extract_strided_slice %321 {offsets = [0, 32], sizes = [1, 16], strides = [1, 1]} : vector<1x48xf32> to vector<1x16xf32>
      %330 = math.tanh %328 : vector<1x16xf32>
      %331 = arith.mulf %329, %330 : vector<1x16xf32>
      %332 = vector.extract_strided_slice %58 {offsets = [1, 0], sizes = [1, 64], strides = [1, 1]} : vector<8x64xbf16> to vector<1x64xbf16>
      %333 = arith.extf %332 : vector<1x64xbf16> to vector<1x64xf32>
      %334 = arith.truncf %310 : vector<1x16xf32> to vector<1x16xbf16>
      %cst_88 = arith.constant dense<0.000000e+00> : vector<1x64xf32>
      %335 = tpu.matmul %334, %45, %cst_88 {dimension_numbers = #tpu.dot_dimension_numbers<[1], [0], [0], [1], [0, 0, 1, 1], [], []>} : vector<1x16xbf16>, vector<16x64xbf16>, vector<1x64xf32> -> vector<1x64xf32>
      %336 = arith.addf %333, %335 : vector<1x64xf32>
      %337 = vector.extract_strided_slice %336 {offsets = [0, 0], sizes = [1, 48], strides = [1, 1]} : vector<1x64xf32> to vector<1x48xf32>
      %338 = arith.negf %337 : vector<1x48xf32>
      %339 = math.exp %338 : vector<1x48xf32>
      %cst_89 = arith.constant 1.000000e+00 : f32
      %340 = vector.broadcast %cst_89 : f32 to vector<1x48xf32>
      %341 = arith.addf %340, %339 : vector<1x48xf32>
      %342 = arith.divf %340, %341 : vector<1x48xf32>
      %343 = vector.extract_strided_slice %336 {offsets = [0, 48], sizes = [1, 16], strides = [1, 1]} : vector<1x64xf32> to vector<1x16xf32>
      %344 = math.tanh %343 : vector<1x16xf32>
      %345 = vector.extract_strided_slice %342 {offsets = [0, 16], sizes = [1, 16], strides = [1, 1]} : vector<1x48xf32> to vector<1x16xf32>
      %346 = arith.mulf %345, %307 : vector<1x16xf32>
      %347 = vector.extract_strided_slice %342 {offsets = [0, 0], sizes = [1, 16], strides = [1, 1]} : vector<1x48xf32> to vector<1x16xf32>
      %348 = arith.mulf %347, %344 : vector<1x16xf32>
      %349 = arith.addf %346, %348 : vector<1x16xf32>
      %350 = vector.extract_strided_slice %342 {offsets = [0, 32], sizes = [1, 16], strides = [1, 1]} : vector<1x48xf32> to vector<1x16xf32>
      %351 = math.tanh %349 : vector<1x16xf32>
      %352 = arith.mulf %350, %351 : vector<1x16xf32>
      %353 = vector.extract_strided_slice %56 {offsets = [7, 0], sizes = [1, 64], strides = [1, 1]} : vector<8x64xbf16> to vector<1x64xbf16>
      %354 = arith.extf %353 : vector<1x64xbf16> to vector<1x64xf32>
      %355 = arith.truncf %331 : vector<1x16xf32> to vector<1x16xbf16>
      %cst_90 = arith.constant dense<0.000000e+00> : vector<1x64xf32>
      %356 = tpu.matmul %355, %44, %cst_90 {dimension_numbers = #tpu.dot_dimension_numbers<[1], [0], [0], [1], [0, 0, 1, 1], [], []>} : vector<1x16xbf16>, vector<16x64xbf16>, vector<1x64xf32> -> vector<1x64xf32>
      %357 = arith.addf %354, %356 : vector<1x64xf32>
      %358 = vector.extract_strided_slice %357 {offsets = [0, 0], sizes = [1, 48], strides = [1, 1]} : vector<1x64xf32> to vector<1x48xf32>
      %359 = arith.negf %358 : vector<1x48xf32>
      %360 = math.exp %359 : vector<1x48xf32>
      %cst_91 = arith.constant 1.000000e+00 : f32
      %361 = vector.broadcast %cst_91 : f32 to vector<1x48xf32>
      %362 = arith.addf %361, %360 : vector<1x48xf32>
      %363 = arith.divf %361, %362 : vector<1x48xf32>
      %364 = vector.extract_strided_slice %357 {offsets = [0, 48], sizes = [1, 16], strides = [1, 1]} : vector<1x64xf32> to vector<1x16xf32>
      %365 = math.tanh %364 : vector<1x16xf32>
      %366 = vector.extract_strided_slice %363 {offsets = [0, 16], sizes = [1, 16], strides = [1, 1]} : vector<1x48xf32> to vector<1x16xf32>
      %367 = arith.mulf %366, %328 : vector<1x16xf32>
      %368 = vector.extract_strided_slice %363 {offsets = [0, 0], sizes = [1, 16], strides = [1, 1]} : vector<1x48xf32> to vector<1x16xf32>
      %369 = arith.mulf %368, %365 : vector<1x16xf32>
      %370 = arith.addf %367, %369 : vector<1x16xf32>
      %371 = vector.extract_strided_slice %363 {offsets = [0, 32], sizes = [1, 16], strides = [1, 1]} : vector<1x48xf32> to vector<1x16xf32>
      %372 = math.tanh %370 : vector<1x16xf32>
      %373 = arith.mulf %371, %372 : vector<1x16xf32>
      %374 = vector.extract_strided_slice %58 {offsets = [0, 0], sizes = [1, 64], strides = [1, 1]} : vector<8x64xbf16> to vector<1x64xbf16>
      %375 = arith.extf %374 : vector<1x64xbf16> to vector<1x64xf32>
      %376 = arith.truncf %352 : vector<1x16xf32> to vector<1x16xbf16>
      %cst_92 = arith.constant dense<0.000000e+00> : vector<1x64xf32>
      %377 = tpu.matmul %376, %45, %cst_92 {dimension_numbers = #tpu.dot_dimension_numbers<[1], [0], [0], [1], [0, 0, 1, 1], [], []>} : vector<1x16xbf16>, vector<16x64xbf16>, vector<1x64xf32> -> vector<1x64xf32>
      %378 = arith.addf %375, %377 : vector<1x64xf32>
      %379 = vector.extract_strided_slice %378 {offsets = [0, 0], sizes = [1, 48], strides = [1, 1]} : vector<1x64xf32> to vector<1x48xf32>
      %380 = arith.negf %379 : vector<1x48xf32>
      %381 = math.exp %380 : vector<1x48xf32>
      %cst_93 = arith.constant 1.000000e+00 : f32
      %382 = vector.broadcast %cst_93 : f32 to vector<1x48xf32>
      %383 = arith.addf %382, %381 : vector<1x48xf32>
      %384 = arith.divf %382, %383 : vector<1x48xf32>
      %385 = vector.extract_strided_slice %378 {offsets = [0, 48], sizes = [1, 16], strides = [1, 1]} : vector<1x64xf32> to vector<1x16xf32>
      %386 = math.tanh %385 : vector<1x16xf32>
      %387 = vector.extract_strided_slice %384 {offsets = [0, 16], sizes = [1, 16], strides = [1, 1]} : vector<1x48xf32> to vector<1x16xf32>
      %388 = arith.mulf %387, %349 : vector<1x16xf32>
      %389 = vector.extract_strided_slice %384 {offsets = [0, 0], sizes = [1, 16], strides = [1, 1]} : vector<1x48xf32> to vector<1x16xf32>
      %390 = arith.mulf %389, %386 : vector<1x16xf32>
      %391 = arith.addf %388, %390 : vector<1x16xf32>
      %392 = vector.extract_strided_slice %384 {offsets = [0, 32], sizes = [1, 16], strides = [1, 1]} : vector<1x48xf32> to vector<1x16xf32>
      %393 = math.tanh %391 : vector<1x16xf32>
      %394 = arith.mulf %392, %393 : vector<1x16xf32>
      %395 = tpu.concatenate %79, %121, %163, %205, %247, %289, %331, %373 in 0 : vector<1x16xf32>, vector<1x16xf32>, vector<1x16xf32>, vector<1x16xf32>, vector<1x16xf32>, vector<1x16xf32>, vector<1x16xf32>, vector<1x16xf32> -> vector<8x16xf32>
      %396 = tpu.concatenate %394, %352, %310, %268, %226, %184, %142, %100 in 0 : vector<1x16xf32>, vector<1x16xf32>, vector<1x16xf32>, vector<1x16xf32>, vector<1x16xf32>, vector<1x16xf32>, vector<1x16xf32>, vector<1x16xf32> -> vector<8x16xf32>
      %397 = arith.index_cast %51 : i32 to index
      %c0_94 = arith.constant 0 : index
      %398 = vector.load %arg15[%397, %c0_94] : memref<16x32xf32, #tpu.memory_space<vmem>>, vector<8x16xf32>
      %399 = arith.addf %395, %398 : vector<8x16xf32>
      %400 = arith.index_cast %54 : i32 to index
      %c16 = arith.constant 16 : index
      %401 = vector.load %arg15[%400, %c16] : memref<16x32xf32, #tpu.memory_space<vmem>>, vector<8x16xf32>
      %402 = arith.addf %396, %401 : vector<8x16xf32>
      %403 = arith.index_cast %51 : i32 to index
      %c0_95 = arith.constant 0 : index
      %404 = vector.load %arg17[%403, %c0_95] : memref<16x32xf32, #tpu.memory_space<vmem>>, vector<8x16xf32>
      tpu.vector_store %arg17[%403, %c0_95], %399 {strides = array<i32>} : memref<16x32xf32, #tpu.memory_space<vmem>>, vector<8x16xf32>,
      %405 = arith.index_cast %54 : i32 to index
      %c16_96 = arith.constant 16 : index
      %406 = vector.load %arg17[%405, %c16_96] : memref<16x32xf32, #tpu.memory_space<vmem>>, vector<8x16xf32>
      tpu.vector_store %arg17[%405, %c16_96], %402 {strides = array<i32>} : memref<16x32xf32, #tpu.memory_space<vmem>>, vector<8x16xf32>,
      scf.yield %373, %370, %394, %391 : vector<1x16xf32>, vector<1x16xf32>, vector<1x16xf32>, vector<1x16xf32>
    }
    %c2_i32_58 = arith.constant 2 : i32
    return
  }
}

</mosaic_0001>

<bundles_post_ra>
// kernel: tpu_custom_call.1
= control target key start
LH: loop header
LB: loop body
LE: loop exit
PB: predicated region body
PF: predicated region fallthrough
CT: control target
= control target key end

     0   :  { %s6313_s0 = inlined_call_operand.vmem [shape: f32[16,8], index: 0, kind: input, shape index: {}]   ;;  %s6314_s1 = inlined_call_operand.hbm [shape: bf16[8,32], index: 1, kind: input, shape index: {}]   ;;  %s6315_s2 = inlined_call_operand.vmem [shape: bf16[32,128], index: 2, kind: input, shape index: {}]   ;;  %s6316_s3 = inlined_call_operand.hbm [shape: bf16[16,64], index: 3, kind: input, shape index: {}]   ;;  %s6317_s4 = inlined_call_operand.hbm [shape: bf16[16,64], index: 4, kind: input, shape index: {}]   ;;  %s6318_s5 = inlined_call_operand.hbm [shape: f32[1,128], index: 5, kind: input, shape index: {}]   ;;  %s6319_s6 = inlined_call_operand.hbm [shape: bf16[32,128], index: 6, kind: input, shape index: {}]   ;;  %s6320_s7 = inlined_call_operand.hbm [shape: bf16[16,64], index: 7, kind: input, shape index: {}]   ;;  %s6321_s8 = inlined_call_operand.hbm [shape: bf16[16,64], index: 8, kind: input, shape index: {}]   ;;  %s6322_s9 = inlined_call_operand.hbm [shape: f32[1,128], index: 9, kind: input, shape index: {}]   ;;  %s6323_s10 = inlined_call_operand.vmem [shape: bf16[32,128], index: 10, kind: input, shape index: {}]   ;;  %s6324_s11 = inlined_call_operand.hbm [shape: bf16[16,64], index: 11, kind: input, shape index: {}]   ;;  %s6325_s12 = inlined_call_operand.hbm [shape: bf16[16,64], index: 12, kind: input, shape index: {}]   ;;  %s6326_s13 = inlined_call_operand.vmem [shape: f32[1,128], index: 13, kind: input, shape index: {}]   ;;  %s6327_s14 = inlined_call_operand.hbm [shape: f32[16,32], index: 14, kind: output, shape index: {0}]   ;;  %s6328_s15 = inlined_call_operand.hbm [shape: f32[16,32], index: 15, kind: output, shape index: {1}]   ;;  %s6329_s16 = inlined_call_operand.hbm [shape: f32[16,32], index: 16, kind: output, shape index: {2}]   ;;  %s6330_s17 = inlined_call_operand.hbm [shape: f32[16,32], index: 17, kind: output, shape index: {3}]  }
   0x1   :  { %6333 = sst [smem:[#allocation35_spill]] %s6313_s0 }
   0x2   :  { %6334 = sst [smem:[#allocation36_spill]] %s6314_s1 }
   0x3   :  { %23 = vsyncpa [#allocation4], 0 }
   0x4   :  { %24 = vsyncpa [#allocation7], 0 }
   0x5   :  { %25 = vsyncpa [#allocation10], 0 }
   0x6   :  { %26 = vsyncpa [#allocation13], 0 }
   0x7   :  { %27 = vsyncpa [#allocation16], 0 }
   0x8   :  { %28 = vsyncpa [#allocation19], 0 }
   0x9   :  { %29 = vsyncpa [#allocation5], 0 }
   0xa   :  { %30 = vsyncpa [#allocation22], 0  ;;  %s51_s26 = sshll.u32 %s6316_s3, 4  ;;  %s52_s26 = int_to_ptr.hbm [resolvable:$true] %s51_s26 }
   0xb   :  { %31 = vsyncpa [#allocation25], 0  ;;  %s5147_s27 = smov [#allocation6]   ;;  %s78_s30 = sshll.u32 %s6318_s5, 4  ;;  %s79_s30 = int_to_ptr.hbm [resolvable:$true] %s78_s30 }
   0xc   :  { %s53_s28 = sshll.u32 %s5147_s27, 4  ;;  %s5148_s18 = smov 64   ;;  %s54_s28 = int_to_ptr.vmem [resolvable:$true] %s53_s28 }
   0xd   :  { %s5149_s19 = smov 4   ;;  %s5150_s1 = smov [#allocation9]  }
   0xe   :  { %59 = dma.hbm_to_vmem [thread:$0]  %s52_s26, 128, %s54_s28, [#allocation7], %s5148_s18, %s5148_s18, %s5149_s19  }
   0xf   :  { %s80_s20 = sshll.u32 %s5150_s1, 4  ;;  %s101_s22 = sshll.u32 %s6320_s7, 4  ;;  %s81_s20 = int_to_ptr.vmem [resolvable:$true] %s80_s20  ;;  %s102_s22 = int_to_ptr.hbm [resolvable:$true] %s101_s22 }
  0x10   :  { %83 = dma.hbm_to_vmem [thread:$0]  %s79_s30, 16, %s81_s20, [#allocation10]  }
  0x11   :  { %s128_s5 = sshll.u32 %s6322_s9, 4  ;;  %s5151_s25 = smov [#allocation12]   ;;  %s129_s5 = int_to_ptr.hbm [resolvable:$true] %s128_s5 }
  0x12   :  { %s103_s27 = sshll.u32 %s5151_s25, 4  ;;  %s5152_s26 = smov [#allocation15]   ;;  %s104_s27 = int_to_ptr.vmem [resolvable:$true] %s103_s27 }
  0x13   :  { %109 = dma.hbm_to_vmem [thread:$0]  %s102_s22, 128, %s104_s27, [#allocation13], %s5148_s18, %s5148_s18, %s5149_s19  }
  0x14   :  { %s130_s28 = sshll.u32 %s5152_s26, 4  ;;  %s6335_s7 = sld [smem:[#allocation36_spill]]  ;;  %s131_s28 = int_to_ptr.vmem [resolvable:$true] %s130_s28 }
  0x15   :  { %133 = dma.hbm_to_vmem [thread:$0]  %s129_s5, 16, %s131_s28, [#allocation16]  }
  0x16   :  { %s64_s9 = sshll.u32 %s6317_s4, 4  ;;  %s5153_s21 = smov [#allocation3]   ;;  %s65_s9 = int_to_ptr.hbm [resolvable:$true] %s64_s9 }
  0x17   :  { %s41_s3 = sshll.u32 %s5153_s21, 4  ;;  %s5154_s23 = smov [#allocation8]   ;;  %s42_s3 = int_to_ptr.vmem [resolvable:$true] %s41_s3 }
  0x18   :  { %s66_s22 = sshll.u32 %s5154_s23, 4  ;;  %s88_s27 = sshll.u32 %s6319_s6, 4  ;;  %s67_s22 = int_to_ptr.vmem [resolvable:$true] %s66_s22  ;;  %s89_s27 = int_to_ptr.hbm [resolvable:$true] %s88_s27 }
  0x19   :  { %72 = dma.hbm_to_vmem [thread:$0]  %s65_s9, 128, %s67_s22, [#allocation7], %s5148_s18, %s5148_s18, %s5149_s19  }
  0x1a   :  { %s39_s1 = sshll.u32 %s6335_s7, 4  ;;  %s114_s4 = sshll.u32 %s6321_s8, 4  ;;  %s40_s1 = int_to_ptr.hbm [resolvable:$true] %s39_s1  ;;  %s115_s4 = int_to_ptr.hbm [resolvable:$true] %s114_s4 }
  0x1b   :  { %44 = dma.hbm_to_vmem [thread:$0]  %s40_s1, 64, %s42_s3, [#allocation4]  }
  0x1c   :  { %s5155_s28 = smov [#allocation11]   ;;  %s5156_s0 = smov [#allocation14]  }
  0x1d   :  { %s90_s29 = sshll.u32 %s5155_s28, 4  ;;  %s116_s6 = sshll.u32 %s5156_s0, 4  ;;  %s91_s29 = int_to_ptr.vmem [resolvable:$true] %s90_s29  ;;  %s117_s6 = int_to_ptr.vmem [resolvable:$true] %s116_s6 }
  0x1e   :  { %96 = dma.hbm_to_vmem [thread:$0]  %s89_s27, 256, %s91_s29, [#allocation10], %s5148_s18, %s5148_s18, %s5149_s19  }
  0x1f   :  { %s140_s30 = sshll.u32 %s6324_s11, 4  ;;  %s153_s9 = sshll.u32 %s6325_s12, 4  ;;  %s141_s30 = int_to_ptr.hbm [resolvable:$true] %s140_s30  ;;  %s154_s9 = int_to_ptr.hbm [resolvable:$true] %s153_s9 }
  0x20   :  { %122 = dma.hbm_to_vmem [thread:$0]  %s115_s4, 128, %s117_s6, [#allocation13], %s5148_s18, %s5148_s18, %s5149_s19  }
  0x21   :  { %s5157_s21 = smov [#allocation17]   ;;  %s5158_s23 = smov [#allocation18]  }
  0x22   :  { %s142_s3 = sshll.u32 %s5157_s21, 4  ;;  %s155_s11 = sshll.u32 %s5158_s23, 4  ;;  %s143_s3 = int_to_ptr.vmem [resolvable:$true] %s142_s3  ;;  %s156_s11 = int_to_ptr.vmem [resolvable:$true] %s155_s11 }
  0x23   :  { %148 = dma.hbm_to_vmem [thread:$0]  %s141_s30, 128, %s143_s3, [#allocation16], %s5148_s18, %s5148_s18, %s5149_s19  }
  0x24   :  { %161 = dma.hbm_to_vmem [thread:$0]  %s154_s9, 128, %s156_s11, [#allocation19], %s5148_s18, %s5148_s18, %s5149_s19  }
  0x25   :  { %5069 = dma.done.wait [#allocation4], 64  }
  0x26   :  { %5070 = vsyncadd [#allocation4], 4294967232 }
  0x27   :  { %5071 = dma.done.wait [#allocation7], 256  }
  0x28   :  { %5072 = vsyncadd [#allocation7], 4294967040 }
  0x29   :  { %5073 = dma.done.wait [#allocation10], 272  }
  0x2a   :  { %5074 = vsyncadd [#allocation10], 4294967024 }
  0x2b   :  { %5075 = dma.done.wait [#allocation13], 256  }
  0x2c   :  { %5076 = vsyncadd [#allocation13], 4294967040 }
  0x2d   :  { %5077 = dma.done.wait [#allocation16], 144  }
  0x2e   :  { %5078 = vsyncadd [#allocation16], 4294967152 }
  0x2f   :  { %5079 = dma.done.wait [#allocation19], 128  }
  0x30   :  { %5080 = vsyncadd [#allocation19], 4294967168  ;;  %vm213_vm0 = vcmask 1043456   ;;  %v5324_v0 = vld [vmem:[#allocation6] sm:$0xf]  ;;  %s6336_s19 = sld [smem:[#allocation35_spill]] }
  0x31   :  { %v5326_v1 = vld [vmem:[#allocation6] sm:$0xf0]  ;;  %v5328_v2 = vld [vmem:[#allocation8] sm:$0xf]  ;;  %v5330_v3 = vld [vmem:[#allocation8] sm:$0xf0] }
  0x32   :  { %v208_v4 = vld [vmem:[#allocation3] sm:$0xf]  ;;  %vm209_vm1 = vcmask 64512   ;;  %v4103_v10 = vld [vmem:[%s6315_s2] sm:$0xff]  ;;  %vm6332_vm2 = vcmask 261120   ;;  %v5348_v22 = vmov 0.0  }
  0x33   :  { %v215_v6 = vsel %vm213_vm0, %v208_v4, 0  ;;  %v4104_v9 = vld [vmem:[%s6315_s2 + $0x8] sm:$0xff]  ;;  %v4286_v17 = vld [vmem:[#allocation9] ss:$0 sm:$0xff]  ;;  %v5350_v23 = vmov 0.0   ;;  %v5352_v24 = vmov 0.0  }
  0x34   :  { %224 = vmatpush.bf16.msra.mxu0 %v215_v6  ;;  %266 = vmatpush.bf16.msra.mxu1 %v4104_v9  ;;  %v5354_v25 = vmov 0.0   ;;  %s5356_s2 = smov 0  }
  0x36   :  { %v205_v5 = vld [vmem:[%s6336_s19] sm:$0xff]  ;;  %v206_v7 = vld [vmem:[%s6336_s19 + $0x8] sm:$0xff] }
  0x37   :  { %v207_v8 = vpack.c.bf16 %v206_v7, %v205_v5 }
  0x38   :  { %267 = vmatpush.bf16.msra.mxu1 %v4103_v10 }
  0x39   :  { %3946 = vmatmul.msk.bf16.vlgmr.msra.gmra.mxu0 %vm209_vm1, %v207_v8 }
  0xb6   :  { %v226_v11 = vpop.f32.mrf.mxu0 }
  0xb7   :  { %232 = vst.msk [vmem:[#allocation20] sm:$0xff] %vm6332_vm2, %v226_v11 }
  0xbe   :  { %v228_v12 = vpop.f32.mrf.mxu0  ;;  %v234_v13 = vld [vmem:[#allocation20] sm:$0xff] }
  0xbf   :  { %233 = vst.msk [vmem:[#allocation20 + $0x8] sm:$0xff] %vm6332_vm2, %v228_v12 }
  0xc6   :  { %v235_v14 = vld [vmem:[#allocation20 + $0x8] sm:$0xff] }
  0xc7   :  { %v236_v15 = vpack.c.bf16 %v235_v14, %v234_v13 }
  0xc9   :  { %3955 = vmatmul.msk.bf16.vlgmr.msra.gmra.mxu1 %vm6332_vm2, %v236_v15 }
 0x146   :  { %v269_v16 = vpop.f32.mrf.mxu1 }
 0x147   :  { %v270_v19 = vadd.f32 %v4286_v17, %v269_v16 }
 0x14e   :  { %v271_v18 = vpop.f32.mrf.mxu1 }
 0x14f   :  { %v272_v20 = vadd.f32 %v4286_v17, %v271_v18 }
 0x151   :  { %v4118_v21 = vpack.c.bf16 %v272_v20, %v270_v19 }
 0x153   :  { %4119 = vst [vmem:[#allocation2] sm:$0xff] %v4118_v21  }
 0x154 LB: > { %v5371_v26 = vor.u32 %v5330_v3, %v5328_v2  ;;  %v377_v27 = vpack.c.bf16 %v5093_v23, %v5093_v23  ;;  %s5159_s4 = smov 32   ;;  %vm318_vm3 = vcmask 130048   ;;  %s5160_s28 = smov 64   ;;  %v430_v52 = vrot.slane %v5089_v22, 1  ;;  %s5105_s2 = sphi %s5356_s2, %s287_s2   ;;  %v5101_v25 = vphi %v5354_v25, %v1315_v25   ;;  %v5097_v24 = vphi %v5352_v24, %v1309_v24   ;;  %v5093_v23 = vphi %v5350_v23, %v1382_v23   ;;  %v5089_v22 = vphi %v5348_v22, %v1376_v22  }
 0x155   : > { %s5382_s29 = sshll.u32 %s5105_s2, 3  ;;  %s5161_s30 = smov 80   ;;  %v305_v56 = vpack.c.bf16 %v5101_v25, %v5101_v25  ;;  %v5401_v60 = vor.u32 %v5326_v1, %v5324_v0 }
 0x156   : > { %397 = vmatpush.bf16.msra.mxu1 %v5371_v26  ;;  %530 = vmatpush.bf16.msra.mxu3 %v5371_v26  ;;  %s293_s0 = ssub.s32 8, %s5382_s29  ;;  %s5162_s8 = smov 16  }
 0x157   : > { %379 = vrot.lane.b32.xlu0 %v377_v27, %s5159_s4  ;;  %s299_s6 = sshra.s32 %s293_s0, 3  ;;  %v307_v58 = vshrl.u32 %v305_v56, 16  ;;  %s5163_s20 = smov 96   ;;  %329 = vmatpush.bf16.msra.mxu0 %v5401_v60 }
 0x158   : > { %s3958_s7 = sshll.u32 %s299_s6, 2  ;;  %463 = vmatpush.bf16.msra.mxu2 %v5401_v60  ;;  %s294_s9 = sshra.s32 %s5382_s29, 3 }
 0x159   : > { %s302_s1 = scalar_lea.vmem [#allocation2], %s3958_s7  ;;  %v309_v59 = vrot.slane %v307_v58, 3  ;;  %s3957_s21 = sshll.u32 %s294_s9, 2 }
 0x15a   : > { %663 = vmatpush.bf16.msrb.mxu1 %v5371_v26  ;;  %797 = vmatpush.bf16.msrb.mxu3 %v5371_v26  ;;  %v303_v32 = vld [vmem:[%s302_s1] sm:$0xf]  ;;  %s297_s3 = scalar_lea.vmem [#allocation2], %s3957_s21  ;;  %s1407_s23 = scalar_lea.vmem [#allocation21], %s5382_s29 }
 0x15b   : > { %v5387_v33 = vunpack.c.l.bf16 %v303_v32  ;;  %598 = vmatpush.bf16.msrb.mxu0 %v5401_v60  ;;  %v298_v8 = vld [vmem:[%s297_s3] sm:$0xf]  ;;  %s5164_s11 = smov 48   ;;  %s1413_s12 = scalar_lea.vmem [#allocation21], %s293_s0 }
 0x15c   : > { %730 = vmatpush.bf16.msrb.mxu2 %v5401_v60  ;;  %v5417_v9 = vunpack.c.l.bf16 %v298_v8  ;;  %s287_s2 = sadd.s32 1, %s5105_s2  }
 0x15d   : > { %p284_p0 = scmp.ge.s32.totalorder %s287_s2, 2  }
 0x15e   :  { %v5667_v3 = vmov (%p284_p0), 0.0   ;;  %s5675_s18 = smov (%p284_p0), 0  }
 0x1c9   : > { %v380_v28 = vpop.permute.xlu0 %379 }
 0x1ca   : > { %3969 = vmatmul.msk.bf16.vlgmr.msra.gmra.mxu1 %vm318_vm3, %v380_v28 }
 0x1cb   : > { %931 = vmatpush.bf16.msra.mxu1 %v5371_v26 }
 0x247   : > { %v399_v29 = vpop.f32.mrf.mxu1 }
 0x248   : > { %v404_v30 = vrot.slane %v399_v29, 1 }
 0x24a   : > { %405 = vrot.lane.b32.xlu0 %v404_v30, %s5160_s28 }
 0x24f   : > { %v401_v31 = vpop.f32.mrf.mxu1 }
 0x2bc   : > { %v406_v34 = vpop.permute.xlu0 %405 }
 0x2bd   : > { %v408_v35 = vadd.f32 %v406_v34, %v5387_v33 }
 0x2bf   : > { %4287 = vtanh.f32 %v408_v35  ;;  %v3970_v37 = vmul.f32 -1.442695, %v408_v35 }
 0x2c1   : > { %4289 = vpow2.f32 %v3970_v37 }
 0x2c5   : > { %v4288_v36 = vpop.eup %4287 }
 0x2c6   : > { %434 = vrot.lane.b32.xlu1 %v4288_v36, %s5161_s30 }
 0x2c7   : > { %v4290_v38 = vpop.eup %4289 }
 0x2c8   : > { %v412_v39 = vadd.f32 1.0, %v4290_v38  ;;  %v357_v38 = vrot.slane %v5097_v24, 7 }
 0x2ca   : > { %4291 = vrcp.f32 %v412_v39  ;;  %v424_v45 = vand.u32 2147483648, %v412_v39  ;;  %vm418_vm5 = vweird.f32 %v412_v39  ;;  %v422_v46 = vand.u32 2147483647, %v412_v39 }
 0x2cc   : > { %v425_v48 = vor.u32 1.1754944e-38, %v424_v45  ;;  %vm423_vm7 = vcmp.eq.f32.partialorder %v422_v46, 8.507059e+37 }
 0x2d0   : > { %v4292_v40 = vpop.eup %4291 }
 0x2d1   : > { %v414_v41 = vmul.f32 %v4292_v40, %v412_v39  ;;  %vm419_vm4 = vweird.f32 %v4292_v40 }
 0x2d2   : > { %vm420_vm6 = vmor %vm418_vm5, %vm419_vm4 }
 0x2d3   : > { %v415_v42 = vsub.f32 1.0, %v414_v41 }
 0x2d5   : > { %v416_v43 = vmul.f32 %v4292_v40, %v415_v42 }
 0x2d7   : > { %v417_v44 = vadd.f32 %v4292_v40, %v416_v43 }
 0x2d9   : > { %v421_v47 = vsel %vm420_vm6, %v4292_v40, %v417_v44 }
 0x2da   : > { %v426_v50 = vsel %vm423_vm7, %v425_v48, %v421_v47 }
 0x2db   : > { %v432_v53 = vmul.f32 %v430_v52, %v426_v50 }
 0x338   : > { %v435_v49 = vpop.permute.xlu1 %434 }
 0x339   : > { %v437_v51 = vmul.f32 %v435_v49, %v426_v50 }
 0x33b   : > { %439 = vrot.lane.b32.xlu1 %v437_v51, %s5162_s8 }
 0x3ad   : > { %v440_v54 = vpop.permute.xlu1 %439 }
 0x3ae   : > { %v5392_v55 = vadd.f32 %v440_v54, %v432_v53 }
 0x3b0   : > { %4293 = vtanh.f32 %v5392_v55 }
 0x3b6   : > { %v4294_v57 = vpop.eup %4293 }
 0x3b7   : > { %445 = vrot.lane.b32.xlu2 %v4294_v57, %s5162_s8 }
 0x3bf   : > { %310 = vrot.lane.b32.xlu2 %v309_v59, %s5163_s20 }
 0x411   : > { %v446_v61 = vpop.permute.xlu2 %445 }
 0x412   : > { %v5407_v62 = vmul.f32 %v446_v61, %v426_v50 }
 0x414   : > { %v513_v63 = vpack.c.bf16 %v5407_v62, %v5407_v62 }
 0x416   : > { %v515_v4 = vshrl.u32 %v513_v63, 16  ;;  %v563_v63 = vrot.slane %v5392_v55, 1 }
 0x418   : > { %v517_v5 = vrot.slane %v515_v4, 3 }
 0x419   : > { %v311_v6 = vpop.permute.xlu2 %310 }
 0x41a   : > { %518 = vrot.lane.b32.xlu0 %v517_v5, %s5159_s4  ;;  %3963 = vmatmul.msk.bf16.vlgmr.msra.gmra.mxu0 %vm318_vm3, %v311_v6 }
 0x41b   : > { %866 = vmatpush.bf16.msra.mxu0 %v5401_v60 }
 0x48c   : > { %v519_v7 = vpop.permute.xlu0 %518 }
 0x48d   : > { %3973 = vmatmul.msk.bf16.vlgmr.msra.gmra.mxu3 %vm318_vm3, %v519_v7 }
 0x48e   : > { %1065 = vmatpush.bf16.msra.mxu3 %v5371_v26 }
 0x497   : > { %v331_v10 = vpop.f32.mrf.mxu0 }
 0x498   : > { %v335_v11 = vadd.f32 %v331_v10, %v5417_v9 }
 0x49a   : > { %4295 = vtanh.f32 %v335_v11  ;;  %v3964_v14 = vmul.f32 -1.442695, %v335_v11 }
 0x49c   : > { %4297 = vpow2.f32 %v3964_v14 }
 0x49f   : > { %v333_v12 = vpop.f32.mrf.mxu0 }
 0x4a0   : > { %v4296_v13 = vpop.eup %4295 }
 0x4a1   : > { %361 = vrot.lane.b32.xlu1 %v4296_v13, %s5161_s30 }
 0x4a2   : > { %v4298_v15 = vpop.eup %4297 }
 0x4a3   : > { %v339_v16 = vadd.f32 1.0, %v4298_v15 }
 0x4a5   : > { %4299 = vrcp.f32 %v339_v16  ;;  %vm345_vm8 = vweird.f32 %v339_v16  ;;  %v351_v21 = vand.u32 2147483648, %v339_v16  ;;  %v349_v23 = vand.u32 2147483647, %v339_v16 }
 0x4a7   : > { %v352_v25 = vor.u32 1.1754944e-38, %v351_v21  ;;  %vm350_vm11 = vcmp.eq.f32.partialorder %v349_v23, 8.507059e+37 }
 0x4ab   : > { %v4300_v17 = vpop.eup %4299 }
 0x4ac   : > { %v341_v18 = vmul.f32 %v4300_v17, %v339_v16  ;;  %vm346_vm9 = vweird.f32 %v4300_v17 }
 0x4ad   : > { %vm347_vm10 = vmor %vm345_vm8, %vm346_vm9 }
 0x4ae   : > { %v342_v19 = vsub.f32 1.0, %v341_v18 }
 0x4b0   : > { %v343_v20 = vmul.f32 %v4300_v17, %v342_v19 }
 0x4b2   : > { %v344_v22 = vadd.f32 %v4300_v17, %v343_v20 }
 0x4b4   : > { %v348_v27 = vsel %vm347_vm10, %v4300_v17, %v344_v22 }
 0x4b5   : > { %v353_v30 = vsel %vm350_vm11, %v352_v25, %v348_v27 }
 0x4b6   : > { %v359_v39 = vmul.f32 %v357_v38, %v353_v30 }
 0x510   : > { %v532_v28 = vpop.f32.mrf.mxu3 }
 0x511   : > { %v537_v29 = vrot.slane %v532_v28, 2 }
 0x513   : > { %538 = vrot.lane.b32.xlu2 %v537_v29, %s5160_s28  ;;  %v362_v31 = vpop.permute.xlu1 %361 }
 0x514   : > { %v364_v32 = vmul.f32 %v362_v31, %v353_v30 }
 0x516   : > { %366 = vrot.lane.b32.xlu0 %v364_v32, %s5162_s8 }
 0x518   : > { %v534_v34 = vpop.f32.mrf.mxu3 }
 0x56d   : > { %v539_v35 = vpop.permute.xlu2 %538 }
 0x56e   : > { %v541_v36 = vadd.f32 %v539_v35, %v5387_v33 }
 0x570   : > { %4301 = vtanh.f32 %v541_v36  ;;  %v3974_v43 = vmul.f32 -1.442695, %v541_v36 }
 0x576   : > { %v4302_v37 = vpop.eup %4301 }
 0x577   : > { %567 = vrot.lane.b32.xlu1 %v4302_v37, %s5161_s30 }
 0x588   : > { %v367_v40 = vpop.permute.xlu0 %366 }
 0x589   : > { %v5426_v41 = vadd.f32 %v367_v40, %v359_v39 }
 0x58b   : > { %4303 = vtanh.f32 %v5426_v41  ;;  %v494_v39 = vrot.slane %v5426_v41, 7 }
 0x58c   : > { %4305 = vpow2.f32 %v3974_v43 }
 0x591   : > { %v4304_v42 = vpop.eup %4303 }
 0x592   : > { %372 = vrot.lane.b32.xlu2 %v4304_v42, %s5162_s8  ;;  %v4306_v44 = vpop.eup %4305 }
 0x593   : > { %v545_v45 = vadd.f32 1.0, %v4306_v44 }
 0x595   : > { %4307 = vrcp.f32 %v545_v45  ;;  %v557_v24 = vand.u32 2147483648, %v545_v45  ;;  %vm551_vm13 = vweird.f32 %v545_v45  ;;  %v555_v51 = vand.u32 2147483647, %v545_v45 }
 0x597   : > { %v558_v53 = vor.u32 1.1754944e-38, %v557_v24  ;;  %vm556_vm15 = vcmp.eq.f32.partialorder %v555_v51, 8.507059e+37 }
 0x59b   : > { %v4308_v46 = vpop.eup %4307 }
 0x59c   : > { %v547_v47 = vmul.f32 %v4308_v46, %v545_v45  ;;  %vm552_vm12 = vweird.f32 %v4308_v46 }
 0x59d   : > { %vm553_vm14 = vmor %vm551_vm13, %vm552_vm12 }
 0x59e   : > { %v548_v48 = vsub.f32 1.0, %v547_v47 }
 0x5a0   : > { %v549_v49 = vmul.f32 %v4308_v46, %v548_v48 }
 0x5a2   : > { %v550_v50 = vadd.f32 %v4308_v46, %v549_v49 }
 0x5a4   : > { %v554_v52 = vsel %vm553_vm14, %v4308_v46, %v550_v50 }
 0x5a5   : > { %v559_v56 = vsel %vm556_vm15, %v558_v53, %v554_v52  ;;  %vm1383_vm15 = vcmask 1040384  }
 0x5a6   : > { %v565_v4 = vmul.f32 %v563_v63, %v559_v56 }
 0x5e9   : > { %v568_v54 = vpop.permute.xlu1 %567 }
 0x5ea   : > { %v570_v57 = vmul.f32 %v568_v54, %v559_v56 }
 0x5ec   : > { %572 = vrot.lane.b32.xlu0 %v570_v57, %s5162_s8  ;;  %v373_v58 = vpop.permute.xlu2 %372 }
 0x5ed   : > { %v5431_v59 = vmul.f32 %v373_v58, %v353_v30 }
 0x5ef   : > { %v449_v61 = vpack.c.bf16 %v5431_v59, %v5431_v59 }
 0x5f1   : > { %451 = vrot.lane.b32.xlu1 %v449_v61, %s5163_s20 }
 0x65e   : > { %v573_v5 = vpop.permute.xlu0 %572 }
 0x65f   : > { %v5437_v6 = vadd.f32 %v573_v5, %v565_v4 }
 0x661   : > { %4309 = vtanh.f32 %v5437_v6 }
 0x663   : > { %v452_v7 = vpop.permute.xlu1 %451 }
 0x664   : > { %3971 = vmatmul.msk.bf16.vlgmr.msra.gmra.mxu2 %vm318_vm3, %v452_v7 }
 0x665   : > { %998 = vmatpush.bf16.msra.mxu2 %v5401_v60 }
 0x667   : > { %v4310_v8 = vpop.eup %4309 }
 0x668   : > { %578 = vrot.lane.b32.xlu2 %v4310_v8, %s5162_s8 }
 0x6c2   : > { %v579_v10 = vpop.permute.xlu2 %578 }
 0x6c3   : > { %v5443_v11 = vmul.f32 %v579_v10, %v559_v56 }
 0x6c5   : > { %v648_v55 = vpack.c.bf16 %v5443_v11, %v5443_v11 }
 0x6c7   : > { %v650_v12 = vrot.slane %v648_v55, 3 }
 0x6c9   : > { %651 = vrot.lane.b32.xlu0 %v650_v12, %s5159_s4 }
 0x6e7   : > { %v465_v13 = vpop.f32.mrf.mxu2 }
 0x6e8   : > { %v470_v14 = vrot.slane %v465_v13, 7  ;;  %v696_v13 = vrot.slane %v5437_v6, 1 }
 0x6ea   : > { %v472_v15 = vadd.f32 %v470_v14, %v5417_v9 }
 0x6ec   : > { %4311 = vtanh.f32 %v472_v15  ;;  %v3972_v18 = vmul.f32 -1.442695, %v472_v15 }
 0x6ee   : > { %4313 = vpow2.f32 %v3972_v18 }
 0x6ef   : > { %v467_v16 = vpop.f32.mrf.mxu2 }
 0x6f2   : > { %v4312_v17 = vpop.eup %4311 }
 0x6f3   : > { %498 = vrot.lane.b32.xlu1 %v4312_v17, %s5161_s30 }
 0x6f4   : > { %v4314_v20 = vpop.eup %4313 }
 0x6f5   : > { %v476_v21 = vadd.f32 1.0, %v4314_v20 }
 0x6f7   : > { %4315 = vrcp.f32 %v476_v21  ;;  %v488_v29 = vand.u32 2147483648, %v476_v21  ;;  %vm482_vm4 = vweird.f32 %v476_v21  ;;  %v486_v30 = vand.u32 2147483647, %v476_v21 }
 0x6f9   : > { %v489_v32 = vor.u32 1.1754944e-38, %v488_v29  ;;  %vm487_vm6 = vcmp.eq.f32.partialorder %v486_v30, 8.507059e+37 }
 0x6fd   : > { %v4316_v22 = vpop.eup %4315 }
 0x6fe   : > { %v478_v23 = vmul.f32 %v4316_v22, %v476_v21  ;;  %vm483_vm1 = vweird.f32 %v4316_v22 }
 0x6ff   : > { %vm484_vm5 = vmor %vm482_vm4, %vm483_vm1  ;;  %vm1385_vm1 = vcmask 1041408  }
 0x700   : > { %v479_v25 = vsub.f32 1.0, %v478_v23 }
 0x702   : > { %v480_v27 = vmul.f32 %v4316_v22, %v479_v25 }
 0x704   : > { %v481_v28 = vadd.f32 %v4316_v22, %v480_v27 }
 0x706   : > { %v485_v31 = vsel %vm484_vm5, %v4316_v22, %v481_v28 }
 0x707   : > { %v490_v35 = vsel %vm487_vm6, %v489_v32, %v485_v31 }
 0x708   : > { %v496_v42 = vmul.f32 %v494_v39, %v490_v35 }
 0x73b   : > { %v652_v19 = vpop.permute.xlu0 %651 }
 0x73c   : > { %3977 = vmatmul.msk.bf16.vlgmr.msrb.gmra.mxu1 %vm318_vm3, %v652_v19 }
 0x73d   : > { %1199 = vmatpush.bf16.msrb.mxu1 %v5371_v26 }
 0x765   : > { %v499_v34 = vpop.permute.xlu1 %498 }
 0x766   : > { %v501_v36 = vmul.f32 %v499_v34, %v490_v35 }
 0x768   : > { %503 = vrot.lane.b32.xlu2 %v501_v36, %s5162_s8 }
 0x7b9   : > { %v665_v37 = vpop.f32.mrf.mxu1 }
 0x7ba   : > { %v670_v38 = vrot.slane %v665_v37, 3 }
 0x7bc   : > { %671 = vrot.lane.b32.xlu0 %v670_v38, %s5160_s28 }
 0x7c1   : > { %v667_v40 = vpop.f32.mrf.mxu1 }
 0x7c2   : > { %v504_v43 = vpop.permute.xlu2 %503 }
 0x7c3   : > { %v5455_v44 = vadd.f32 %v504_v43, %v496_v42 }
 0x7c5   : > { %4317 = vtanh.f32 %v5455_v44 }
 0x7cb   : > { %v4318_v45 = vpop.eup %4317 }
 0x7cc   : > { %509 = vrot.lane.b32.xlu1 %v4318_v45, %s5162_s8 }
 0x82e   : > { %v672_v46 = vpop.permute.xlu0 %671 }
 0x82f   : > { %v674_v47 = vadd.f32 %v672_v46, %v5387_v33 }
 0x831   : > { %4319 = vtanh.f32 %v674_v47  ;;  %v3978_v51 = vmul.f32 -1.442695, %v674_v47 }
 0x833   : > { %4321 = vpow2.f32 %v3978_v51 }
 0x837   : > { %v4320_v48 = vpop.eup %4319 }
 0x838   : > { %700 = vrot.lane.b32.xlu2 %v4320_v48, %s5161_s30  ;;  %v629_v48 = vrot.slane %v5455_v44, 7 }
 0x839   : > { %v4322_v52 = vpop.eup %4321 }
 0x83a   : > { %v678_v53 = vadd.f32 1.0, %v4322_v52 }
 0x83c   : > { %4323 = vrcp.f32 %v678_v53  ;;  %v690_v63 = vand.u32 2147483648, %v678_v53  ;;  %vm684_vm8 = vweird.f32 %v678_v53  ;;  %v688_v4 = vand.u32 2147483647, %v678_v53 }
 0x83e   : > { %v510_v49 = vpop.permute.xlu1 %509  ;;  %v691_v7 = vor.u32 1.1754944e-38, %v690_v63  ;;  %vm689_vm10 = vcmp.eq.f32.partialorder %v688_v4, 8.507059e+37 }
 0x83f   : > { %v5461_v50 = vmul.f32 %v510_v49, %v490_v35 }
 0x841   : > { %v582_v41 = vpack.c.bf16 %v5461_v50, %v5461_v50  ;;  %v1384_v44 = vsel %vm1383_vm15, %v5431_v59, %v5461_v50 }
 0x842   : > { %v4324_v54 = vpop.eup %4323 }
 0x843   : > { %v584_v24 = vshrl.u32 %v582_v41, 16  ;;  %v680_v56 = vmul.f32 %v4324_v54, %v678_v53  ;;  %vm685_vm7 = vweird.f32 %v4324_v54 }
 0x844   : > { %vm686_vm9 = vmor %vm684_vm8, %vm685_vm7 }
 0x845   : > { %586 = vrot.lane.b32.xlu0 %v584_v24, %s5163_s20  ;;  %v681_v57 = vsub.f32 1.0, %v680_v56 }
 0x847   : > { %v682_v58 = vmul.f32 %v4324_v54, %v681_v57 }
 0x849   : > { %v683_v61 = vadd.f32 %v4324_v54, %v682_v58 }
 0x84b   : > { %v687_v5 = vsel %vm686_vm9, %v4324_v54, %v683_v61 }
 0x84c   : > { %v692_v8 = vsel %vm689_vm10, %v691_v7, %v687_v5 }
 0x84d   : > { %v698_v14 = vmul.f32 %v696_v13, %v692_v8 }
 0x892   : > { %v701_v10 = vpop.permute.xlu2 %700 }
 0x893   : > { %v703_v55 = vmul.f32 %v701_v10, %v692_v8 }
 0x895   : > { %705 = vrot.lane.b32.xlu1 %v703_v55, %s5162_s8 }
 0x8b7   : > { %v587_v12 = vpop.permute.xlu0 %586 }
 0x8b8   : > { %3975 = vmatmul.msk.bf16.vlgmr.msrb.gmra.mxu0 %vm318_vm3, %v587_v12 }
 0x8b9   : > { %1134 = vmatpush.bf16.msrb.mxu0 %v5401_v60 }
 0x907   : > { %v706_v15 = vpop.permute.xlu1 %705 }
 0x908   : > { %v5470_v16 = vadd.f32 %v706_v15, %v698_v14 }
 0x90a   : > { %4325 = vtanh.f32 %v5470_v16 }
 0x910   : > { %v4326_v17 = vpop.eup %4325 }
 0x911   : > { %711 = vrot.lane.b32.xlu2 %v4326_v17, %s5162_s8 }
 0x935   : > { %v600_v18 = vpop.f32.mrf.mxu0 }
 0x936   : > { %v605_v19 = vrot.slane %v600_v18, 6 }
 0x938   : > { %v607_v20 = vadd.f32 %v605_v19, %v5417_v9 }
 0x93a   : > { %4327 = vtanh.f32 %v607_v20  ;;  %v3976_v29 = vmul.f32 -1.442695, %v607_v20 }
 0x93c   : > { %4329 = vpow2.f32 %v3976_v29 }
 0x93d   : > { %v602_v21 = vpop.f32.mrf.mxu0 }
 0x940   : > { %v4328_v22 = vpop.eup %4327 }
 0x941   : > { %633 = vrot.lane.b32.xlu1 %v4328_v22, %s5161_s30 }
 0x942   : > { %v4330_v30 = vpop.eup %4329 }
 0x943   : > { %v611_v31 = vadd.f32 1.0, %v4330_v30 }
 0x945   : > { %4331 = vrcp.f32 %v611_v31  ;;  %v623_v38 = vand.u32 2147483648, %v611_v31  ;;  %vm617_vm12 = vweird.f32 %v611_v31  ;;  %v621_v39 = vand.u32 2147483647, %v611_v31 }
 0x947   : > { %v624_v42 = vor.u32 1.1754944e-38, %v623_v38  ;;  %vm622_vm14 = vcmp.eq.f32.partialorder %v621_v39, 8.507059e+37 }
 0x94b   : > { %v4332_v32 = vpop.eup %4331 }
 0x94c   : > { %v613_v34 = vmul.f32 %v4332_v32, %v611_v31  ;;  %vm618_vm11 = vweird.f32 %v4332_v32  ;;  %v830_v31 = vrot.slane %v5470_v16, 1 }
 0x94d   : > { %vm619_vm13 = vmor %vm617_vm12, %vm618_vm11  ;;  %vm1387_vm12 = vcmask 1042432  }
 0x94e   : > { %v614_v35 = vsub.f32 1.0, %v613_v34 }
 0x950   : > { %v615_v36 = vmul.f32 %v4332_v32, %v614_v35 }
 0x952   : > { %v616_v37 = vadd.f32 %v4332_v32, %v615_v36 }
 0x954   : > { %v620_v40 = vsel %vm619_vm13, %v4332_v32, %v616_v37 }
 0x955   : > { %v625_v43 = vsel %vm622_vm14, %v624_v42, %v620_v40 }
 0x956   : > { %v631_v49 = vmul.f32 %v629_v48, %v625_v43 }
 0x96b   : > { %v712_v23 = vpop.permute.xlu2 %711 }
 0x96c   : > { %v5476_v6 = vmul.f32 %v712_v23, %v692_v8 }
 0x96e   : > { %v780_v25 = vpack.c.bf16 %v5476_v6, %v5476_v6 }
 0x970   : > { %v782_v27 = vshrl.u32 %v780_v25, 16 }
 0x972   : > { %v784_v28 = vrot.slane %v782_v27, 2 }
 0x974   : > { %785 = vrot.lane.b32.xlu0 %v784_v28, %s5159_s4 }
 0x9b3   : > { %v634_v45 = vpop.permute.xlu1 %633 }
 0x9b4   : > { %v636_v46 = vmul.f32 %v634_v45, %v625_v43 }
 0x9b6   : > { %638 = vrot.lane.b32.xlu2 %v636_v46, %s5162_s8 }
 0x9e6   : > { %v786_v47 = vpop.permute.xlu0 %785 }
 0x9e7   : > { %3981 = vmatmul.msk.bf16.vlgmr.msrb.gmra.mxu3 %vm318_vm3, %v786_v47 }
 0x9e8   : > { %1332 = vmatpush.bf16.msrb.mxu3 %v5371_v26 }
 0xa10   : > { %v639_v41 = vpop.permute.xlu2 %638 }
 0xa11   : > { %v5485_v24 = vadd.f32 %v639_v41, %v631_v49 }
 0xa13   : > { %4333 = vtanh.f32 %v5485_v24 }
 0xa19   : > { %v4334_v51 = vpop.eup %4333 }
 0xa1a   : > { %644 = vrot.lane.b32.xlu0 %v4334_v51, %s5162_s8 }
 0xa6a   : > { %v799_v52 = vpop.f32.mrf.mxu3 }
 0xa6b   : > { %v804_v53 = vrot.slane %v799_v52, 4 }
 0xa6d   : > { %805 = vrot.lane.b32.xlu1 %v804_v53, %s5160_s28 }
 0xa72   : > { %v801_v54 = vpop.f32.mrf.mxu3 }
 0xa8c   : > { %v645_v56 = vpop.permute.xlu0 %644 }
 0xa8d   : > { %v647_v26 = vmul.f32 %v645_v56, %v625_v43  ;;  %v761_v56 = vrot.slane %v5485_v24, 7 }
 0xa8f   : > { %v715_v57 = vpack.c.bf16 %v647_v26, %v647_v26  ;;  %v5494_v58 = vsel %vm1385_vm1, %v1384_v44, %v647_v26 }
 0xa91   : > { %v717_v61 = vrot.slane %v715_v57, 1 }
 0xa93   : > { %718 = vrot.lane.b32.xlu2 %v717_v61, %s5163_s20 }
 0xadf   : > { %v806_v63 = vpop.permute.xlu1 %805 }
 0xae0   : > { %v808_v4 = vadd.f32 %v806_v63, %v5387_v33 }
 0xae2   : > { %4335 = vtanh.f32 %v808_v4  ;;  %v3982_v59 = vmul.f32 -1.442695, %v808_v4 }
 0xae4   : > { %4337 = vpow2.f32 %v3982_v59 }
 0xae8   : > { %v4336_v5 = vpop.eup %4335 }
 0xae9   : > { %834 = vrot.lane.b32.xlu0 %v4336_v5, %s5161_s30 }
 0xaea   : > { %v4338_v50 = vpop.eup %4337 }
 0xaeb   : > { %v812_v8 = vadd.f32 1.0, %v4338_v50 }
 0xaed   : > { %v719_v7 = vpop.permute.xlu2 %718  ;;  %4339 = vrcp.f32 %v812_v8  ;;  %v824_v15 = vand.u32 2147483648, %v812_v8  ;;  %vm818_vm5 = vweird.f32 %v812_v8  ;;  %v822_v17 = vand.u32 2147483647, %v812_v8 }
 0xaee   : > { %3979 = vmatmul.msk.bf16.vlgmr.msrb.gmra.mxu2 %vm318_vm3, %v719_v7 }
 0xaef   : > { %1266 = vmatpush.bf16.msrb.mxu2 %v5401_v60  ;;  %v825_v19 = vor.u32 1.1754944e-38, %v824_v15  ;;  %vm823_vm7 = vcmp.eq.f32.partialorder %v822_v17, 8.507059e+37 }
 0xaf3   : > { %v4340_v10 = vpop.eup %4339 }
 0xaf4   : > { %v814_v55 = vmul.f32 %v4340_v10, %v812_v8  ;;  %vm819_vm4 = vweird.f32 %v4340_v10 }
 0xaf5   : > { %vm820_vm6 = vmor %vm818_vm5, %vm819_vm4 }
 0xaf6   : > { %v815_v12 = vsub.f32 1.0, %v814_v55 }
 0xaf8   : > { %v816_v13 = vmul.f32 %v4340_v10, %v815_v12 }
 0xafa   : > { %v817_v14 = vadd.f32 %v4340_v10, %v816_v13 }
 0xafc   : > { %v821_v18 = vsel %vm820_vm6, %v4340_v10, %v817_v14 }
 0xafd   : > { %v826_v60 = vsel %vm823_vm7, %v825_v19, %v821_v18 }
 0xafe   : > { %v832_v34 = vmul.f32 %v830_v31, %v826_v60 }
 0xb5b   : > { %v835_v20 = vpop.permute.xlu0 %834 }
 0xb5c   : > { %v837_v21 = vmul.f32 %v835_v20, %v826_v60 }
 0xb5e   : > { %839 = vrot.lane.b32.xlu1 %v837_v21, %s5162_s8 }
 0xb71   : > { %v732_v22 = vpop.f32.mrf.mxu2 }
 0xb72   : > { %v737_v23 = vrot.slane %v732_v22, 5 }
 0xb74   : > { %v739_v25 = vadd.f32 %v737_v23, %v5417_v9 }
 0xb76   : > { %4341 = vtanh.f32 %v739_v25  ;;  %v3980_v29 = vmul.f32 -1.442695, %v739_v25 }
 0xb78   : > { %4343 = vpow2.f32 %v3980_v29 }
 0xb79   : > { %v734_v27 = vpop.f32.mrf.mxu2 }
 0xb7c   : > { %v4342_v28 = vpop.eup %4341 }
 0xb7d   : > { %765 = vrot.lane.b32.xlu1 %v4342_v28, %s5161_s30 }
 0xb7e   : > { %v4344_v30 = vpop.eup %4343 }
 0xb7f   : > { %v743_v32 = vadd.f32 1.0, %v4344_v30 }
 0xb81   : > { %4345 = vrcp.f32 %v743_v32  ;;  %v755_v45 = vand.u32 2147483648, %v743_v32  ;;  %vm749_vm9 = vweird.f32 %v743_v32  ;;  %v753_v16 = vand.u32 2147483647, %v743_v32 }
 0xb83   : > { %v756_v47 = vor.u32 1.1754944e-38, %v755_v45  ;;  %vm754_vm11 = vcmp.eq.f32.partialorder %v753_v16, 8.507059e+37 }
 0xb87   : > { %v4346_v37 = vpop.eup %4345 }
 0xb88   : > { %v745_v39 = vmul.f32 %v4346_v37, %v743_v32  ;;  %vm750_vm8 = vweird.f32 %v4346_v37 }
 0xb89   : > { %vm751_vm10 = vmor %vm749_vm9, %vm750_vm8 }
 0xb8a   : > { %v746_v40 = vsub.f32 1.0, %v745_v39 }
 0xb8c   : > { %v747_v42 = vmul.f32 %v4346_v37, %v746_v40 }
 0xb8e   : > { %v748_v43 = vadd.f32 %v4346_v37, %v747_v42 }
 0xb90   : > { %v752_v46 = vsel %vm751_vm10, %v4346_v37, %v748_v43 }
 0xb91   : > { %v757_v48 = vsel %vm754_vm11, %v756_v47, %v752_v46 }
 0xb92   : > { %v763_v26 = vmul.f32 %v761_v56, %v757_v48 }
 0xbd0   : > { %v840_v35 = vpop.permute.xlu1 %839 }
 0xbd1   : > { %v5505_v36 = vadd.f32 %v840_v35, %v832_v34 }
 0xbd3   : > { %4347 = vtanh.f32 %v5505_v36  ;;  %v964_v16 = vrot.slane %v5505_v36, 1 }
 0xbd9   : > { %v4348_v38 = vpop.eup %4347 }
 0xbda   : > { %845 = vrot.lane.b32.xlu2 %v4348_v38, %s5162_s8 }
 0xbef   : > { %v766_v49 = vpop.permute.xlu1 %765 }
 0xbf0   : > { %v768_v41 = vmul.f32 %v766_v49, %v757_v48 }
 0xbf2   : > { %770 = vrot.lane.b32.xlu2 %v768_v41, %s5162_s8 }
 0xc34   : > { %v846_v51 = vpop.permute.xlu2 %845 }
 0xc35   : > { %v5510_v52 = vmul.f32 %v846_v51, %v826_v60 }
 0xc37   : > { %v916_v53 = vpack.c.bf16 %v5510_v52, %v5510_v52 }
 0xc39   : > { %v918_v54 = vrot.slane %v916_v53, 2 }
 0xc3b   : > { %919 = vrot.lane.b32.xlu0 %v918_v54, %s5159_s4 }
 0xc4c   : > { %v771_v44 = vpop.permute.xlu2 %770 }
 0xc4d   : > { %v5516_v57 = vadd.f32 %v771_v44, %v763_v26 }
 0xc4f   : > { %4349 = vtanh.f32 %v5516_v57 }
 0xc55   : > { %v4350_v61 = vpop.eup %4349 }
 0xc56   : > { %776 = vrot.lane.b32.xlu0 %v4350_v61, %s5162_s8 }
 0xcad   : > { %v920_v63 = vpop.permute.xlu0 %919 }
 0xcae   : > { %3985 = vmatmul.msk.bf16.vlgmr.msra.gmra.mxu1 %vm318_vm3, %v920_v63 }
 0xcc8   : > { %v777_v4 = vpop.permute.xlu0 %776 }
 0xcc9   : > { %v779_v5 = vmul.f32 %v777_v4, %v757_v48 }
 0xccb   : > { %v849_v7 = vpack.c.bf16 %v779_v5, %v779_v5  ;;  %v5523_v59 = vsel %vm1387_vm12, %v5494_v58, %v779_v5 }
 0xccd   : > { %v851_v24 = vshrl.u32 %v849_v7, 16 }
 0xccf   : > { %v853_v50 = vrot.slane %v851_v24, 1  ;;  %v897_v24 = vrot.slane %v5516_v57, 7 }
 0xcd1   : > { %854 = vrot.lane.b32.xlu1 %v853_v50, %s5163_s20 }
 0xd2b   : > { %v933_v8 = vpop.f32.mrf.mxu1 }
 0xd2c   : > { %v938_v10 = vrot.slane %v933_v8, 5 }
 0xd2e   : > { %939 = vrot.lane.b32.xlu2 %v938_v10, %s5160_s28 }
 0xd33   : > { %v935_v55 = vpop.f32.mrf.mxu1 }
 0xd43   : > { %v855_v12 = vpop.permute.xlu1 %854 }
 0xd44   : > { %3983 = vmatmul.msk.bf16.vlgmr.msra.gmra.mxu0 %vm318_vm3, %v855_v12 }
 0xd88   : > { %v940_v13 = vpop.permute.xlu2 %939 }
 0xd89   : > { %v942_v14 = vadd.f32 %v940_v13, %v5387_v33 }
 0xd8b   : > { %4351 = vtanh.f32 %v942_v14  ;;  %v3986_v60 = vmul.f32 -1.442695, %v942_v14 }
 0xd91   : > { %v4352_v15 = vpop.eup %4351 }
 0xd92   : > { %968 = vrot.lane.b32.xlu0 %v4352_v15, %s5161_s30 }
 0xdc1   : > { %v868_v58 = vpop.f32.mrf.mxu0 }
 0xdc2   : > { %v873_v17 = vrot.slane %v868_v58, 4 }
 0xdc4   : > { %v875_v18 = vadd.f32 %v873_v17, %v5417_v9 }
 0xdc6   : > { %4353 = vtanh.f32 %v875_v18  ;;  %v3984_v39 = vmul.f32 -1.442695, %v875_v18 }
 0xdc7   : > { %4355 = vpow2.f32 %v3986_v60 }
 0xdc9   : > { %v870_v19 = vpop.f32.mrf.mxu0 }
 0xdcc   : > { %v4354_v20 = vpop.eup %4353 }
 0xdcd   : > { %901 = vrot.lane.b32.xlu0 %v4354_v20, %s5161_s30  ;;  %v4356_v21 = vpop.eup %4355 }
 0xdce   : > { %v946_v22 = vadd.f32 1.0, %v4356_v21 }
 0xdd0   : > { %4357 = vrcp.f32 %v946_v22  ;;  %v958_v30 = vand.u32 2147483648, %v946_v22  ;;  %vm952_vm14 = vweird.f32 %v946_v22  ;;  %v956_v31 = vand.u32 2147483647, %v946_v22 }
 0xdd1   : > { %4359 = vpow2.f32 %v3984_v39 }
 0xdd2   : > { %v959_v34 = vor.u32 1.1754944e-38, %v958_v30  ;;  %vm957_vm5 = vcmp.eq.f32.partialorder %v956_v31, 8.507059e+37 }
 0xdd6   : > { %v4358_v23 = vpop.eup %4357 }
 0xdd7   : > { %v948_v25 = vmul.f32 %v4358_v23, %v946_v22  ;;  %vm953_vm13 = vweird.f32 %v4358_v23  ;;  %v4360_v40 = vpop.eup %4359 }
 0xdd8   : > { %vm954_vm4 = vmor %vm952_vm14, %vm953_vm13  ;;  %v879_v42 = vadd.f32 1.0, %v4360_v40 }
 0xdd9   : > { %v949_v27 = vsub.f32 1.0, %v948_v25 }
 0xdda   : > { %4361 = vrcp.f32 %v879_v42  ;;  %v891_v54 = vand.u32 2147483648, %v879_v42  ;;  %vm885_vm7 = vweird.f32 %v879_v42  ;;  %v889_v56 = vand.u32 2147483647, %v879_v42 }
 0xddb   : > { %v950_v28 = vmul.f32 %v4358_v23, %v949_v27 }
 0xddc   : > { %v892_v44 = vor.u32 1.1754944e-38, %v891_v54  ;;  %vm890_vm9 = vcmp.eq.f32.partialorder %v889_v56, 8.507059e+37 }
 0xddd   : > { %v951_v29 = vadd.f32 %v4358_v23, %v950_v28 }
 0xddf   : > { %v955_v32 = vsel %vm954_vm4, %v4358_v23, %v951_v29 }
 0xde0   : > { %v960_v37 = vsel %vm957_vm5, %v959_v34, %v955_v32  ;;  %v4362_v43 = vpop.eup %4361 }
 0xde1   : > { %v881_v45 = vmul.f32 %v4362_v43, %v879_v42  ;;  %v966_v46 = vmul.f32 %v964_v16, %v960_v37  ;;  %vm886_vm6 = vweird.f32 %v4362_v43 }
 0xde2   : > { %vm887_vm8 = vmor %vm885_vm7, %vm886_vm6 }
 0xde3   : > { %v882_v47 = vsub.f32 1.0, %v881_v45 }
 0xde5   : > { %v883_v41 = vmul.f32 %v4362_v43, %v882_v47 }
 0xde7   : > { %v884_v51 = vadd.f32 %v4362_v43, %v883_v41 }
 0xde9   : > { %v888_v26 = vsel %vm887_vm8, %v4362_v43, %v884_v51  ;;  %vm1390_vm8 = vcmask 1044480  }
 0xdea   : > { %v893_v61 = vsel %vm890_vm9, %v892_v44, %v888_v26 }
 0xdeb   : > { %v899_v10 = vmul.f32 %v897_v24, %v893_v61 }
 0xe04   : > { %v969_v35 = vpop.permute.xlu0 %968 }
 0xe05   : > { %v971_v38 = vmul.f32 %v969_v35, %v960_v37 }
 0xe07   : > { %973 = vrot.lane.b32.xlu1 %v971_v38, %s5162_s8 }
 0xe3f   : > { %v902_v36 = vpop.permute.xlu0 %901 }
 0xe40   : > { %v904_v63 = vmul.f32 %v902_v36, %v893_v61 }
 0xe79   : > { %v974_v48 = vpop.permute.xlu1 %973 }
 0xe7a   : > { %v5534_v49 = vadd.f32 %v974_v48, %v966_v46 }
 0xe7c   : > { %4363 = vtanh.f32 %v5534_v49 }
 0xe82   : > { %v4364_v53 = vpop.eup %4363 }
 0xe83   : > { %979 = vrot.lane.b32.xlu2 %v4364_v53, %s5162_s8 }
 0xe8b   : > { %906 = vrot.lane.b32.xlu2 %v904_v63, %s5162_s8 }
 0xedd   : > { %v980_v4 = vpop.permute.xlu2 %979 }
 0xede   : > { %v5539_v5 = vmul.f32 %v980_v4, %v960_v37 }
 0xee0   : > { %v1048_v7 = vpack.c.bf16 %v5539_v5, %v5539_v5 }
 0xee2   : > { %v1050_v50 = vshrl.u32 %v1048_v7, 16 }
 0xee4   : > { %v1052_v8 = vrot.slane %v1050_v50, 1 }
 0xee5   : > { %v907_v55 = vpop.permute.xlu2 %906 }
 0xee6   : > { %v5544_v12 = vadd.f32 %v907_v55, %v899_v10  ;;  %1053 = vrot.lane.b32.xlu1 %v1052_v8, %s5159_s4  ;;  %v1098_v10 = vrot.slane %v5534_v49, 1 }
 0xee8   : > { %4365 = vtanh.f32 %v5544_v12 }
 0xeee   : > { %v4366_v13 = vpop.eup %4365 }
 0xeef   : > { %912 = vrot.lane.b32.xlu0 %v4366_v13, %s5162_s8 }
 0xf58   : > { %v1054_v14 = vpop.permute.xlu1 %1053 }
 0xf59   : > { %3989 = vmatmul.msk.bf16.vlgmr.msra.gmra.mxu3 %vm318_vm3, %v1054_v14 }
 0xf61   : > { %v913_v15 = vpop.permute.xlu0 %912 }
 0xf62   : > { %v915_v58 = vmul.f32 %v913_v15, %v893_v61 }
 0xf64   : > { %v983_v17 = vpack.c.bf16 %v915_v58, %v915_v58  ;;  %v5552_v57 = vsel %vm213_vm0, %v5523_v59, %v915_v58  ;;  %v1029_v58 = vrot.slane %v5544_v12, 7 }
 0xf66   : > { %v985_v18 = vrot.slane %v983_v17, 2 }
 0xf68   : > { %986 = vrot.lane.b32.xlu1 %v985_v18, %s5163_s20 }
 0xfda   : > { %v987_v19 = vpop.permute.xlu1 %986 }
 0xfdb   : > { %3987 = vmatmul.msk.bf16.vlgmr.msra.gmra.mxu2 %vm318_vm3, %v987_v19 }
 0xfdc   : > { %v1067_v20 = vpop.f32.mrf.mxu3 }
 0xfdd   : > { %v1072_v60 = vrot.slane %v1067_v20, 6 }
 0xfdf   : > { %1073 = vrot.lane.b32.xlu2 %v1072_v60, %s5160_s28 }
 0xfe4   : > { %v1069_v21 = vpop.f32.mrf.mxu3 }
0x1039   : > { %v1074_v22 = vpop.permute.xlu2 %1073 }
0x103a   : > { %v1076_v23 = vadd.f32 %v1074_v22, %v5387_v33 }
0x103c   : > { %4367 = vtanh.f32 %v1076_v23  ;;  %v3990_v31 = vmul.f32 -1.442695, %v1076_v23 }
0x1042   : > { %v4368_v25 = vpop.eup %4367 }
0x1043   : > { %1102 = vrot.lane.b32.xlu0 %v4368_v25, %s5161_s30 }
0x105e   : > { %v1000_v59 = vpop.f32.mrf.mxu2 }
0x105f   : > { %v1005_v27 = vrot.slane %v1000_v59, 3 }
0x1061   : > { %v1007_v28 = vadd.f32 %v1005_v27, %v5417_v9 }
0x1063   : > { %4369 = vtanh.f32 %v1007_v28  ;;  %v3988_v35 = vmul.f32 -1.442695, %v1007_v28 }
0x1064   : > { %4371 = vpow2.f32 %v3990_v31 }
0x1066   : > { %v1002_v29 = vpop.f32.mrf.mxu2 }
0x1069   : > { %v4370_v30 = vpop.eup %4369 }
0x106a   : > { %1033 = vrot.lane.b32.xlu2 %v4370_v30, %s5161_s30  ;;  %v4372_v32 = vpop.eup %4371 }
0x106b   : > { %v1080_v34 = vadd.f32 1.0, %v4372_v32 }
0x106d   : > { %4373 = vrcp.f32 %v1080_v34  ;;  %v1092_v46 = vand.u32 2147483648, %v1080_v34  ;;  %vm1086_vm11 = vweird.f32 %v1080_v34  ;;  %v1090_v47 = vand.u32 2147483647, %v1080_v34 }
0x106e   : > { %4375 = vpow2.f32 %v3988_v35 }
0x106f   : > { %v1093_v51 = vor.u32 1.1754944e-38, %v1092_v46  ;;  %vm1091_vm14 = vcmp.eq.f32.partialorder %v1090_v47, 8.507059e+37 }
0x1073   : > { %v4374_v37 = vpop.eup %4373 }
0x1074   : > { %v4376_v38 = vpop.eup %4375  ;;  %v1082_v39 = vmul.f32 %v4374_v37, %v1080_v34  ;;  %vm1087_vm10 = vweird.f32 %v4374_v37 }
0x1075   : > { %v1011_v40 = vadd.f32 1.0, %v4376_v38  ;;  %vm1088_vm13 = vmor %vm1086_vm11, %vm1087_vm10 }
0x1076   : > { %v1083_v42 = vsub.f32 1.0, %v1082_v39 }
0x1077   : > { %4377 = vrcp.f32 %v1011_v40  ;;  %v1023_v61 = vand.u32 2147483648, %v1011_v40  ;;  %vm1017_vm5 = vweird.f32 %v1011_v40  ;;  %v1021_v63 = vand.u32 2147483647, %v1011_v40 }
0x1078   : > { %v1084_v43 = vmul.f32 %v4374_v37, %v1083_v42 }
0x1079   : > { %v1024_v7 = vor.u32 1.1754944e-38, %v1023_v61  ;;  %vm1022_vm7 = vcmp.eq.f32.partialorder %v1021_v63, 8.507059e+37 }
0x107a   : > { %v1085_v16 = vadd.f32 %v4374_v37, %v1084_v43 }
0x107c   : > { %v1089_v41 = vsel %vm1088_vm13, %v4374_v37, %v1085_v16 }
0x107d   : > { %v4378_v45 = vpop.eup %4377  ;;  %v1094_v54 = vsel %vm1091_vm14, %v1093_v51, %v1089_v41 }
0x107e   : > { %v1013_v48 = vmul.f32 %v4378_v45, %v1011_v40  ;;  %vm1018_vm4 = vweird.f32 %v4378_v45  ;;  %v1100_v55 = vmul.f32 %v1098_v10, %v1094_v54 }
0x107f   : > { %vm1019_vm6 = vmor %vm1017_vm5, %vm1018_vm4 }
0x1080   : > { %v1014_v56 = vsub.f32 1.0, %v1013_v48 }
0x1082   : > { %v1015_v44 = vmul.f32 %v4378_v45, %v1014_v56 }
0x1084   : > { %v1016_v36 = vadd.f32 %v4378_v45, %v1015_v44 }
0x1086   : > { %v1020_v4 = vsel %vm1019_vm6, %v4378_v45, %v1016_v36 }
0x1087   : > { %v1025_v24 = vsel %vm1022_vm7, %v1024_v7, %v1020_v4  ;;  %vm1392_vm7 = vcmask 1045504  }
0x1088   : > { %v1031_v17 = vmul.f32 %v1029_v58, %v1025_v24 }
0x10b5   : > { %v1103_v53 = vpop.permute.xlu0 %1102 }
0x10b6   : > { %v1105_v26 = vmul.f32 %v1103_v53, %v1094_v54 }
0x10b8   : > { %1107 = vrot.lane.b32.xlu1 %v1105_v26, %s5162_s8 }
0x10c4   : > { %v1034_v50 = vpop.permute.xlu2 %1033 }
0x10c5   : > { %v1036_v8 = vmul.f32 %v1034_v50, %v1025_v24 }
0x10c7   : > { %1038 = vrot.lane.b32.xlu1 %v1036_v8, %s5162_s8 }
0x112a   : > { %v1108_v13 = vpop.permute.xlu1 %1107 }
0x112b   : > { %v5564_v14 = vadd.f32 %v1108_v13, %v1100_v55 }
0x112d   : > { %4379 = vtanh.f32 %v5564_v14 }
0x1133   : > { %v4380_v15 = vpop.eup %4379 }
0x1134   : > { %1113 = vrot.lane.b32.xlu0 %v4380_v15, %s5162_s8 }
0x1139   : > { %v1039_v18 = vpop.permute.xlu1 %1038 }
0x113a   : > { %v5569_v19 = vadd.f32 %v1039_v18, %v1031_v17 }
0x113c   : > { %4381 = vtanh.f32 %v5569_v19 }
0x1142   : > { %v4382_v20 = vpop.eup %4381 }
0x1143   : > { %1044 = vrot.lane.b32.xlu0 %v4382_v20, %s5162_s8 }
0x11a6   : > { %v1114_v49 = vpop.permute.xlu0 %1113 }
0x11a7   : > { %v5573_v60 = vmul.f32 %v1114_v49, %v1094_v54 }
0x11a9   : > { %v1184_v21 = vpack.c.bf16 %v5573_v60, %v5573_v60 }
0x11ab   : > { %v1186_v22 = vrot.slane %v1184_v21, 1 }
0x11ad   : > { %1187 = vrot.lane.b32.xlu2 %v1186_v22, %s5159_s4  ;;  %v1165_v22 = vrot.slane %v5569_v19, 7 }
0x11b5   : > { %v1045_v12 = vpop.permute.xlu0 %1044 }
0x11b6   : > { %v1047_v23 = vmul.f32 %v1045_v12, %v1025_v24 }
0x11b8   : > { %v1117_v25 = vpack.c.bf16 %v1047_v23, %v1047_v23  ;;  %v5580_v59 = vsel %vm1390_vm8, %v5552_v57, %v1047_v23 }
0x11ba   : > { %v1119_v27 = vshrl.u32 %v1117_v25, 16 }
0x11bc   : > { %v1121_v28 = vrot.slane %v1119_v27, 2 }
0x11be   : > { %1122 = vrot.lane.b32.xlu1 %v1121_v28, %s5163_s20  ;;  %v1232_v28 = vrot.slane %v5564_v14, 1 }
0x1207   : > { %v1188_v29 = vpop.permute.xlu2 %1187 }
0x1208   : > { %3993 = vmatmul.msk.bf16.vlgmr.msrb.gmra.mxu1 %vm318_vm3, %v1188_v29 }
0x1230   : > { %v1123_v30 = vpop.permute.xlu1 %1122 }
0x1231   : > { %3991 = vmatmul.msk.bf16.vlgmr.msrb.gmra.mxu0 %vm318_vm3, %v1123_v30 }
0x1285   : > { %v1201_v31 = vpop.f32.mrf.mxu1 }
0x1286   : > { %v1206_v32 = vrot.slane %v1201_v31, 7 }
0x1288   : > { %1207 = vrot.lane.b32.xlu2 %v1206_v32, %s5160_s28 }
0x128d   : > { %v1203_v34 = vpop.f32.mrf.mxu1 }
0x12ae   : > { %v1136_v35 = vpop.f32.mrf.mxu0 }
0x12af   : > { %v1141_v37 = vrot.slane %v1136_v35, 2 }
0x12b1   : > { %v1143_v57 = vadd.f32 %v1141_v37, %v5417_v9 }
0x12b3   : > { %4383 = vtanh.f32 %v1143_v57  ;;  %v3992_v43 = vmul.f32 -1.442695, %v1143_v57 }
0x12b6   : > { %v1138_v38 = vpop.f32.mrf.mxu0 }
0x12b9   : > { %v4384_v39 = vpop.eup %4383 }
0x12ba   : > { %1169 = vrot.lane.b32.xlu2 %v4384_v39, %s5161_s30 }
0x12e2   : > { %v1208_v40 = vpop.permute.xlu2 %1207 }
0x12e3   : > { %v1210_v42 = vadd.f32 %v1208_v40, %v5387_v33 }
0x12e5   : > { %4385 = vtanh.f32 %v1210_v42  ;;  %v3994_v4 = vmul.f32 -1.442695, %v1210_v42 }
0x12e6   : > { %4387 = vpow2.f32 %v3992_v43 }
0x12eb   : > { %v4386_v45 = vpop.eup %4385 }
0x12ec   : > { %1236 = vrot.lane.b32.xlu0 %v4386_v45, %s5161_s30  ;;  %v4388_v16 = vpop.eup %4387 }
0x12ed   : > { %v1147_v46 = vadd.f32 1.0, %v4388_v16 }
0x12ef   : > { %4389 = vrcp.f32 %v1147_v46  ;;  %v1159_v54 = vand.u32 2147483648, %v1147_v46  ;;  %vm1153_vm10 = vweird.f32 %v1147_v46  ;;  %v1157_v56 = vand.u32 2147483647, %v1147_v46 }
0x12f0   : > { %4391 = vpow2.f32 %v3994_v4 }
0x12f1   : > { %v1160_v44 = vor.u32 1.1754944e-38, %v1159_v54  ;;  %vm1158_vm13 = vcmp.eq.f32.partialorder %v1157_v56, 8.507059e+37 }
0x12f5   : > { %v4390_v47 = vpop.eup %4389 }
0x12f6   : > { %v1149_v48 = vmul.f32 %v4390_v47, %v1147_v46  ;;  %vm1154_vm9 = vweird.f32 %v4390_v47  ;;  %v4392_v7 = vpop.eup %4391 }
0x12f7   : > { %vm1155_vm11 = vmor %vm1153_vm10, %vm1154_vm9  ;;  %v1214_v24 = vadd.f32 1.0, %v4392_v7 }
0x12f8   : > { %v1150_v41 = vsub.f32 1.0, %v1149_v48 }
0x12f9   : > { %4393 = vrcp.f32 %v1214_v24  ;;  %v1226_v15 = vand.u32 2147483648, %v1214_v24  ;;  %vm1220_vm4 = vweird.f32 %v1214_v24  ;;  %v1224_v58 = vand.u32 2147483647, %v1214_v24 }
0x12fa   : > { %v1151_v51 = vmul.f32 %v4390_v47, %v1150_v41 }
0x12fb   : > { %v1227_v18 = vor.u32 1.1754944e-38, %v1226_v15  ;;  %vm1225_vm6 = vcmp.eq.f32.partialorder %v1224_v58, 8.507059e+37 }
0x12fc   : > { %v1152_v53 = vadd.f32 %v4390_v47, %v1151_v51 }
0x12fe   : > { %v1156_v26 = vsel %vm1155_vm11, %v4390_v47, %v1152_v53 }
0x12ff   : > { %v1161_v36 = vsel %vm1158_vm13, %v1160_v44, %v1156_v26  ;;  %v4394_v50 = vpop.eup %4393 }
0x1300   : > { %v1216_v8 = vmul.f32 %v4394_v50, %v1214_v24  ;;  %vm1221_vm14 = vweird.f32 %v4394_v50  ;;  %v1167_v12 = vmul.f32 %v1165_v22, %v1161_v36 }
0x1301   : > { %vm1222_vm5 = vmor %vm1220_vm4, %vm1221_vm14 }
0x1302   : > { %v1217_v10 = vsub.f32 1.0, %v1216_v8 }
0x1304   : > { %v1218_v55 = vmul.f32 %v4394_v50, %v1217_v10 }
0x1306   : > { %v1219_v13 = vadd.f32 %v4394_v50, %v1218_v55 }
0x1308   : > { %v1223_v17 = vsel %vm1222_vm5, %v4394_v50, %v1219_v13 }
0x1309   : > { %v1228_v49 = vsel %vm1225_vm6, %v1227_v18, %v1223_v17 }
0x130a   : > { %v1234_v29 = vmul.f32 %v1232_v28, %v1228_v49 }
0x1314   : > { %v1170_v61 = vpop.permute.xlu2 %1169 }
0x1315   : > { %v1172_v63 = vmul.f32 %v1170_v61, %v1161_v36 }
0x1317   : > { %1174 = vrot.lane.b32.xlu0 %v1172_v63, %s5162_s8 }
0x135e   : > { %v1237_v20 = vpop.permute.xlu0 %1236 }
0x135f   : > { %v1239_v21 = vmul.f32 %v1237_v20, %v1228_v49 }
0x1361   : > { %1241 = vrot.lane.b32.xlu1 %v1239_v21, %s5162_s8 }
0x1389   : > { %v1175_v23 = vpop.permute.xlu0 %1174 }
0x138a   : > { %v5593_v25 = vadd.f32 %v1175_v23, %v1167_v12 }
0x138c   : > { %4395 = vtanh.f32 %v5593_v25 }
0x1392   : > { %v4396_v27 = vpop.eup %4395 }
0x1393   : > { %1180 = vrot.lane.b32.xlu2 %v4396_v27, %s5162_s8 }
0x13d3   : > { %v1242_v30 = vpop.permute.xlu1 %1241 }
0x13d4   : > { %v5598_v31 = vadd.f32 %v1242_v30, %v1234_v29 }
0x13d6   : > { %4397 = vtanh.f32 %v5598_v31 }
0x13dc   : > { %v4398_v32 = vpop.eup %4397 }
0x13dd   : > { %1247 = vrot.lane.b32.xlu1 %v4398_v32, %s5162_s8  ;;  %v1297_v32 = vrot.slane %v5593_v25, 7 }
0x13ed   : > { %v1181_v19 = vpop.permute.xlu2 %1180 }
0x13ee   : > { %v1183_v34 = vmul.f32 %v1181_v19, %v1161_v36 }
0x13f0   : > { %v1251_v35 = vpack.c.bf16 %v1183_v34, %v1183_v34  ;;  %v5604_v37 = vsel %vm1392_vm7, %v5580_v59, %v1183_v34 }
0x13f2   : > { %v1253_v57 = vrot.slane %v1251_v35, 3 }
0x13f4   : > { %1254 = vrot.lane.b32.xlu1 %v1253_v57, %s5163_s20  ;;  %v1364_v57 = vrot.slane %v5598_v31, 1 }
0x144f   : > { %v1248_v14 = vpop.permute.xlu1 %1247 }
0x1450   : > { %v5607_v38 = vmul.f32 %v1248_v14, %v1228_v49 }
0x1452   : > { %v1316_v39 = vpack.c.bf16 %v5607_v38, %v5607_v38 }
0x1454   : > { %v1318_v40 = vshrl.u32 %v1316_v39, 16 }
0x1456   : > { %1320 = vrot.lane.b32.xlu0 %v1318_v40, %s5159_s4 }
0x1466   : > { %v1255_v42 = vpop.permute.xlu1 %1254 }
0x1467   : > { %3995 = vmatmul.msk.bf16.vlgmr.msrb.gmra.mxu2 %vm318_vm3, %v1255_v42 }
0x14c8   : > { %v1321_v43 = vpop.permute.xlu0 %1320 }
0x14c9   : > { %3997 = vmatmul.msk.bf16.vlgmr.msrb.gmra.mxu3 %vm318_vm3, %v1321_v43 }
0x14ea   : > { %v1268_v59 = vpop.f32.mrf.mxu2 }
0x14eb   : > { %v1273_v45 = vrot.slane %v1268_v59, 1 }
0x14ed   : > { %v1275_v16 = vadd.f32 %v1273_v45, %v5417_v9 }
0x14ef   : > { %4399 = vtanh.f32 %v1275_v16  ;;  %v3996_v51 = vmul.f32 -1.442695, %v1275_v16 }
0x14f1   : > { %4401 = vpow2.f32 %v3996_v51  ;;  %v5661_v51 = vld [vmem:[#allocation12] sm:$0xf0] (%p284_p0) }
0x14f2   : > { %v1270_v46 = vpop.f32.mrf.mxu2 }
0x14f5   : > { %v4400_v47 = vpop.eup %4399 }
0x14f6   : > { %1301 = vrot.lane.b32.xlu1 %v4400_v47, %s5161_s30 }
0x14f7   : > { %v4402_v53 = vpop.eup %4401 }
0x14f8   : > { %v1279_v54 = vadd.f32 1.0, %v4402_v53  ;;  %v5663_v53 = vld [vmem:[#allocation14] sm:$0xf] (%p284_p0) }
0x14fa   : > { %4403 = vrcp.f32 %v1279_v54  ;;  %v1291_v7 = vand.u32 2147483648, %v1279_v54  ;;  %vm1285_vm10 = vweird.f32 %v1279_v54  ;;  %v1289_v24 = vand.u32 2147483647, %v1279_v54 }
0x14fc   : > { %v1292_v10 = vor.u32 1.1754944e-38, %v1291_v7  ;;  %vm1290_vm13 = vcmp.eq.f32.partialorder %v1289_v24, 8.507059e+37 }
0x1500   : > { %v4404_v56 = vpop.eup %4403 }
0x1501   : > { %v1281_v26 = vmul.f32 %v4404_v56, %v1279_v54  ;;  %vm1286_vm9 = vweird.f32 %v4404_v56  ;;  %v5665_v54 = vld [vmem:[#allocation14] sm:$0xf0] (%p284_p0) }
0x1502   : > { %vm1287_vm11 = vmor %vm1285_vm10, %vm1286_vm9  ;;  %vm1394_vm9 = vcmask 1046528   ;;  %vm1414_vm10 = vcmask 261248  }
0x1503   : > { %v1282_v44 = vsub.f32 1.0, %v1281_v26 }
0x1505   : > { %v1283_v61 = vmul.f32 %v4404_v56, %v1282_v44  ;;  %v5669_v44 = vmov (%p284_p0), 0.0  }
0x1507   : > { %v1284_v63 = vadd.f32 %v4404_v56, %v1283_v61 }
0x1509   : > { %v1288_v50 = vsel %vm1287_vm11, %v4404_v56, %v1284_v63  ;;  %v4415_v56 = vld [vmem:[#allocation15] ss:$0 sm:$0xff] (%p284_p0) }
0x150a   : > { %v1293_v55 = vsel %vm1290_vm13, %v1292_v10, %v1288_v50 }
0x150b   : > { %v1299_v19 = vmul.f32 %v1297_v32, %v1293_v55 }
0x154c   : > { %v1334_v48 = vpop.f32.mrf.mxu3 }
0x154d   : > { %1339 = vrot.lane.b32.xlu2 %v1334_v48, %s5160_s28 }
0x1554   : > { %v1336_v41 = vpop.f32.mrf.mxu3 }
0x1568   : > { %v1302_v8 = vpop.permute.xlu1 %1301 }
0x1569   : > { %v1304_v13 = vmul.f32 %v1302_v8, %v1293_v55 }
0x15a7   : > { %v1340_v36 = vpop.permute.xlu2 %1339 }
0x15a8   : > { %v1342_v9 = vadd.f32 %v1340_v36, %v5387_v33  ;;  %v5671_v36 = vmov (%p284_p0), 0.0  }
0x15aa   : > { %4405 = vtanh.f32 %v1342_v9  ;;  %v3998_v33 = vmul.f32 -1.442695, %v1342_v9  ;;  %v5673_v9 = vmov (%p284_p0), 0.0  }
0x15ac   : > { %4407 = vpow2.f32 %v3998_v33 }
0x15b0   : > { %v4406_v4 = vpop.eup %4405 }
0x15b1   : > { %1368 = vrot.lane.b32.xlu0 %v4406_v4, %s5161_s30 }
0x15b2   : > { %v4408_v15 = vpop.eup %4407 }
0x15b3   : > { %v1346_v58 = vadd.f32 1.0, %v4408_v15 }
0x15b5   : > { %4409 = vrcp.f32 %v1346_v58  ;;  %v1358_v22 = vand.u32 2147483648, %v1346_v58  ;;  %vm1352_vm4 = vweird.f32 %v1346_v58  ;;  %v1356_v12 = vand.u32 2147483647, %v1346_v58 }
0x15b7   : > { %v1359_v27 = vor.u32 1.1754944e-38, %v1358_v22  ;;  %vm1357_vm6 = vcmp.eq.f32.partialorder %v1356_v12, 8.507059e+37 }
0x15b9   : > { %1306 = vrot.lane.b32.xlu0 %v1304_v13, %s5162_s8 }
0x15bb   : > { %v4410_v17 = vpop.eup %4409 }
0x15bc   : > { %v1348_v18 = vmul.f32 %v4410_v17, %v1346_v58  ;;  %vm1353_vm14 = vweird.f32 %v4410_v17 }
0x15bd   : > { %vm1354_vm5 = vmor %vm1352_vm4, %vm1353_vm14 }
0x15be   : > { %v1349_v20 = vsub.f32 1.0, %v1348_v18 }
0x15c0   : > { %v1350_v49 = vmul.f32 %v4410_v17, %v1349_v20 }
0x15c2   : > { %v1351_v21 = vadd.f32 %v4410_v17, %v1350_v49 }
0x15c4   : > { %v1355_v23 = vsel %vm1354_vm5, %v4410_v17, %v1351_v21 }
0x15c5   : > { %v1360_v29 = vsel %vm1357_vm6, %v1359_v27, %v1355_v23 }
0x15c6   : > { %v1366_v14 = vmul.f32 %v1364_v57, %v1360_v29 }
0x1623   : > { %v1369_v28 = vpop.permute.xlu0 %1368 }
0x1624   : > { %v1371_v30 = vmul.f32 %v1369_v28, %v1360_v29 }
0x1626   : > { %1373 = vrot.lane.b32.xlu2 %v1371_v30, %s5162_s8 }
0x162b   : > { %v1307_v34 = vpop.permute.xlu0 %1306 }
0x162c   : > { %v1309_v24 = vadd.f32 %v1307_v34, %v1299_v19  }
0x162e   : > { %4411 = vtanh.f32 %v1309_v24 }
0x1634   : > { %v4412_v35 = vpop.eup %4411 }
0x1635   : > { %1312 = vrot.lane.b32.xlu2 %v4412_v35, %s5162_s8 }
0x1680   : > { %v1374_v39 = vpop.permute.xlu2 %1373 }
0x1681   : > { %v1376_v22 = vadd.f32 %v1374_v39, %v1366_v14  }
0x1683   : > { %4413 = vtanh.f32 %v1376_v22 }
0x1689   : > { %v4414_v40 = vpop.eup %4413 }
0x168a   : > { %1379 = vrot.lane.b32.xlu1 %v4414_v40, %s5162_s8 }
0x168f   : > { %v1313_v42 = vpop.permute.xlu2 %1312 }
0x1690   : > { %v1315_v25 = vmul.f32 %v1313_v42, %v1293_v55  }
0x1692   : > { %v1395_v43 = vsel %vm1394_vm9, %v5604_v37, %v1315_v25 }
0x1693   : > { %1404 = vrot.lane.b32.xlu0 %v1395_v43, %s5163_s20 }
0x16fc   : > { %v1380_v59 = vpop.permute.xlu1 %1379 }
0x16fd   : > { %v1382_v23 = vmul.f32 %v1380_v59, %v1360_v29  }
0x16ff   : > { %v1396_v31 = vsel %vm1383_vm15, %v1382_v23, %v5607_v38  ;;  %v5659_v38 = vld [vmem:[#allocation12] sm:$0xf] (%p284_p0) }
0x1700   : > { %v1397_v45 = vsel %vm1385_vm1, %v1396_v31, %v5573_v60 }
0x1701   : > { %v1398_v16 = vsel %vm1387_vm12, %v1397_v45, %v5539_v5 }
0x1702   : > { %v1399_v46 = vsel %vm213_vm0, %v1398_v16, %v5510_v52 }
0x1703   : > { %v1400_v37 = vsel %vm1390_vm8, %v1399_v46, %v5476_v6 }
0x1704   : > { %v1401_v47 = vsel %vm1392_vm7, %v1400_v37, %v5443_v11  ;;  %v4107_v11 = vld [vmem:[#allocation11] sm:$0xff] (%p284_p0) }
0x1705   : > { %v1405_v48 = vpop.permute.xlu0 %1404  ;;  %v1402_v41 = vsel %vm1394_vm9, %v1401_v47, %v5407_v62  ;;  %v4108_v62 = vld [vmem:[#allocation11 + $0x8] sm:$0xff] (%p284_p0) }
0x1706   : > { %1408 = vst.msk [vmem:[%s1407_s23] sm:$0xff] %vm318_vm3, %v1405_v48  ;;  %1410 = vrot.lane.b32.xlu1 %v1402_v41, %s5164_s11  ;;  %1448 = vmatpush.bf16.msra.mxu0 (%p284_p0), %v4108_v62 }
0x170a   :  { %1449 = vmatpush.bf16.msra.mxu0 (%p284_p0), %v4107_v11 }
0x1775   :  { %286 = sbr.rel (!%p284_p0) target bundleno = 340 (0x154), region = 175 }
0x1778   : > { %v1411_v5 = vpop.permute.xlu1 %1410 }
0x1779   : > { %1415 = vst.msk [vmem:[%s1413_s12] sm:$0xff] %vm1414_vm10, %v1411_v5 }
0x1780   :  { %v1416_v6 = vld [vmem:[#allocation21] sm:$0xff]  ;;  %v1417_v52 = vld [vmem:[#allocation21 + $0x8] sm:$0xff] }
0x1781   :  { %v1418_v60 = vpack.c.bf16 %v1417_v52, %v1416_v6 }
0x1783   :  { %4007 = vmatmul.msk.bf16.vlgmr.msra.gmra.mxu0 %vm6332_vm2, %v1418_v60 }
0x1800   :  { %v1451_v25 = vpop.f32.mrf.mxu0 }
0x1801   :  { %v1452_v0 = vadd.f32 %v4415_v56, %v1451_v25 }
0x1808   :  { %v1453_v26 = vpop.f32.mrf.mxu0 }
0x1809   :  { %v1454_v1 = vadd.f32 %v4415_v56, %v1453_v26 }
0x180b   :  { %v4123_v2 = vpack.c.bf16 %v1454_v1, %v1452_v0 }
0x180d   :  { %4124 = vst [vmem:[#allocation2] sm:$0xff] %v4123_v2  }
0x180e LB: > { %v5688_v61 = vor.u32 %v5665_v54, %v5663_v53  ;;  %v1559_v63 = vpack.c.bf16 %v5113_v44, %v5113_v44  ;;  %s5165_s19 = smov 32   ;;  %s5166_s22 = smov 64   ;;  %v1612_v19 = vrot.slane %v5109_v3, 1  ;;  %v1487_v14 = vpack.c.bf16 %v5121_v9, %v5121_v9  ;;  %s5125_s18 = sphi %s5675_s18, %s1469_s18   ;;  %v5121_v9 = vphi %v5673_v9, %v2497_v9   ;;  %v5117_v36 = vphi %v5671_v36, %v2491_v36   ;;  %v5113_v44 = vphi %v5669_v44, %v2564_v44   ;;  %v5109_v3 = vphi %v5667_v3, %v2558_v3  }
0x180f   : > { %s5699_s24 = sshll.u32 %s5125_s18, 3  ;;  %s5167_s2 = smov 80   ;;  %v5716_v43 = vor.u32 %v5661_v51, %v5659_v38 }
0x1810   : > { %1579 = vmatpush.bf16.msra.mxu1 %v5688_v61  ;;  %1712 = vmatpush.bf16.msra.mxu3 %v5688_v61  ;;  %s1475_s25 = ssub.s32 8, %s5699_s24  ;;  %s5168_s4 = smov 16   ;;  %v1489_v40 = vshrl.u32 %v1487_v14, 16 }
0x1811   : > { %1561 = vrot.lane.b32.xlu0 %v1559_v63, %s5165_s19  ;;  %s1481_s27 = sshra.s32 %s1475_s25, 3  ;;  %s5169_s28 = smov 96   ;;  %1511 = vmatpush.bf16.msra.mxu0 %v5716_v43 }
0x1812   : > { %s4010_s5 = sshll.u32 %s1481_s27, 2  ;;  %v1491_v42 = vrot.slane %v1489_v40, 3  ;;  %1645 = vmatpush.bf16.msra.mxu2 %v5716_v43  ;;  %s1476_s29 = sshra.s32 %s5699_s24, 3 }
0x1813   : > { %s1484_s26 = scalar_lea.vmem [#allocation2], %s4010_s5  ;;  %s4009_s0 = sshll.u32 %s1476_s29, 2 }
0x1814   : > { %1845 = vmatpush.bf16.msrb.mxu1 %v5688_v61  ;;  %1979 = vmatpush.bf16.msrb.mxu3 %v5688_v61  ;;  %v1485_v8 = vld [vmem:[%s1484_s26] sm:$0xf]  ;;  %s1479_s6 = scalar_lea.vmem [#allocation2], %s4009_s0  ;;  %s2589_s7 = scalar_lea.vmem [#allocation23], %s5699_s24 }
0x1815   : > { %v5704_v10 = vunpack.c.l.bf16 %v1485_v8  ;;  %1780 = vmatpush.bf16.msrb.mxu0 %v5716_v43  ;;  %v1480_v48 = vld [vmem:[%s1479_s6] sm:$0xf]  ;;  %s5170_s1 = smov 48   ;;  %s2595_s30 = scalar_lea.vmem [#allocation23], %s1475_s25 }
0x1816   : > { %1912 = vmatpush.bf16.msrb.mxu2 %v5716_v43  ;;  %v5732_v41 = vunpack.c.l.bf16 %v1480_v48  ;;  %s1469_s18 = sadd.s32 1, %s5125_s18  }
0x1817   : > { %p1466_p1 = scmp.ge.s32.totalorder %s1469_s18, 2  }
0x1818   :  { %v5986_v38 = vld [vmem:[#allocation18] sm:$0xf0] (%p1466_p1)  ;;  %v4544_v53 = vld [vmem:[%s6326_s13] ss:$0 sm:$0xff] (%p1466_p1) }
0x1883   : > { %v1562_v4 = vpop.permute.xlu0 %1561 }
0x1884   : > { %4021 = vmatmul.msk.bf16.vlgmr.msra.gmra.mxu1 %vm318_vm3, %v1562_v4 }
0x1885   : > { %2113 = vmatpush.bf16.msra.mxu1 %v5688_v61 }
0x1901   : > { %v1581_v7 = vpop.f32.mrf.mxu1 }
0x1902   : > { %v1586_v24 = vrot.slane %v1581_v7, 1 }
0x1904   : > { %1587 = vrot.lane.b32.xlu0 %v1586_v24, %s5166_s22 }
0x1909   : > { %v1583_v50 = vpop.f32.mrf.mxu1 }
0x1976   : > { %v1588_v55 = vpop.permute.xlu0 %1587 }
0x1977   : > { %v1590_v13 = vadd.f32 %v1588_v55, %v5704_v10 }
0x1979   : > { %4416 = vtanh.f32 %v1590_v13  ;;  %v4022_v15 = vmul.f32 -1.442695, %v1590_v13 }
0x197b   : > { %4418 = vpow2.f32 %v4022_v15 }
0x197f   : > { %v4417_v33 = vpop.eup %4416 }
0x1980   : > { %1616 = vrot.lane.b32.xlu1 %v4417_v33, %s5167_s2 }
0x1981   : > { %v4419_v58 = vpop.eup %4418 }
0x1982   : > { %v1594_v17 = vadd.f32 1.0, %v4419_v58  ;;  %v1539_v58 = vrot.slane %v5117_v36, 7 }
0x1984   : > { %4420 = vrcp.f32 %v1594_v17  ;;  %v1606_v12 = vand.u32 2147483648, %v1594_v17  ;;  %vm1600_vm13 = vweird.f32 %v1594_v17  ;;  %v1604_v23 = vand.u32 2147483647, %v1594_v17 }
0x1986   : > { %v1607_v28 = vor.u32 1.1754944e-38, %v1606_v12  ;;  %vm1605_vm4 = vcmp.eq.f32.partialorder %v1604_v23, 8.507059e+37 }
0x198a   : > { %v4421_v18 = vpop.eup %4420 }
0x198b   : > { %v1596_v20 = vmul.f32 %v4421_v18, %v1594_v17  ;;  %vm1601_vm11 = vweird.f32 %v4421_v18 }
0x198c   : > { %vm1602_vm14 = vmor %vm1600_vm13, %vm1601_vm11 }
0x198d   : > { %v1597_v49 = vsub.f32 1.0, %v1596_v20 }
0x198f   : > { %v1598_v21 = vmul.f32 %v4421_v18, %v1597_v49 }
0x1991   : > { %v1599_v22 = vadd.f32 %v4421_v18, %v1598_v21 }
0x1993   : > { %v1603_v27 = vsel %vm1602_vm14, %v4421_v18, %v1599_v22 }
0x1994   : > { %v1608_v30 = vsel %vm1605_vm4, %v1607_v28, %v1603_v27 }
0x1995   : > { %v1614_v34 = vmul.f32 %v1612_v19, %v1608_v30 }
0x19f2   : > { %v1617_v29 = vpop.permute.xlu1 %1616 }
0x19f3   : > { %v1619_v32 = vmul.f32 %v1617_v29, %v1608_v30 }
0x19f5   : > { %1621 = vrot.lane.b32.xlu1 %v1619_v32, %s5168_s4 }
0x1a67   : > { %v1622_v35 = vpop.permute.xlu1 %1621 }
0x1a68   : > { %v5709_v57 = vadd.f32 %v1622_v35, %v1614_v34 }
0x1a6a   : > { %4422 = vtanh.f32 %v5709_v57 }
0x1a70   : > { %v4423_v39 = vpop.eup %4422 }
0x1a71   : > { %1627 = vrot.lane.b32.xlu2 %v4423_v39, %s5168_s4 }
0x1a79   : > { %1492 = vrot.lane.b32.xlu2 %v1491_v42, %s5169_s28 }
0x1acb   : > { %v1628_v59 = vpop.permute.xlu2 %1627 }
0x1acc   : > { %v5722_v31 = vmul.f32 %v1628_v59, %v1608_v30 }
0x1ace   : > { %v1695_v45 = vpack.c.bf16 %v5722_v31, %v5722_v31 }
0x1ad0   : > { %v1697_v16 = vshrl.u32 %v1695_v45, 16  ;;  %v1745_v45 = vrot.slane %v5709_v57, 1 }
0x1ad2   : > { %v1699_v46 = vrot.slane %v1697_v16, 3 }
0x1ad3   : > { %v1493_v37 = vpop.permute.xlu2 %1492 }
0x1ad4   : > { %1700 = vrot.lane.b32.xlu0 %v1699_v46, %s5165_s19  ;;  %4015 = vmatmul.msk.bf16.vlgmr.msra.gmra.mxu0 %vm318_vm3, %v1493_v37 }
0x1ad5   : > { %2048 = vmatpush.bf16.msra.mxu0 %v5716_v43 }
0x1b46   : > { %v1701_v47 = vpop.permute.xlu0 %1700 }
0x1b47   : > { %4025 = vmatmul.msk.bf16.vlgmr.msra.gmra.mxu3 %vm318_vm3, %v1701_v47 }
0x1b48   : > { %2247 = vmatpush.bf16.msra.mxu3 %v5688_v61 }
0x1b51   : > { %v1513_v5 = vpop.f32.mrf.mxu0 }
0x1b52   : > { %v1517_v62 = vadd.f32 %v1513_v5, %v5732_v41 }
0x1b54   : > { %4424 = vtanh.f32 %v1517_v62  ;;  %v4016_v52 = vmul.f32 -1.442695, %v1517_v62 }
0x1b56   : > { %4426 = vpow2.f32 %v4016_v52 }
0x1b59   : > { %v1515_v11 = vpop.f32.mrf.mxu0 }
0x1b5a   : > { %v4425_v6 = vpop.eup %4424 }
0x1b5b   : > { %1543 = vrot.lane.b32.xlu1 %v4425_v6, %s5167_s2 }
0x1b5c   : > { %v4427_v60 = vpop.eup %4426 }
0x1b5d   : > { %v1521_v25 = vadd.f32 1.0, %v4427_v60 }
0x1b5f   : > { %4428 = vrcp.f32 %v1521_v25  ;;  %vm1527_vm5 = vweird.f32 %v1521_v25  ;;  %v1533_v2 = vand.u32 2147483648, %v1521_v25  ;;  %v1531_v44 = vand.u32 2147483647, %v1521_v25 }
0x1b61   : > { %v1534_v9 = vor.u32 1.1754944e-38, %v1533_v2  ;;  %vm1532_vm13 = vcmp.eq.f32.partialorder %v1531_v44, 8.507059e+37 }
0x1b65   : > { %v4429_v56 = vpop.eup %4428 }
0x1b66   : > { %v1523_v26 = vmul.f32 %v4429_v56, %v1521_v25  ;;  %vm1528_vm6 = vweird.f32 %v4429_v56 }
0x1b67   : > { %vm1529_vm11 = vmor %vm1527_vm5, %vm1528_vm6 }
0x1b68   : > { %v1524_v0 = vsub.f32 1.0, %v1523_v26 }
0x1b6a   : > { %v1525_v1 = vmul.f32 %v4429_v56, %v1524_v0 }
0x1b6c   : > { %v1526_v3 = vadd.f32 %v4429_v56, %v1525_v1 }
0x1b6e   : > { %v1530_v63 = vsel %vm1529_vm11, %v4429_v56, %v1526_v3 }
0x1b6f   : > { %v1535_v24 = vsel %vm1532_vm13, %v1534_v9, %v1530_v63 }
0x1b70   : > { %v1541_v17 = vmul.f32 %v1539_v58, %v1535_v24 }
0x1bca   : > { %v1714_v4 = vpop.f32.mrf.mxu3 }
0x1bcb   : > { %v1719_v7 = vrot.slane %v1714_v4, 2 }
0x1bcd   : > { %1720 = vrot.lane.b32.xlu2 %v1719_v7, %s5166_s22  ;;  %v1544_v50 = vpop.permute.xlu1 %1543 }
0x1bce   : > { %v1546_v8 = vmul.f32 %v1544_v50, %v1535_v24 }
0x1bd0   : > { %1548 = vrot.lane.b32.xlu0 %v1546_v8, %s5168_s4 }
0x1bd2   : > { %v1716_v55 = vpop.f32.mrf.mxu3 }
0x1c27   : > { %v1721_v13 = vpop.permute.xlu2 %1720 }
0x1c28   : > { %v1723_v33 = vadd.f32 %v1721_v13, %v5704_v10 }
0x1c2a   : > { %4430 = vtanh.f32 %v1723_v33  ;;  %v4026_v21 = vmul.f32 -1.442695, %v1723_v33 }
0x1c30   : > { %v4431_v15 = vpop.eup %4430 }
0x1c31   : > { %1749 = vrot.lane.b32.xlu1 %v4431_v15, %s5167_s2 }
0x1c42   : > { %v1549_v18 = vpop.permute.xlu0 %1548 }
0x1c43   : > { %v5741_v20 = vadd.f32 %v1549_v18, %v1541_v17 }
0x1c45   : > { %4432 = vtanh.f32 %v5741_v20  ;;  %v1676_v17 = vrot.slane %v5741_v20, 7 }
0x1c46   : > { %4434 = vpow2.f32 %v4026_v21 }
0x1c4b   : > { %v4433_v49 = vpop.eup %4432 }
0x1c4c   : > { %1554 = vrot.lane.b32.xlu2 %v4433_v49, %s5168_s4  ;;  %v4435_v22 = vpop.eup %4434 }
0x1c4d   : > { %v1727_v12 = vadd.f32 1.0, %v4435_v22 }
0x1c4f   : > { %4436 = vrcp.f32 %v1727_v12  ;;  %v1739_v36 = vand.u32 2147483648, %v1727_v12  ;;  %vm1733_vm4 = vweird.f32 %v1727_v12  ;;  %v1737_v32 = vand.u32 2147483647, %v1727_v12 }
0x1c51   : > { %v1740_v34 = vor.u32 1.1754944e-38, %v1739_v36  ;;  %vm1738_vm6 = vcmp.eq.f32.partialorder %v1737_v32, 8.507059e+37 }
0x1c55   : > { %v4437_v23 = vpop.eup %4436 }
0x1c56   : > { %v1729_v27 = vmul.f32 %v4437_v23, %v1727_v12  ;;  %vm1734_vm14 = vweird.f32 %v4437_v23 }
0x1c57   : > { %vm1735_vm5 = vmor %vm1733_vm4, %vm1734_vm14 }
0x1c58   : > { %v1730_v28 = vsub.f32 1.0, %v1729_v27 }
0x1c5a   : > { %v1731_v29 = vmul.f32 %v4437_v23, %v1730_v28 }
0x1c5c   : > { %v1732_v30 = vadd.f32 %v4437_v23, %v1731_v29 }
0x1c5e   : > { %v1736_v19 = vsel %vm1735_vm5, %v4437_v23, %v1732_v30 }
0x1c5f   : > { %v1741_v14 = vsel %vm1738_vm6, %v1740_v34, %v1736_v19 }
0x1c60   : > { %v1747_v16 = vmul.f32 %v1745_v45, %v1741_v14 }
0x1ca3   : > { %v1750_v35 = vpop.permute.xlu1 %1749 }
0x1ca4   : > { %v1752_v39 = vmul.f32 %v1750_v35, %v1741_v14 }
0x1ca6   : > { %1754 = vrot.lane.b32.xlu0 %v1752_v39, %s5168_s4  ;;  %v1555_v40 = vpop.permute.xlu2 %1554 }
0x1ca7   : > { %v5746_v42 = vmul.f32 %v1555_v40, %v1535_v24 }
0x1ca9   : > { %v1631_v59 = vpack.c.bf16 %v5746_v42, %v5746_v42 }
0x1cab   : > { %1633 = vrot.lane.b32.xlu1 %v1631_v59, %s5169_s28 }
0x1d18   : > { %v1755_v46 = vpop.permute.xlu0 %1754 }
0x1d19   : > { %v5752_v37 = vadd.f32 %v1755_v46, %v1747_v16 }
0x1d1b   : > { %4438 = vtanh.f32 %v5752_v37 }
0x1d1d   : > { %v1634_v47 = vpop.permute.xlu1 %1633 }
0x1d1e   : > { %4023 = vmatmul.msk.bf16.vlgmr.msra.gmra.mxu2 %vm318_vm3, %v1634_v47 }
0x1d1f   : > { %2180 = vmatpush.bf16.msra.mxu2 %v5716_v43 }
0x1d21   : > { %v4439_v48 = vpop.eup %4438 }
0x1d22   : > { %1760 = vrot.lane.b32.xlu2 %v4439_v48, %s5168_s4 }
0x1d7c   : > { %v1761_v5 = vpop.permute.xlu2 %1760 }
0x1d7d   : > { %v5758_v62 = vmul.f32 %v1761_v5, %v1741_v14 }
0x1d7f   : > { %v1830_v57 = vpack.c.bf16 %v5758_v62, %v5758_v62 }
0x1d81   : > { %v1832_v11 = vrot.slane %v1830_v57, 3 }
0x1d83   : > { %1833 = vrot.lane.b32.xlu0 %v1832_v11, %s5165_s19 }
0x1da1   : > { %v1647_v6 = vpop.f32.mrf.mxu2 }
0x1da2   : > { %v1652_v52 = vrot.slane %v1647_v6, 7  ;;  %v1878_v6 = vrot.slane %v5752_v37, 1 }
0x1da4   : > { %v1654_v60 = vadd.f32 %v1652_v52, %v5732_v41 }
0x1da6   : > { %4440 = vtanh.f32 %v1654_v60  ;;  %v4024_v26 = vmul.f32 -1.442695, %v1654_v60 }
0x1da8   : > { %4442 = vpow2.f32 %v4024_v26 }
0x1da9   : > { %v1649_v25 = vpop.f32.mrf.mxu2 }
0x1dac   : > { %v4441_v56 = vpop.eup %4440 }
0x1dad   : > { %1680 = vrot.lane.b32.xlu1 %v4441_v56, %s5167_s2 }
0x1dae   : > { %v4443_v1 = vpop.eup %4442 }
0x1daf   : > { %v1658_v2 = vadd.f32 1.0, %v4443_v1 }
0x1db1   : > { %4444 = vrcp.f32 %v1658_v2  ;;  %v1670_v7 = vand.u32 2147483648, %v1658_v2  ;;  %vm1664_vm13 = vweird.f32 %v1658_v2  ;;  %v1668_v24 = vand.u32 2147483647, %v1658_v2 }
0x1db3   : > { %v1671_v8 = vor.u32 1.1754944e-38, %v1670_v7  ;;  %vm1669_vm4 = vcmp.eq.f32.partialorder %v1668_v24, 8.507059e+37 }
0x1db7   : > { %v4445_v3 = vpop.eup %4444 }
0x1db8   : > { %v1660_v44 = vmul.f32 %v4445_v3, %v1658_v2  ;;  %vm1665_vm11 = vweird.f32 %v4445_v3 }
0x1db9   : > { %vm1666_vm14 = vmor %vm1664_vm13, %vm1665_vm11 }
0x1dba   : > { %v1661_v9 = vsub.f32 1.0, %v1660_v44 }
0x1dbc   : > { %v1662_v63 = vmul.f32 %v4445_v3, %v1661_v9 }
0x1dbe   : > { %v1663_v4 = vadd.f32 %v4445_v3, %v1662_v63 }
0x1dc0   : > { %v1667_v50 = vsel %vm1666_vm14, %v4445_v3, %v1663_v4 }
0x1dc1   : > { %v1672_v13 = vsel %vm1669_vm4, %v1671_v8, %v1667_v50 }
0x1dc2   : > { %v1678_v49 = vmul.f32 %v1676_v17, %v1672_v13 }
0x1df5   : > { %v1834_v0 = vpop.permute.xlu0 %1833 }
0x1df6   : > { %4029 = vmatmul.msk.bf16.vlgmr.msrb.gmra.mxu1 %vm318_vm3, %v1834_v0 }
0x1df7   : > { %2381 = vmatpush.bf16.msrb.mxu1 %v5688_v61 }
0x1e1f   : > { %v1681_v55 = vpop.permute.xlu1 %1680 }
0x1e20   : > { %v1683_v33 = vmul.f32 %v1681_v55, %v1672_v13 }
0x1e22   : > { %1685 = vrot.lane.b32.xlu2 %v1683_v33, %s5168_s4 }
0x1e73   : > { %v1847_v15 = vpop.f32.mrf.mxu1 }
0x1e74   : > { %v1852_v58 = vrot.slane %v1847_v15, 3 }
0x1e76   : > { %1853 = vrot.lane.b32.xlu0 %v1852_v58, %s5166_s22 }
0x1e7b   : > { %v1849_v18 = vpop.f32.mrf.mxu1 }
0x1e7c   : > { %v1686_v21 = vpop.permute.xlu2 %1685 }
0x1e7d   : > { %v5770_v22 = vadd.f32 %v1686_v21, %v1678_v49 }
0x1e7f   : > { %4446 = vtanh.f32 %v5770_v22 }
0x1e85   : > { %v4447_v12 = vpop.eup %4446 }
0x1e86   : > { %1691 = vrot.lane.b32.xlu1 %v4447_v12, %s5168_s4 }
0x1ee8   : > { %v1854_v23 = vpop.permute.xlu0 %1853 }
0x1ee9   : > { %v1856_v27 = vadd.f32 %v1854_v23, %v5704_v10 }
0x1eeb   : > { %4448 = vtanh.f32 %v1856_v27  ;;  %v4030_v32 = vmul.f32 -1.442695, %v1856_v27 }
0x1eed   : > { %4450 = vpow2.f32 %v4030_v32 }
0x1ef1   : > { %v4449_v28 = vpop.eup %4448 }
0x1ef2   : > { %1882 = vrot.lane.b32.xlu2 %v4449_v28, %s5167_s2  ;;  %v1811_v28 = vrot.slane %v5770_v22, 7 }
0x1ef3   : > { %v4451_v19 = vpop.eup %4450 }
0x1ef4   : > { %v1860_v34 = vadd.f32 1.0, %v4451_v19 }
0x1ef6   : > { %4452 = vrcp.f32 %v1860_v34  ;;  %v1872_v45 = vand.u32 2147483648, %v1860_v34  ;;  %vm1866_vm6 = vweird.f32 %v1860_v34  ;;  %v1870_v16 = vand.u32 2147483647, %v1860_v34 }
0x1ef8   : > { %v1692_v29 = vpop.permute.xlu1 %1691  ;;  %v1873_v47 = vor.u32 1.1754944e-38, %v1872_v45  ;;  %vm1871_vm13 = vcmp.eq.f32.partialorder %v1870_v16, 8.507059e+37 }
0x1ef9   : > { %v5776_v30 = vmul.f32 %v1692_v29, %v1672_v13 }
0x1efb   : > { %v1764_v20 = vpack.c.bf16 %v5776_v30, %v5776_v30 }
0x1efc   : > { %v4453_v35 = vpop.eup %4452 }
0x1efd   : > { %v1766_v36 = vshrl.u32 %v1764_v20, 16  ;;  %v1862_v14 = vmul.f32 %v4453_v35, %v1860_v34  ;;  %vm1867_vm5 = vweird.f32 %v4453_v35 }
0x1efe   : > { %vm1868_vm11 = vmor %vm1866_vm6, %vm1867_vm5 }
0x1eff   : > { %1768 = vrot.lane.b32.xlu0 %v1766_v36, %s5169_s28  ;;  %v1863_v39 = vsub.f32 1.0, %v1862_v14 }
0x1f01   : > { %v1864_v40 = vmul.f32 %v4453_v35, %v1863_v39 }
0x1f03   : > { %v1865_v59 = vadd.f32 %v4453_v35, %v1864_v40 }
0x1f05   : > { %v1869_v46 = vsel %vm1868_vm11, %v4453_v35, %v1865_v59 }
0x1f06   : > { %v1874_v48 = vsel %vm1871_vm13, %v1873_v47, %v1869_v46 }
0x1f07   : > { %v1880_v52 = vmul.f32 %v1878_v6, %v1874_v48 }
0x1f4c   : > { %v1883_v5 = vpop.permute.xlu2 %1882 }
0x1f4d   : > { %v1885_v57 = vmul.f32 %v1883_v5, %v1874_v48 }
0x1f4f   : > { %1887 = vrot.lane.b32.xlu1 %v1885_v57, %s5168_s4 }
0x1f71   : > { %v1769_v11 = vpop.permute.xlu0 %1768 }
0x1f72   : > { %4027 = vmatmul.msk.bf16.vlgmr.msrb.gmra.mxu0 %vm318_vm3, %v1769_v11 }
0x1f73   : > { %2316 = vmatpush.bf16.msrb.mxu0 %v5716_v43 }
0x1fc1   : > { %v1888_v60 = vpop.permute.xlu1 %1887 }
0x1fc2   : > { %v5785_v25 = vadd.f32 %v1888_v60, %v1880_v52 }
0x1fc4   : > { %4454 = vtanh.f32 %v5785_v25 }
0x1fca   : > { %v4455_v56 = vpop.eup %4454 }
0x1fcb   : > { %1893 = vrot.lane.b32.xlu2 %v4455_v56, %s5168_s4 }
0x1fef   : > { %v1782_v26 = vpop.f32.mrf.mxu0 }
0x1ff0   : > { %v1787_v0 = vrot.slane %v1782_v26, 6 }
0x1ff2   : > { %v1789_v1 = vadd.f32 %v1787_v0, %v5732_v41 }
0x1ff4   : > { %4456 = vtanh.f32 %v1789_v1  ;;  %v4028_v7 = vmul.f32 -1.442695, %v1789_v1 }
0x1ff6   : > { %4458 = vpow2.f32 %v4028_v7 }
0x1ff7   : > { %v1784_v2 = vpop.f32.mrf.mxu0 }
0x1ffa   : > { %v4457_v3 = vpop.eup %4456 }
0x1ffb   : > { %1815 = vrot.lane.b32.xlu1 %v4457_v3, %s5167_s2 }
0x1ffc   : > { %v4459_v24 = vpop.eup %4458 }
0x1ffd   : > { %v1793_v50 = vadd.f32 1.0, %v4459_v24 }
0x1fff   : > { %4460 = vrcp.f32 %v1793_v50  ;;  %v1805_v58 = vand.u32 2147483648, %v1793_v50  ;;  %vm1799_vm4 = vweird.f32 %v1793_v50  ;;  %v1803_v17 = vand.u32 2147483647, %v1793_v50 }
0x2001   : > { %v1806_v49 = vor.u32 1.1754944e-38, %v1805_v58  ;;  %vm1804_vm6 = vcmp.eq.f32.partialorder %v1803_v17, 8.507059e+37 }
0x2005   : > { %v4461_v8 = vpop.eup %4460 }
0x2006   : > { %v1795_v55 = vmul.f32 %v4461_v8, %v1793_v50  ;;  %vm1800_vm14 = vweird.f32 %v4461_v8  ;;  %v2012_v50 = vrot.slane %v5785_v25, 1 }
0x2007   : > { %vm1801_vm5 = vmor %vm1799_vm4, %vm1800_vm14 }
0x2008   : > { %v1796_v13 = vsub.f32 1.0, %v1795_v55 }
0x200a   : > { %v1797_v33 = vmul.f32 %v4461_v8, %v1796_v13 }
0x200c   : > { %v1798_v15 = vadd.f32 %v4461_v8, %v1797_v33 }
0x200e   : > { %v1802_v18 = vsel %vm1801_vm5, %v4461_v8, %v1798_v15 }
0x200f   : > { %v1807_v21 = vsel %vm1804_vm6, %v1806_v49, %v1802_v18 }
0x2010   : > { %v1813_v29 = vmul.f32 %v1811_v28, %v1807_v21 }
0x2025   : > { %v1894_v44 = vpop.permute.xlu2 %1893 }
0x2026   : > { %v5791_v37 = vmul.f32 %v1894_v44, %v1874_v48 }
0x2028   : > { %v1962_v9 = vpack.c.bf16 %v5791_v37, %v5791_v37 }
0x202a   : > { %v1964_v63 = vshrl.u32 %v1962_v9, 16 }
0x202c   : > { %v1966_v4 = vrot.slane %v1964_v63, 2 }
0x202e   : > { %1967 = vrot.lane.b32.xlu0 %v1966_v4, %s5165_s19 }
0x206d   : > { %v1816_v12 = vpop.permute.xlu1 %1815 }
0x206e   : > { %v1818_v23 = vmul.f32 %v1816_v12, %v1807_v21 }
0x2070   : > { %1820 = vrot.lane.b32.xlu2 %v1818_v23, %s5168_s4 }
0x20a0   : > { %v1968_v27 = vpop.permute.xlu0 %1967 }
0x20a1   : > { %4033 = vmatmul.msk.bf16.vlgmr.msrb.gmra.mxu3 %vm318_vm3, %v1968_v27 }
0x20a2   : > { %2514 = vmatpush.bf16.msrb.mxu3 %v5688_v61  ;;  %v2566_v61 = vsel %vm1383_vm15, %v5746_v42, %v5776_v30 }
0x20ca   : > { %v1821_v20 = vpop.permute.xlu2 %1820 }
0x20cb   : > { %v5800_v36 = vadd.f32 %v1821_v20, %v1813_v29 }
0x20cd   : > { %4462 = vtanh.f32 %v5800_v36 }
0x20d3   : > { %v4463_v32 = vpop.eup %4462 }
0x20d4   : > { %1826 = vrot.lane.b32.xlu0 %v4463_v32, %s5168_s4 }
0x2124   : > { %v1981_v19 = vpop.f32.mrf.mxu3 }
0x2125   : > { %v1986_v34 = vrot.slane %v1981_v19, 4 }
0x2127   : > { %1987 = vrot.lane.b32.xlu1 %v1986_v34, %s5166_s22 }
0x212c   : > { %v1983_v35 = vpop.f32.mrf.mxu3 }
0x2146   : > { %v1827_v14 = vpop.permute.xlu0 %1826 }
0x2147   : > { %v1829_v39 = vmul.f32 %v1827_v14, %v1807_v21  ;;  %v1943_v14 = vrot.slane %v5800_v36, 7 }
0x2149   : > { %v1897_v22 = vpack.c.bf16 %v1829_v39, %v1829_v39  ;;  %v5809_v40 = vsel %vm1385_vm1, %v2566_v61, %v1829_v39 }
0x214b   : > { %v1899_v59 = vrot.slane %v1897_v22, 1 }
0x214d   : > { %1900 = vrot.lane.b32.xlu2 %v1899_v59, %s5169_s28 }
0x2199   : > { %v1988_v45 = vpop.permute.xlu1 %1987 }
0x219a   : > { %v1990_v16 = vadd.f32 %v1988_v45, %v5704_v10 }
0x219c   : > { %4464 = vtanh.f32 %v1990_v16  ;;  %v4034_v42 = vmul.f32 -1.442695, %v1990_v16 }
0x219e   : > { %4466 = vpow2.f32 %v4034_v42 }
0x21a2   : > { %v4465_v46 = vpop.eup %4464 }
0x21a3   : > { %2016 = vrot.lane.b32.xlu0 %v4465_v46, %s5167_s2 }
0x21a4   : > { %v4467_v30 = vpop.eup %4466 }
0x21a5   : > { %v1994_v48 = vadd.f32 1.0, %v4467_v30 }
0x21a7   : > { %v1901_v47 = vpop.permute.xlu2 %1900  ;;  %4468 = vrcp.f32 %v1994_v48  ;;  %v2006_v60 = vand.u32 2147483648, %v1994_v48  ;;  %vm2000_vm13 = vweird.f32 %v1994_v48  ;;  %v2004_v56 = vand.u32 2147483647, %v1994_v48 }
0x21a8   : > { %4031 = vmatmul.msk.bf16.vlgmr.msrb.gmra.mxu2 %vm318_vm3, %v1901_v47 }
0x21a9   : > { %2448 = vmatpush.bf16.msrb.mxu2 %v5716_v43  ;;  %v2007_v0 = vor.u32 1.1754944e-38, %v2006_v60  ;;  %vm2005_vm4 = vcmp.eq.f32.partialorder %v2004_v56, 8.507059e+37 }
0x21ad   : > { %v4469_v5 = vpop.eup %4468 }
0x21ae   : > { %v1996_v57 = vmul.f32 %v4469_v5, %v1994_v48  ;;  %vm2001_vm11 = vweird.f32 %v4469_v5 }
0x21af   : > { %vm2002_vm14 = vmor %vm2000_vm13, %vm2001_vm11 }
0x21b0   : > { %v1997_v11 = vsub.f32 1.0, %v1996_v57 }
0x21b2   : > { %v1998_v6 = vmul.f32 %v4469_v5, %v1997_v11 }
0x21b4   : > { %v1999_v52 = vadd.f32 %v4469_v5, %v1998_v6 }
0x21b6   : > { %v2003_v26 = vsel %vm2002_vm14, %v4469_v5, %v1999_v52 }
0x21b7   : > { %v2008_v43 = vsel %vm2005_vm4, %v2007_v0, %v2003_v26 }
0x21b8   : > { %v2014_v55 = vmul.f32 %v2012_v50, %v2008_v43 }
0x2215   : > { %v2017_v1 = vpop.permute.xlu0 %2016 }
0x2216   : > { %v2019_v2 = vmul.f32 %v2017_v1, %v2008_v43 }
0x2218   : > { %2021 = vrot.lane.b32.xlu1 %v2019_v2, %s5168_s4 }
0x222b   : > { %v1914_v3 = vpop.f32.mrf.mxu2 }
0x222c   : > { %v1919_v44 = vrot.slane %v1914_v3, 5 }
0x222e   : > { %v1921_v9 = vadd.f32 %v1919_v44, %v5732_v41 }
0x2230   : > { %4470 = vtanh.f32 %v1921_v9  ;;  %v4032_v7 = vmul.f32 -1.442695, %v1921_v9 }
0x2232   : > { %4472 = vpow2.f32 %v4032_v7 }
0x2233   : > { %v1916_v63 = vpop.f32.mrf.mxu2 }
0x2236   : > { %v4471_v4 = vpop.eup %4470 }
0x2237   : > { %1947 = vrot.lane.b32.xlu1 %v4471_v4, %s5167_s2 }
0x2238   : > { %v4473_v24 = vpop.eup %4472 }
0x2239   : > { %v1925_v8 = vadd.f32 1.0, %v4473_v24 }
0x223b   : > { %4474 = vrcp.f32 %v1925_v8  ;;  %v1937_v12 = vand.u32 2147483648, %v1925_v8  ;;  %vm1931_vm6 = vweird.f32 %v1925_v8  ;;  %v1935_v25 = vand.u32 2147483647, %v1925_v8 }
0x223d   : > { %v1938_v27 = vor.u32 1.1754944e-38, %v1937_v12  ;;  %vm1936_vm13 = vcmp.eq.f32.partialorder %v1935_v25, 8.507059e+37 }
0x2241   : > { %v4475_v15 = vpop.eup %4474 }
0x2242   : > { %v1927_v17 = vmul.f32 %v4475_v15, %v1925_v8  ;;  %vm1932_vm5 = vweird.f32 %v4475_v15 }
0x2243   : > { %vm1933_vm11 = vmor %vm1931_vm6, %vm1932_vm5 }
0x2244   : > { %v1928_v18 = vsub.f32 1.0, %v1927_v17 }
0x2246   : > { %v1929_v49 = vmul.f32 %v4475_v15, %v1928_v18 }
0x2248   : > { %v1930_v21 = vadd.f32 %v4475_v15, %v1929_v49 }
0x224a   : > { %v1934_v23 = vsel %vm1933_vm11, %v4475_v15, %v1930_v21 }
0x224b   : > { %v1939_v28 = vsel %vm1936_vm13, %v1938_v27, %v1934_v23 }
0x224c   : > { %v1945_v39 = vmul.f32 %v1943_v14, %v1939_v28 }
0x228a   : > { %v2022_v13 = vpop.permute.xlu1 %2021 }
0x228b   : > { %v5820_v33 = vadd.f32 %v2022_v13, %v2014_v55 }
0x228d   : > { %4476 = vtanh.f32 %v5820_v33  ;;  %v2146_v25 = vrot.slane %v5820_v33, 1 }
0x2293   : > { %v4477_v58 = vpop.eup %4476 }
0x2294   : > { %2027 = vrot.lane.b32.xlu2 %v4477_v58, %s5168_s4 }
0x22a9   : > { %v1948_v29 = vpop.permute.xlu1 %1947 }
0x22aa   : > { %v1950_v20 = vmul.f32 %v1948_v29, %v1939_v28 }
0x22ac   : > { %1952 = vrot.lane.b32.xlu2 %v1950_v20, %s5168_s4 }
0x22ee   : > { %v2028_v32 = vpop.permute.xlu2 %2027 }
0x22ef   : > { %v5825_v19 = vmul.f32 %v2028_v32, %v2008_v43 }
0x22f1   : > { %v2098_v34 = vpack.c.bf16 %v5825_v19, %v5825_v19 }
0x22f3   : > { %v2100_v35 = vrot.slane %v2098_v34, 2 }
0x22f5   : > { %2101 = vrot.lane.b32.xlu0 %v2100_v35, %s5165_s19 }
0x2306   : > { %v1953_v61 = vpop.permute.xlu2 %1952 }
0x2307   : > { %v5831_v22 = vadd.f32 %v1953_v61, %v1945_v39 }
0x2309   : > { %4478 = vtanh.f32 %v5831_v22 }
0x230f   : > { %v4479_v59 = vpop.eup %4478 }
0x2310   : > { %1958 = vrot.lane.b32.xlu0 %v4479_v59, %s5168_s4 }
0x2367   : > { %v2102_v45 = vpop.permute.xlu0 %2101 }
0x2368   : > { %4037 = vmatmul.msk.bf16.vlgmr.msra.gmra.mxu1 %vm318_vm3, %v2102_v45 }
0x2382   : > { %v1959_v16 = vpop.permute.xlu0 %1958 }
0x2383   : > { %v1961_v46 = vmul.f32 %v1959_v16, %v1939_v28 }
0x2385   : > { %v2031_v47 = vpack.c.bf16 %v1961_v46, %v1961_v46  ;;  %v5838_v42 = vsel %vm1387_vm12, %v5809_v40, %v1961_v46 }
0x2387   : > { %v2033_v36 = vshrl.u32 %v2031_v47, 16 }
0x2389   : > { %v2035_v30 = vrot.slane %v2033_v36, 1  ;;  %v2079_v36 = vrot.slane %v5831_v22, 7 }
0x238b   : > { %2036 = vrot.lane.b32.xlu1 %v2035_v30, %s5169_s28 }
0x23e5   : > { %v2115_v48 = vpop.f32.mrf.mxu1 }
0x23e6   : > { %v2120_v5 = vrot.slane %v2115_v48, 5 }
0x23e8   : > { %2121 = vrot.lane.b32.xlu2 %v2120_v5, %s5166_s22 }
0x23ed   : > { %v2117_v57 = vpop.f32.mrf.mxu1 }
0x23fd   : > { %v2037_v11 = vpop.permute.xlu1 %2036 }
0x23fe   : > { %4035 = vmatmul.msk.bf16.vlgmr.msra.gmra.mxu0 %vm318_vm3, %v2037_v11 }
0x2442   : > { %v2122_v6 = vpop.permute.xlu2 %2121 }
0x2443   : > { %v2124_v52 = vadd.f32 %v2122_v6, %v5704_v10 }
0x2445   : > { %4480 = vtanh.f32 %v2124_v52  ;;  %v4038_v43 = vmul.f32 -1.442695, %v2124_v52 }
0x244b   : > { %v4481_v60 = vpop.eup %4480 }
0x244c   : > { %2150 = vrot.lane.b32.xlu0 %v4481_v60, %s5167_s2 }
0x247b   : > { %v2050_v40 = vpop.f32.mrf.mxu0 }
0x247c   : > { %v2055_v56 = vrot.slane %v2050_v40, 4 }
0x247e   : > { %v2057_v26 = vadd.f32 %v2055_v56, %v5732_v41 }
0x2480   : > { %4482 = vtanh.f32 %v2057_v26  ;;  %v4036_v17 = vmul.f32 -1.442695, %v2057_v26 }
0x2481   : > { %4484 = vpow2.f32 %v4038_v43 }
0x2483   : > { %v2052_v0 = vpop.f32.mrf.mxu0 }
0x2486   : > { %v4483_v1 = vpop.eup %4482 }
0x2487   : > { %2083 = vrot.lane.b32.xlu0 %v4483_v1, %s5167_s2  ;;  %v4485_v2 = vpop.eup %4484 }
0x2488   : > { %v2128_v3 = vadd.f32 1.0, %v4485_v2 }
0x248a   : > { %4486 = vrcp.f32 %v2128_v3  ;;  %v2140_v24 = vand.u32 2147483648, %v2128_v3  ;;  %vm2134_vm4 = vweird.f32 %v2128_v3  ;;  %v2138_v50 = vand.u32 2147483647, %v2128_v3 }
0x248b   : > { %4488 = vpow2.f32 %v4036_v17 }
0x248c   : > { %v2141_v55 = vor.u32 1.1754944e-38, %v2140_v24  ;;  %vm2139_vm6 = vcmp.eq.f32.partialorder %v2138_v50, 8.507059e+37 }
0x2490   : > { %v4487_v44 = vpop.eup %4486 }
0x2491   : > { %v2130_v9 = vmul.f32 %v4487_v44, %v2128_v3  ;;  %vm2135_vm14 = vweird.f32 %v4487_v44  ;;  %v4489_v18 = vpop.eup %4488 }
0x2492   : > { %vm2136_vm5 = vmor %vm2134_vm4, %vm2135_vm14  ;;  %v2061_v49 = vadd.f32 1.0, %v4489_v18 }
0x2493   : > { %v2131_v63 = vsub.f32 1.0, %v2130_v9 }
0x2494   : > { %4490 = vrcp.f32 %v2061_v49  ;;  %v2073_v35 = vand.u32 2147483648, %v2061_v49  ;;  %vm2067_vm13 = vweird.f32 %v2061_v49  ;;  %v2071_v14 = vand.u32 2147483647, %v2061_v49 }
0x2495   : > { %v2132_v4 = vmul.f32 %v4487_v44, %v2131_v63 }
0x2496   : > { %v2074_v61 = vor.u32 1.1754944e-38, %v2073_v35  ;;  %vm2072_vm4 = vcmp.eq.f32.partialorder %v2071_v14, 8.507059e+37 }
0x2497   : > { %v2133_v7 = vadd.f32 %v4487_v44, %v2132_v4 }
0x2499   : > { %v2137_v8 = vsel %vm2136_vm5, %v4487_v44, %v2133_v7 }
0x249a   : > { %v2142_v15 = vsel %vm2139_vm6, %v2141_v55, %v2137_v8  ;;  %v4491_v21 = vpop.eup %4490 }
0x249b   : > { %v2063_v12 = vmul.f32 %v4491_v21, %v2061_v49  ;;  %v2148_v23 = vmul.f32 %v2146_v25, %v2142_v15  ;;  %vm2068_vm11 = vweird.f32 %v4491_v21 }
0x249c   : > { %vm2069_vm14 = vmor %vm2067_vm13, %vm2068_vm11 }
0x249d   : > { %v2064_v27 = vsub.f32 1.0, %v2063_v12 }
0x249f   : > { %v2065_v20 = vmul.f32 %v4491_v21, %v2064_v27 }
0x24a1   : > { %v2066_v32 = vadd.f32 %v4491_v21, %v2065_v20 }
0x24a3   : > { %v2070_v39 = vsel %vm2069_vm14, %v4491_v21, %v2066_v32 }
0x24a4   : > { %v2075_v59 = vsel %vm2072_vm4, %v2074_v61, %v2070_v39 }
0x24a5   : > { %v2081_v5 = vmul.f32 %v2079_v36, %v2075_v59 }
0x24be   : > { %v2151_v13 = vpop.permute.xlu0 %2150 }
0x24bf   : > { %v2153_v58 = vmul.f32 %v2151_v13, %v2142_v15 }
0x24c1   : > { %2155 = vrot.lane.b32.xlu1 %v2153_v58, %s5168_s4 }
0x24f9   : > { %v2084_v33 = vpop.permute.xlu0 %2083 }
0x24fa   : > { %v2086_v45 = vmul.f32 %v2084_v33, %v2075_v59 }
0x2533   : > { %v2156_v28 = vpop.permute.xlu1 %2155 }
0x2534   : > { %v5849_v29 = vadd.f32 %v2156_v28, %v2148_v23 }
0x2536   : > { %4492 = vtanh.f32 %v5849_v29 }
0x253c   : > { %v4493_v34 = vpop.eup %4492 }
0x253d   : > { %2161 = vrot.lane.b32.xlu2 %v4493_v34, %s5168_s4 }
0x2545   : > { %2088 = vrot.lane.b32.xlu2 %v2086_v45, %s5168_s4 }
0x2597   : > { %v2162_v16 = vpop.permute.xlu2 %2161 }
0x2598   : > { %v5854_v46 = vmul.f32 %v2162_v16, %v2142_v15 }
0x259a   : > { %v2230_v47 = vpack.c.bf16 %v5854_v46, %v5854_v46 }
0x259c   : > { %v2232_v30 = vshrl.u32 %v2230_v47, 16 }
0x259e   : > { %v2234_v48 = vrot.slane %v2232_v30, 1 }
0x259f   : > { %v2089_v57 = vpop.permute.xlu2 %2088 }
0x25a0   : > { %v5859_v11 = vadd.f32 %v2089_v57, %v2081_v5  ;;  %2235 = vrot.lane.b32.xlu1 %v2234_v48, %s5165_s19  ;;  %v2280_v5 = vrot.slane %v5849_v29, 1 }
0x25a2   : > { %4494 = vtanh.f32 %v5859_v11 }
0x25a8   : > { %v4495_v6 = vpop.eup %4494 }
0x25a9   : > { %2094 = vrot.lane.b32.xlu0 %v4495_v6, %s5168_s4 }
0x2612   : > { %v2236_v52 = vpop.permute.xlu1 %2235 }
0x2613   : > { %4041 = vmatmul.msk.bf16.vlgmr.msra.gmra.mxu3 %vm318_vm3, %v2236_v52 }
0x261b   : > { %v2095_v60 = vpop.permute.xlu0 %2094 }
0x261c   : > { %v2097_v40 = vmul.f32 %v2095_v60, %v2075_v59 }
0x261e   : > { %v2165_v56 = vpack.c.bf16 %v2097_v40, %v2097_v40  ;;  %v5867_v22 = vsel %vm213_vm0, %v5838_v42, %v2097_v40  ;;  %v2211_v40 = vrot.slane %v5859_v11, 7 }
0x2620   : > { %v2167_v26 = vrot.slane %v2165_v56, 2 }
0x2622   : > { %2168 = vrot.lane.b32.xlu1 %v2167_v26, %s5169_s28 }
0x2694   : > { %v2169_v0 = vpop.permute.xlu1 %2168 }
0x2695   : > { %4039 = vmatmul.msk.bf16.vlgmr.msra.gmra.mxu2 %vm318_vm3, %v2169_v0 }
0x2696   : > { %v2249_v1 = vpop.f32.mrf.mxu3 }
0x2697   : > { %v2254_v43 = vrot.slane %v2249_v1, 6 }
0x2699   : > { %2255 = vrot.lane.b32.xlu2 %v2254_v43, %s5166_s22 }
0x269e   : > { %v2251_v2 = vpop.f32.mrf.mxu3 }
0x26f3   : > { %v2256_v3 = vpop.permute.xlu2 %2255 }
0x26f4   : > { %v2258_v44 = vadd.f32 %v2256_v3, %v5704_v10 }
0x26f6   : > { %4496 = vtanh.f32 %v2258_v44  ;;  %v4042_v50 = vmul.f32 -1.442695, %v2258_v44 }
0x26fc   : > { %v4497_v9 = vpop.eup %4496 }
0x26fd   : > { %2284 = vrot.lane.b32.xlu0 %v4497_v9, %s5167_s2 }
0x2718   : > { %v2182_v42 = vpop.f32.mrf.mxu2 }
0x2719   : > { %v2187_v63 = vrot.slane %v2182_v42, 3 }
0x271b   : > { %v2189_v4 = vadd.f32 %v2187_v63, %v5732_v41 }
0x271d   : > { %4498 = vtanh.f32 %v2189_v4  ;;  %v4040_v13 = vmul.f32 -1.442695, %v2189_v4 }
0x271e   : > { %4500 = vpow2.f32 %v4042_v50 }
0x2720   : > { %v2184_v7 = vpop.f32.mrf.mxu2 }
0x2723   : > { %v4499_v24 = vpop.eup %4498 }
0x2724   : > { %2215 = vrot.lane.b32.xlu2 %v4499_v24, %s5167_s2  ;;  %v4501_v8 = vpop.eup %4500 }
0x2725   : > { %v2262_v55 = vadd.f32 1.0, %v4501_v8 }
0x2727   : > { %4502 = vrcp.f32 %v2262_v55  ;;  %v2274_v23 = vand.u32 2147483648, %v2262_v55  ;;  %vm2268_vm6 = vweird.f32 %v2262_v55  ;;  %v2272_v27 = vand.u32 2147483647, %v2262_v55 }
0x2728   : > { %4504 = vpow2.f32 %v4040_v13 }
0x2729   : > { %v2275_v32 = vor.u32 1.1754944e-38, %v2274_v23  ;;  %vm2273_vm13 = vcmp.eq.f32.partialorder %v2272_v27, 8.507059e+37 }
0x272d   : > { %v4503_v15 = vpop.eup %4502 }
0x272e   : > { %v4505_v58 = vpop.eup %4504  ;;  %v2264_v17 = vmul.f32 %v4503_v15, %v2262_v55  ;;  %vm2269_vm5 = vweird.f32 %v4503_v15 }
0x272f   : > { %v2193_v18 = vadd.f32 1.0, %v4505_v58  ;;  %vm2270_vm11 = vmor %vm2268_vm6, %vm2269_vm5 }
0x2730   : > { %v2265_v49 = vsub.f32 1.0, %v2264_v17 }
0x2731   : > { %4506 = vrcp.f32 %v2193_v18  ;;  %v2205_v59 = vand.u32 2147483648, %v2193_v18  ;;  %vm2199_vm4 = vweird.f32 %v2193_v18  ;;  %v2203_v45 = vand.u32 2147483647, %v2193_v18 }
0x2732   : > { %v2266_v21 = vmul.f32 %v4503_v15, %v2265_v49 }
0x2733   : > { %v2206_v47 = vor.u32 1.1754944e-38, %v2205_v59  ;;  %vm2204_vm5 = vcmp.eq.f32.partialorder %v2203_v45, 8.507059e+37 }
0x2734   : > { %v2267_v25 = vadd.f32 %v4503_v15, %v2266_v21 }
0x2736   : > { %v2271_v20 = vsel %vm2270_vm11, %v4503_v15, %v2267_v25 }
0x2737   : > { %v4507_v12 = vpop.eup %4506  ;;  %v2276_v35 = vsel %vm2273_vm13, %v2275_v32, %v2271_v20 }
0x2738   : > { %v2195_v28 = vmul.f32 %v4507_v12, %v2193_v18  ;;  %vm2200_vm14 = vweird.f32 %v4507_v12  ;;  %v2282_v57 = vmul.f32 %v2280_v5, %v2276_v35 }
0x2739   : > { %vm2201_vm2 = vmor %vm2199_vm4, %vm2200_vm14 }
0x273a   : > { %v2196_v14 = vsub.f32 1.0, %v2195_v28 }
0x273c   : > { %v2197_v61 = vmul.f32 %v4507_v12, %v2196_v14 }
0x273e   : > { %v2198_v33 = vadd.f32 %v4507_v12, %v2197_v61 }
0x2740   : > { %v2202_v16 = vsel %vm2201_vm2, %v4507_v12, %v2198_v33 }
0x2741   : > { %v2207_v36 = vsel %vm2204_vm5, %v2206_v47, %v2202_v16 }
0x2742   : > { %v2213_v56 = vmul.f32 %v2211_v40, %v2207_v36 }
0x276f   : > { %v2285_v34 = vpop.permute.xlu0 %2284 }
0x2770   : > { %v2287_v39 = vmul.f32 %v2285_v34, %v2276_v35 }
0x2772   : > { %2289 = vrot.lane.b32.xlu1 %v2287_v39, %s5168_s4 }
0x277e   : > { %v2216_v30 = vpop.permute.xlu2 %2215 }
0x277f   : > { %v2218_v48 = vmul.f32 %v2216_v30, %v2207_v36 }
0x2781   : > { %2220 = vrot.lane.b32.xlu1 %v2218_v48, %s5168_s4 }
0x27e4   : > { %v2290_v6 = vpop.permute.xlu1 %2289 }
0x27e5   : > { %v5879_v52 = vadd.f32 %v2290_v6, %v2282_v57 }
0x27e7   : > { %4508 = vtanh.f32 %v5879_v52 }
0x27ed   : > { %v4509_v60 = vpop.eup %4508 }
0x27ee   : > { %2295 = vrot.lane.b32.xlu0 %v4509_v60, %s5168_s4 }
0x27f3   : > { %v2221_v26 = vpop.permute.xlu1 %2220 }
0x27f4   : > { %v5884_v0 = vadd.f32 %v2221_v26, %v2213_v56 }
0x27f6   : > { %4510 = vtanh.f32 %v5884_v0 }
0x27fc   : > { %v4511_v1 = vpop.eup %4510 }
0x27fd   : > { %2226 = vrot.lane.b32.xlu0 %v4511_v1, %s5168_s4 }
0x2860   : > { %v2296_v29 = vpop.permute.xlu0 %2295 }
0x2861   : > { %v5888_v43 = vmul.f32 %v2296_v29, %v2276_v35 }
0x2863   : > { %v2366_v2 = vpack.c.bf16 %v5888_v43, %v5888_v43 }
0x2865   : > { %v2368_v3 = vrot.slane %v2366_v2, 1 }
0x2867   : > { %2369 = vrot.lane.b32.xlu2 %v2368_v3, %s5165_s19  ;;  %v2347_v3 = vrot.slane %v5884_v0, 7 }
0x286f   : > { %v2227_v44 = vpop.permute.xlu0 %2226 }
0x2870   : > { %v2229_v11 = vmul.f32 %v2227_v44, %v2207_v36 }
0x2872   : > { %v2299_v9 = vpack.c.bf16 %v2229_v11, %v2229_v11  ;;  %v5895_v42 = vsel %vm1390_vm8, %v5867_v22, %v2229_v11 }
0x2874   : > { %v2301_v63 = vshrl.u32 %v2299_v9, 16 }
0x2876   : > { %v2303_v4 = vrot.slane %v2301_v63, 2 }
0x2878   : > { %2304 = vrot.lane.b32.xlu1 %v2303_v4, %s5169_s28  ;;  %v2414_v4 = vrot.slane %v5879_v52, 1 }
0x28c1   : > { %v2370_v7 = vpop.permute.xlu2 %2369 }
0x28c2   : > { %4045 = vmatmul.msk.bf16.vlgmr.msrb.gmra.mxu1 %vm318_vm3, %v2370_v7 }
0x28ea   : > { %v2305_v24 = vpop.permute.xlu1 %2304 }
0x28eb   : > { %4043 = vmatmul.msk.bf16.vlgmr.msrb.gmra.mxu0 %vm318_vm3, %v2305_v24 }
0x293f   : > { %v2383_v50 = vpop.f32.mrf.mxu1 }
0x2940   : > { %v2388_v8 = vrot.slane %v2383_v50, 7 }
0x2942   : > { %2389 = vrot.lane.b32.xlu2 %v2388_v8, %s5166_s22 }
0x2947   : > { %v2385_v55 = vpop.f32.mrf.mxu1 }
0x2968   : > { %v2318_v13 = vpop.f32.mrf.mxu0 }
0x2969   : > { %v2323_v15 = vrot.slane %v2318_v13, 2 }
0x296b   : > { %v2325_v22 = vadd.f32 %v2323_v15, %v5732_v41 }
0x296d   : > { %4512 = vtanh.f32 %v2325_v22  ;;  %v4044_v21 = vmul.f32 -1.442695, %v2325_v22 }
0x2970   : > { %v2320_v58 = vpop.f32.mrf.mxu0 }
0x2973   : > { %v4513_v17 = vpop.eup %4512 }
0x2974   : > { %2351 = vrot.lane.b32.xlu2 %v4513_v17, %s5167_s2 }
0x299c   : > { %v2390_v18 = vpop.permute.xlu2 %2389 }
0x299d   : > { %v2392_v49 = vadd.f32 %v2390_v18, %v5704_v10 }
0x299f   : > { %4514 = vtanh.f32 %v2392_v49  ;;  %v4046_v16 = vmul.f32 -1.442695, %v2392_v49 }
0x29a0   : > { %4516 = vpow2.f32 %v4044_v21 }
0x29a5   : > { %v4515_v12 = vpop.eup %4514 }
0x29a6   : > { %2418 = vrot.lane.b32.xlu0 %v4515_v12, %s5167_s2  ;;  %v4517_v25 = vpop.eup %4516 }
0x29a7   : > { %v2329_v23 = vadd.f32 1.0, %v4517_v25 }
0x29a9   : > { %4518 = vrcp.f32 %v2329_v23  ;;  %v2341_v35 = vand.u32 2147483648, %v2329_v23  ;;  %vm2335_vm6 = vweird.f32 %v2329_v23  ;;  %v2339_v14 = vand.u32 2147483647, %v2329_v23 }
0x29aa   : > { %4520 = vpow2.f32 %v4046_v16 }
0x29ab   : > { %v2342_v61 = vor.u32 1.1754944e-38, %v2341_v35  ;;  %vm2340_vm13 = vcmp.eq.f32.partialorder %v2339_v14, 8.507059e+37 }
0x29af   : > { %v4519_v27 = vpop.eup %4518 }
0x29b0   : > { %v2331_v28 = vmul.f32 %v4519_v27, %v2329_v23  ;;  %vm2336_vm2 = vweird.f32 %v4519_v27  ;;  %v4521_v47 = vpop.eup %4520 }
0x29b1   : > { %vm2337_vm11 = vmor %vm2335_vm6, %vm2336_vm2  ;;  %v2396_v36 = vadd.f32 1.0, %v4521_v47 }
0x29b2   : > { %v2332_v20 = vsub.f32 1.0, %v2331_v28 }
0x29b3   : > { %4522 = vrcp.f32 %v2396_v36  ;;  %v2408_v60 = vand.u32 2147483648, %v2396_v36  ;;  %vm2402_vm4 = vweird.f32 %v2396_v36  ;;  %v2406_v40 = vand.u32 2147483647, %v2396_v36 }
0x29b4   : > { %v2333_v32 = vmul.f32 %v4519_v27, %v2332_v20 }
0x29b5   : > { %v2409_v26 = vor.u32 1.1754944e-38, %v2408_v60  ;;  %vm2407_vm2 = vcmp.eq.f32.partialorder %v2406_v40, 8.507059e+37 }
0x29b6   : > { %v2334_v34 = vadd.f32 %v4519_v27, %v2333_v32 }
0x29b8   : > { %v2338_v39 = vsel %vm2337_vm11, %v4519_v27, %v2334_v34 }
0x29b9   : > { %v2343_v33 = vsel %vm2340_vm13, %v2342_v61, %v2338_v39  ;;  %v4523_v30 = vpop.eup %4522 }
0x29ba   : > { %v2398_v48 = vmul.f32 %v4523_v30, %v2396_v36  ;;  %vm2403_vm14 = vweird.f32 %v4523_v30  ;;  %v2349_v44 = vmul.f32 %v2347_v3, %v2343_v33 }
0x29bb   : > { %vm2404_vm5 = vmor %vm2402_vm4, %vm2403_vm14 }
0x29bc   : > { %v2399_v5 = vsub.f32 1.0, %v2398_v48 }
0x29be   : > { %v2400_v57 = vmul.f32 %v4523_v30, %v2399_v5 }
0x29c0   : > { %v2401_v6 = vadd.f32 %v4523_v30, %v2400_v57 }
0x29c2   : > { %v2405_v56 = vsel %vm2404_vm5, %v4523_v30, %v2401_v6 }
0x29c3   : > { %v2410_v29 = vsel %vm2407_vm2, %v2409_v26, %v2405_v56 }
0x29c4   : > { %v2416_v7 = vmul.f32 %v2414_v4, %v2410_v29 }
0x29ce   : > { %v2352_v59 = vpop.permute.xlu2 %2351 }
0x29cf   : > { %v2354_v45 = vmul.f32 %v2352_v59, %v2343_v33 }
0x29d1   : > { %2356 = vrot.lane.b32.xlu0 %v2354_v45, %s5168_s4 }
0x2a18   : > { %v2419_v1 = vpop.permute.xlu0 %2418 }
0x2a19   : > { %v2421_v2 = vmul.f32 %v2419_v1, %v2410_v29 }
0x2a1b   : > { %2423 = vrot.lane.b32.xlu1 %v2421_v2, %s5168_s4 }
0x2a43   : > { %v2357_v11 = vpop.permute.xlu0 %2356 }
0x2a44   : > { %v5908_v9 = vadd.f32 %v2357_v11, %v2349_v44 }
0x2a46   : > { %4524 = vtanh.f32 %v5908_v9 }
0x2a4c   : > { %v4525_v63 = vpop.eup %4524 }
0x2a4d   : > { %2362 = vrot.lane.b32.xlu2 %v4525_v63, %s5168_s4 }
0x2a8d   : > { %v2424_v24 = vpop.permute.xlu1 %2423 }
0x2a8e   : > { %v5913_v50 = vadd.f32 %v2424_v24, %v2416_v7 }
0x2a90   : > { %4526 = vtanh.f32 %v5913_v50 }
0x2a96   : > { %v4527_v8 = vpop.eup %4526 }
0x2a97   : > { %2429 = vrot.lane.b32.xlu1 %v4527_v8, %s5168_s4  ;;  %v2479_v8 = vrot.slane %v5908_v9, 7 }
0x2aa7   : > { %v2363_v0 = vpop.permute.xlu2 %2362 }
0x2aa8   : > { %v2365_v55 = vmul.f32 %v2363_v0, %v2343_v33 }
0x2aaa   : > { %v2433_v13 = vpack.c.bf16 %v2365_v55, %v2365_v55  ;;  %v5919_v15 = vsel %vm1392_vm7, %v5895_v42, %v2365_v55 }
0x2aac   : > { %v2435_v22 = vrot.slane %v2433_v13, 3 }
0x2aae   : > { %2436 = vrot.lane.b32.xlu1 %v2435_v22, %s5169_s28  ;;  %v2546_v22 = vrot.slane %v5913_v50, 1 }
0x2b09   : > { %v2430_v52 = vpop.permute.xlu1 %2429 }
0x2b0a   : > { %v5922_v58 = vmul.f32 %v2430_v52, %v2410_v29 }
0x2b0c   : > { %v2498_v17 = vpack.c.bf16 %v5922_v58, %v5922_v58 }
0x2b0e   : > { %v2500_v18 = vshrl.u32 %v2498_v17, 16 }
0x2b10   : > { %2502 = vrot.lane.b32.xlu0 %v2500_v18, %s5165_s19 }
0x2b20   : > { %v2437_v49 = vpop.permute.xlu1 %2436 }
0x2b21   : > { %4047 = vmatmul.msk.bf16.vlgmr.msrb.gmra.mxu2 %vm318_vm3, %v2437_v49 }
0x2b82   : > { %v2503_v21 = vpop.permute.xlu0 %2502 }
0x2b83   : > { %4049 = vmatmul.msk.bf16.vlgmr.msrb.gmra.mxu3 %vm318_vm3, %v2503_v21 }
0x2ba4   : > { %v2450_v42 = vpop.f32.mrf.mxu2 }
0x2ba5   : > { %v2455_v12 = vrot.slane %v2450_v42, 1 }
0x2ba7   : > { %v2457_v25 = vadd.f32 %v2455_v12, %v5732_v41 }
0x2ba9   : > { %4528 = vtanh.f32 %v2457_v25  ;;  %v4048_v32 = vmul.f32 -1.442695, %v2457_v25 }
0x2bab   : > { %4530 = vpow2.f32 %v4048_v32  ;;  %v5984_v32 = vld [vmem:[#allocation18] sm:$0xf] (%p1466_p1) }
0x2bac   : > { %v2452_v23 = vpop.f32.mrf.mxu2 }
0x2baf   : > { %v4529_v27 = vpop.eup %4528 }
0x2bb0   : > { %2483 = vrot.lane.b32.xlu1 %v4529_v27, %s5167_s2 }
0x2bb1   : > { %v4531_v34 = vpop.eup %4530 }
0x2bb2   : > { %v2461_v35 = vadd.f32 1.0, %v4531_v34 }
0x2bb4   : > { %4532 = vrcp.f32 %v2461_v35  ;;  %v2473_v47 = vand.u32 2147483648, %v2461_v35  ;;  %vm2467_vm11 = vweird.f32 %v2461_v35  ;;  %v2471_v36 = vand.u32 2147483647, %v2461_v35 }
0x2bb6   : > { %v2474_v5 = vor.u32 1.1754944e-38, %v2473_v47  ;;  %vm2472_vm14 = vcmp.eq.f32.partialorder %v2471_v36, 8.507059e+37 }
0x2bba   : > { %v4533_v14 = vpop.eup %4532 }
0x2bbb   : > { %v2463_v39 = vmul.f32 %v4533_v14, %v2461_v35  ;;  %vm2468_vm6 = vweird.f32 %v4533_v14 }
0x2bbc   : > { %vm2469_vm13 = vmor %vm2467_vm11, %vm2468_vm6  ;;  %vm6337_vm11 = vcmask (%p1466_p1), 261120  }
0x2bbd   : > { %v2464_v61 = vsub.f32 1.0, %v2463_v39  ;;  %v5991_v39 = vmov (%p1466_p1), 0.0  }
0x2bbf   : > { %v2465_v59 = vmul.f32 %v4533_v14, %v2464_v61  ;;  %v5993_v61 = vmov (%p1466_p1), 0.0  }
0x2bc1   : > { %v2466_v45 = vadd.f32 %v4533_v14, %v2465_v59 }
0x2bc3   : > { %v2470_v30 = vsel %vm2469_vm13, %v4533_v14, %v2466_v45 }
0x2bc4   : > { %v2475_v57 = vsel %vm2472_vm14, %v2474_v5, %v2470_v30 }
0x2bc5   : > { %v2481_v0 = vmul.f32 %v2479_v8, %v2475_v57 }
0x2c06   : > { %v2516_v28 = vpop.f32.mrf.mxu3 }
0x2c07   : > { %2521 = vrot.lane.b32.xlu2 %v2516_v28, %s5166_s22 }
0x2c0e   : > { %v2518_v20 = vpop.f32.mrf.mxu3 }
0x2c22   : > { %v2484_v48 = vpop.permute.xlu1 %2483 }
0x2c23   : > { %v2486_v6 = vmul.f32 %v2484_v48, %v2475_v57 }
0x2c61   : > { %v2522_v33 = vpop.permute.xlu2 %2521 }
0x2c62   : > { %v2524_v41 = vadd.f32 %v2522_v33, %v5704_v10  ;;  %v5995_v33 = vmov (%p1466_p1), 0.0  }
0x2c64   : > { %4534 = vtanh.f32 %v2524_v41  ;;  %v4050_v10 = vmul.f32 -1.442695, %v2524_v41  ;;  %v5997_v41 = vmov (%p1466_p1), 0.0  }
0x2c66   : > { %4536 = vpow2.f32 %v4050_v10 }
0x2c6a   : > { %v4535_v16 = vpop.eup %4534 }
0x2c6b   : > { %2550 = vrot.lane.b32.xlu0 %v4535_v16, %s5167_s2 }
0x2c6c   : > { %v4537_v60 = vpop.eup %4536 }
0x2c6d   : > { %v2528_v40 = vadd.f32 1.0, %v4537_v60 }
0x2c6f   : > { %4538 = vrcp.f32 %v2528_v40  ;;  %v2540_v3 = vand.u32 2147483648, %v2528_v40  ;;  %vm2534_vm5 = vweird.f32 %v2528_v40  ;;  %v2538_v44 = vand.u32 2147483647, %v2528_v40 }
0x2c71   : > { %v2541_v63 = vor.u32 1.1754944e-38, %v2540_v3  ;;  %vm2539_vm6 = vcmp.eq.f32.partialorder %v2538_v44, 8.507059e+37 }
0x2c73   : > { %2488 = vrot.lane.b32.xlu0 %v2486_v6, %s5168_s4 }
0x2c75   : > { %v4539_v56 = vpop.eup %4538 }
0x2c76   : > { %v2530_v26 = vmul.f32 %v4539_v56, %v2528_v40  ;;  %vm2535_vm4 = vweird.f32 %v4539_v56 }
0x2c77   : > { %vm2536_vm2 = vmor %vm2534_vm5, %vm2535_vm4 }
0x2c78   : > { %v2531_v1 = vsub.f32 1.0, %v2530_v26 }
0x2c7a   : > { %v2532_v29 = vmul.f32 %v4539_v56, %v2531_v1 }
0x2c7c   : > { %v2533_v2 = vadd.f32 %v4539_v56, %v2532_v29 }
0x2c7e   : > { %v2537_v11 = vsel %vm2536_vm2, %v4539_v56, %v2533_v2 }
0x2c7f   : > { %v2542_v7 = vsel %vm2539_vm6, %v2541_v63, %v2537_v11 }
0x2c80   : > { %v2548_v52 = vmul.f32 %v2546_v22, %v2542_v7 }
0x2cdd   : > { %v2551_v4 = vpop.permute.xlu0 %2550 }
0x2cde   : > { %v2553_v24 = vmul.f32 %v2551_v4, %v2542_v7 }
0x2ce0   : > { %2555 = vrot.lane.b32.xlu2 %v2553_v24, %s5168_s4 }
0x2ce5   : > { %v2489_v55 = vpop.permute.xlu0 %2488 }
0x2ce6   : > { %v2491_v36 = vadd.f32 %v2489_v55, %v2481_v0  }
0x2ce8   : > { %4540 = vtanh.f32 %v2491_v36 }
0x2cee   : > { %v4541_v13 = vpop.eup %4540 }
0x2cef   : > { %2494 = vrot.lane.b32.xlu2 %v4541_v13, %s5168_s4 }
0x2d3a   : > { %v2556_v17 = vpop.permute.xlu2 %2555 }
0x2d3b   : > { %v2558_v3 = vadd.f32 %v2556_v17, %v2548_v52  }
0x2d3d   : > { %4542 = vtanh.f32 %v2558_v3 }
0x2d43   : > { %v4543_v18 = vpop.eup %4542 }
0x2d44   : > { %2561 = vrot.lane.b32.xlu1 %v4543_v18, %s5168_s4 }
0x2d49   : > { %v2495_v49 = vpop.permute.xlu2 %2494 }
0x2d4a   : > { %v2497_v9 = vmul.f32 %v2495_v49, %v2475_v57  }
0x2d4c   : > { %v2577_v21 = vsel %vm1394_vm9, %v5919_v15, %v2497_v9  ;;  %v5982_v9 = vld [vmem:[#allocation17] sm:$0xf0] (%p1466_p1) }
0x2d4d   : > { %2586 = vrot.lane.b32.xlu0 %v2577_v21, %s5169_s28 }
0x2db6   : > { %v2562_v42 = vpop.permute.xlu1 %2561 }
0x2db7   : > { %v2564_v44 = vmul.f32 %v2562_v42, %v2542_v7  }
0x2db9   : > { %v2578_v50 = vsel %vm1383_vm15, %v2564_v44, %v5922_v58  ;;  %v5980_v58 = vld [vmem:[#allocation17] sm:$0xf] (%p1466_p1) }
0x2dba   : > { %v2579_v12 = vsel %vm1385_vm1, %v2578_v50, %v5888_v43 }
0x2dbb   : > { %v2580_v25 = vsel %vm1387_vm12, %v2579_v12, %v5854_v46 }
0x2dbc   : > { %v2581_v23 = vsel %vm213_vm0, %v2580_v25, %v5825_v19 }
0x2dbd   : > { %v2582_v15 = vsel %vm1390_vm8, %v2581_v23, %v5791_v37 }
0x2dbe   : > { %v2583_v27 = vsel %vm1392_vm7, %v2582_v15, %v5758_v62  ;;  %v4111_v62 = vld [vmem:[%s6323_s10] sm:$0xff] (%p1466_p1) }
0x2dbf   : > { %v2587_v28 = vpop.permute.xlu0 %2586  ;;  %v2584_v20 = vsel %vm1394_vm9, %v2583_v27, %v5722_v31  ;;  %v4112_v31 = vld [vmem:[%s6323_s10 + $0x8] sm:$0xff] (%p1466_p1)  ;;  %s5999_s10 = smov (%p1466_p1), 0  }
0x2dc0   : > { %2590 = vst.msk [vmem:[%s2589_s7] sm:$0xff] %vm318_vm3, %v2587_v28  ;;  %2592 = vrot.lane.b32.xlu1 %v2584_v20, %s5170_s1  ;;  %2630 = vmatpush.bf16.msra.mxu0 (%p1466_p1), %v4112_v31 }
0x2dc4   :  { %2631 = vmatpush.bf16.msra.mxu0 (%p1466_p1), %v4111_v62 }
0x2e2f   :  { %1468 = sbr.rel (!%p1466_p1) target bundleno = 6158 (0x180e), region = 186 }
0x2e32   : > { %v2593_v43 = vpop.permute.xlu1 %2592 }
0x2e33   : > { %2597 = vst.msk [vmem:[%s2595_s30] sm:$0xff] %vm1414_vm10, %v2593_v43 }
0x2e3a   :  { %v2598_v37 = vld [vmem:[#allocation23] sm:$0xff]  ;;  %v2599_v19 = vld [vmem:[#allocation23 + $0x8] sm:$0xff] }
0x2e3b   :  { %v2600_v46 = vpack.c.bf16 %v2599_v19, %v2598_v37 }
0x2e3d   :  { %4059 = vmatmul.msk.bf16.vlgmr.msra.gmra.mxu0 %vm6337_vm11, %v2600_v46 }
0x2eba   :  { %v2633_v51 = vpop.f32.mrf.mxu0 }
0x2ebb   :  { %v2634_v34 = vadd.f32 %v4544_v53, %v2633_v51 }
0x2ec2   :  { %v2635_v54 = vpop.f32.mrf.mxu0 }
0x2ec3   :  { %v2636_v35 = vadd.f32 %v4544_v53, %v2635_v54 }
0x2ec5   :  { %v4128_v14 = vpack.c.bf16 %v2636_v35, %v2634_v34 }
0x2ec7   :  { %4129 = vst [vmem:[#allocation2] sm:$0xff] %v4128_v14  }
0x2ec8 LB: > { %v6012_v59 = vor.u32 %v5986_v38, %v5984_v32  ;;  %v2741_v45 = vpack.c.bf16 %v5133_v61, %v5133_v61  ;;  %s5171_s13 = smov 32   ;;  %s5172_s11 = smov 64   ;;  %v2794_v0 = vrot.slane %v5129_v39, 1  ;;  %v2669_v52 = vpack.c.bf16 %v5141_v41, %v5141_v41  ;;  %s5145_s10 = sphi %s5999_s10, %s2651_s10   ;;  %v5141_v41 = vphi %v5997_v41, %v6338_v41   ;;  %v5137_v33 = vphi %v5995_v33, %v3673_v33   ;;  %v5133_v61 = vphi %v5993_v61, %v3746_v61   ;;  %v5129_v39 = vphi %v5991_v39, %v3740_v39  }
0x2ec9   : > { %s6023_s12 = sshll.u32 %s5145_s10, 3  ;;  %s5173_s25 = smov 80   ;;  %v6041_v21 = vor.u32 %v5982_v9, %v5980_v58 }
0x2eca   : > { %2761 = vmatpush.bf16.msra.mxu1 %v6012_v59  ;;  %2894 = vmatpush.bf16.msra.mxu3 %v6012_v59  ;;  %s6026_s18 = ssub.s32 8, %s6023_s12  ;;  %s5174_s27 = smov 16   ;;  %v2671_v18 = vshrl.u32 %v2669_v52, 16 }
0x2ecb   : > { %2743 = vrot.lane.b32.xlu0 %v2741_v45, %s5171_s13  ;;  %s2663_s19 = sshra.s32 %s6026_s18, 3  ;;  %s5175_s5 = smov 96   ;;  %2693 = vmatpush.bf16.msra.mxu0 %v6041_v21 }
0x2ecc   : > { %s4062_s22 = sshll.u32 %s2663_s19, 2  ;;  %v2673_v49 = vrot.slane %v2671_v18, 3  ;;  %2827 = vmatpush.bf16.msra.mxu2 %v6041_v21  ;;  %s2658_s26 = sshra.s32 %s6023_s12, 3 }
0x2ecd   : > { %s2666_s24 = scalar_lea.vmem [#allocation2], %s4062_s22  ;;  %s4061_s2 = sshll.u32 %s2658_s26, 2 }
0x2ece   : > { %3027 = vmatpush.bf16.msrb.mxu1 %v6012_v59  ;;  %3161 = vmatpush.bf16.msrb.mxu3 %v6012_v59  ;;  %v2667_v48 = vld [vmem:[%s2666_s24] sm:$0xf]  ;;  %s2661_s4 = scalar_lea.vmem [#allocation2], %s4061_s2  ;;  %s3767_s28 = scalar_lea.vmem [#allocation21], %s6023_s12 }
0x2ecf   : > { %v6029_v5 = vunpack.c.l.bf16 %v2667_v48  ;;  %2962 = vmatpush.bf16.msrb.mxu0 %v6041_v21  ;;  %v2662_v28 = vld [vmem:[%s2661_s4] sm:$0xf]  ;;  %s3774_s29 = scalar_lea.vmem [#allocation21], %s6026_s18  ;;  %s3785_s0 = scalar_lea.vmem [#allocation24], %s6023_s12 }
0x2ed0   : > { %3094 = vmatpush.bf16.msrb.mxu2 %v6041_v21  ;;  %v6057_v20 = vunpack.c.l.bf16 %v2662_v28  ;;  %s5176_s6 = smov 48   ;;  %s3791_s7 = scalar_lea.vmem [#allocation24], %s6026_s18 }
0x2ed1   : > { %s2651_s10 = sadd.s32 1, %s5145_s10  }
0x2ed2   : > { %p2648_p2 = scmp.ge.s32.totalorder %s2651_s10, 2  }
0x2ed3   :  { %s3813_s8 = sshll.u32 (%p2648_p2), %s6328_s15, 4  ;;  %s5177_s20 = smov (%p2648_p2), [#allocation21]   ;;  %s3814_s8 = int_to_ptr.hbm [resolvable:$true] %s3813_s8 }
0x2ed4   :  { %s3811_s9 = sshll.u32 (%p2648_p2), %s5177_s20, 4  ;;  %s5178_s21 = smov (%p2648_p2), 128   ;;  %s3812_s9 = int_to_ptr.vmem [resolvable:$true] %s3811_s9 }
0x2ed5   :  { %s5179_s3 = smov (%p2648_p2), 8   ;;  %s5180_s23 = smov (%p2648_p2), [#allocation20]  }
0x2ed6   :  { %3819 = dma.vmem_to_hbm [thread:$0]  (%p2648_p2), %s3812_s9, 256, %s3814_s8, [#allocation22], %s5178_s21, %s5178_s21, %s5179_s3  }
0x2ed7   :  { %s3800_s18 = sshll.u32 (%p2648_p2), %s6327_s14, 4  ;;  %s3826_s15 = sshll.u32 (%p2648_p2), %s6329_s16, 4  ;;  %s3801_s18 = int_to_ptr.hbm [resolvable:$true] %s3800_s18  ;;  %s3827_s15 = int_to_ptr.hbm [resolvable:$true] %s3826_s15 }
0x2ed8   :  { %s5181_s22 = smov (%p2648_p2), [#allocation23]   ;;  %s3839_s2 = sshll.u32 (%p2648_p2), %s6330_s17, 4  ;;  %s3840_s2 = int_to_ptr.hbm [resolvable:$true] %s3839_s2 }
0x2ed9   :  { %s3824_s24 = sshll.u32 (%p2648_p2), %s5181_s22, 4  ;;  %s3825_s24 = int_to_ptr.vmem [resolvable:$true] %s3824_s24 }
0x2eda   :  { %3832 = dma.vmem_to_hbm [thread:$0]  (%p2648_p2), %s3825_s24, 256, %s3827_s15, [#allocation22], %s5178_s21, %s5178_s21, %s5179_s3  }
0x2f3d   : > { %v2744_v16 = vpop.permute.xlu0 %2743 }
0x2f3e   : > { %4073 = vmatmul.msk.bf16.vlgmr.msra.gmra.mxu1 %vm318_vm3, %v2744_v16 }
0x2f3f   : > { %3295 = vmatpush.bf16.msra.mxu1 %v6012_v59 }
0x2fbb   : > { %v2763_v47 = vpop.f32.mrf.mxu1 }
0x2fbc   : > { %v2768_v36 = vrot.slane %v2763_v47, 1 }
0x2fbe   : > { %2769 = vrot.lane.b32.xlu0 %v2768_v36, %s5172_s11 }
0x2fc3   : > { %v2765_v30 = vpop.f32.mrf.mxu1 }
0x3030   : > { %v2770_v57 = vpop.permute.xlu0 %2769 }
0x3031   : > { %v2772_v6 = vadd.f32 %v2770_v57, %v6029_v5 }
0x3033   : > { %4545 = vtanh.f32 %v2772_v6  ;;  %v4074_v60 = vmul.f32 -1.442695, %v2772_v6 }
0x3035   : > { %4547 = vpow2.f32 %v4074_v60 }
0x3039   : > { %v4546_v10 = vpop.eup %4545 }
0x303a   : > { %2798 = vrot.lane.b32.xlu1 %v4546_v10, %s5173_s25 }
0x303b   : > { %v4548_v40 = vpop.eup %4547 }
0x303c   : > { %v2776_v56 = vadd.f32 1.0, %v4548_v40  ;;  %v2721_v40 = vrot.slane %v5137_v33, 7 }
0x303e   : > { %4549 = vrcp.f32 %v2776_v56  ;;  %v2788_v44 = vand.u32 2147483648, %v2776_v56  ;;  %vm2782_vm14 = vweird.f32 %v2776_v56  ;;  %v2786_v11 = vand.u32 2147483647, %v2776_v56 }
0x3040   : > { %v2789_v4 = vor.u32 1.1754944e-38, %v2788_v44  ;;  %vm2787_vm5 = vcmp.eq.f32.partialorder %v2786_v11, 8.507059e+37 }
0x3044   : > { %v4550_v26 = vpop.eup %4549 }
0x3045   : > { %v2778_v1 = vmul.f32 %v4550_v26, %v2776_v56  ;;  %vm2783_vm13 = vweird.f32 %v4550_v26 }
0x3046   : > { %vm2784_vm4 = vmor %vm2782_vm14, %vm2783_vm13 }
0x3047   : > { %v2779_v29 = vsub.f32 1.0, %v2778_v1 }
0x3049   : > { %v2780_v2 = vmul.f32 %v4550_v26, %v2779_v29 }
0x304b   : > { %v2781_v3 = vadd.f32 %v4550_v26, %v2780_v2 }
0x304d   : > { %v2785_v63 = vsel %vm2784_vm4, %v4550_v26, %v2781_v3 }
0x304e   : > { %v2790_v24 = vsel %vm2787_vm5, %v2789_v4, %v2785_v63 }
0x304f   : > { %v2796_v55 = vmul.f32 %v2794_v0, %v2790_v24 }
0x30ac   : > { %v2799_v7 = vpop.permute.xlu1 %2798 }
0x30ad   : > { %v2801_v8 = vmul.f32 %v2799_v7, %v2790_v24 }
0x30af   : > { %2803 = vrot.lane.b32.xlu1 %v2801_v8, %s5174_s27 }
0x3121   : > { %v2804_v13 = vpop.permute.xlu1 %2803 }
0x3122   : > { %v6034_v22 = vadd.f32 %v2804_v13, %v2796_v55 }
0x3124   : > { %4551 = vtanh.f32 %v6034_v22 }
0x312a   : > { %v4552_v17 = vpop.eup %4551 }
0x312b   : > { %2809 = vrot.lane.b32.xlu2 %v4552_v17, %s5174_s27 }
0x3133   : > { %2674 = vrot.lane.b32.xlu2 %v2673_v49, %s5175_s5 }
0x3185   : > { %v2810_v42 = vpop.permute.xlu2 %2809 }
0x3186   : > { %v6047_v50 = vmul.f32 %v2810_v42, %v2790_v24 }
0x3188   : > { %v2877_v12 = vpack.c.bf16 %v6047_v50, %v6047_v50 }
0x318a   : > { %v2879_v25 = vshrl.u32 %v2877_v12, 16  ;;  %v2927_v12 = vrot.slane %v6034_v22, 1 }
0x318c   : > { %v2881_v23 = vrot.slane %v2879_v25, 3 }
0x318d   : > { %v2675_v15 = vpop.permute.xlu2 %2674 }
0x318e   : > { %2882 = vrot.lane.b32.xlu0 %v2881_v23, %s5171_s13  ;;  %4067 = vmatmul.msk.bf16.vlgmr.msra.gmra.mxu0 %vm318_vm3, %v2675_v15 }
0x318f   : > { %3230 = vmatpush.bf16.msra.mxu0 %v6041_v21 }
0x3200   : > { %v2883_v27 = vpop.permute.xlu0 %2882 }
0x3201   : > { %4077 = vmatmul.msk.bf16.vlgmr.msra.gmra.mxu3 %vm318_vm3, %v2883_v27 }
0x3202   : > { %3429 = vmatpush.bf16.msra.mxu3 %v6012_v59 }
0x320b   : > { %v2695_v43 = vpop.f32.mrf.mxu0 }
0x320c   : > { %v2699_v31 = vadd.f32 %v2695_v43, %v6057_v20 }
0x320e   : > { %4553 = vtanh.f32 %v2699_v31  ;;  %v4068_v19 = vmul.f32 -1.442695, %v2699_v31 }
0x3210   : > { %4555 = vpow2.f32 %v4068_v19 }
0x3213   : > { %v2697_v62 = vpop.f32.mrf.mxu0 }
0x3214   : > { %v4554_v37 = vpop.eup %4553 }
0x3215   : > { %2725 = vrot.lane.b32.xlu1 %v4554_v37, %s5173_s25 }
0x3216   : > { %v4556_v46 = vpop.eup %4555 }
0x3217   : > { %v2703_v51 = vadd.f32 1.0, %v4556_v46 }
0x3219   : > { %4557 = vrcp.f32 %v2703_v51  ;;  %vm2709_vm2 = vweird.f32 %v2703_v51  ;;  %v2715_v14 = vand.u32 2147483648, %v2703_v51  ;;  %v2713_v61 = vand.u32 2147483647, %v2703_v51 }
0x321b   : > { %v2716_v41 = vor.u32 1.1754944e-38, %v2715_v14  ;;  %vm2714_vm13 = vcmp.eq.f32.partialorder %v2713_v61, 8.507059e+37 }
0x321f   : > { %v4558_v53 = vpop.eup %4557 }
0x3220   : > { %v2705_v54 = vmul.f32 %v4558_v53, %v2703_v51  ;;  %vm2710_vm6 = vweird.f32 %v4558_v53 }
0x3221   : > { %vm2711_vm11 = vmor %vm2709_vm2, %vm2710_vm6 }
0x3222   : > { %v2706_v34 = vsub.f32 1.0, %v2705_v54 }
0x3224   : > { %v2707_v35 = vmul.f32 %v4558_v53, %v2706_v34 }
0x3226   : > { %v2708_v39 = vadd.f32 %v4558_v53, %v2707_v35 }
0x3228   : > { %v2712_v45 = vsel %vm2711_vm11, %v4558_v53, %v2708_v39 }
0x3229   : > { %v2717_v36 = vsel %vm2714_vm13, %v2716_v41, %v2712_v45 }
0x322a   : > { %v2723_v56 = vmul.f32 %v2721_v40, %v2717_v36 }
0x3284   : > { %v2896_v16 = vpop.f32.mrf.mxu3 }
0x3285   : > { %v2901_v47 = vrot.slane %v2896_v16, 2 }
0x3287   : > { %2902 = vrot.lane.b32.xlu2 %v2901_v47, %s5172_s11  ;;  %v2726_v30 = vpop.permute.xlu1 %2725 }
0x3288   : > { %v2728_v48 = vmul.f32 %v2726_v30, %v2717_v36 }
0x328a   : > { %2730 = vrot.lane.b32.xlu0 %v2728_v48, %s5174_s27 }
0x328c   : > { %v2898_v57 = vpop.f32.mrf.mxu3 }
0x32e1   : > { %v2903_v6 = vpop.permute.xlu2 %2902 }
0x32e2   : > { %v2905_v10 = vadd.f32 %v2903_v6, %v6029_v5 }
0x32e4   : > { %4559 = vtanh.f32 %v2905_v10  ;;  %v4078_v2 = vmul.f32 -1.442695, %v2905_v10 }
0x32ea   : > { %v4560_v60 = vpop.eup %4559 }
0x32eb   : > { %2931 = vrot.lane.b32.xlu1 %v4560_v60, %s5173_s25 }
0x32fc   : > { %v2731_v26 = vpop.permute.xlu0 %2730 }
0x32fd   : > { %v6066_v1 = vadd.f32 %v2731_v26, %v2723_v56 }
0x32ff   : > { %4561 = vtanh.f32 %v6066_v1  ;;  %v2858_v56 = vrot.slane %v6066_v1, 7 }
0x3300   : > { %4563 = vpow2.f32 %v4078_v2 }
0x3305   : > { %v4562_v29 = vpop.eup %4561 }
0x3306   : > { %2736 = vrot.lane.b32.xlu2 %v4562_v29, %s5174_s27  ;;  %v4564_v3 = vpop.eup %4563 }
0x3307   : > { %v2909_v44 = vadd.f32 1.0, %v4564_v3 }
0x3309   : > { %4565 = vrcp.f32 %v2909_v44  ;;  %v2921_v33 = vand.u32 2147483648, %v2909_v44  ;;  %vm2915_vm4 = vweird.f32 %v2909_v44  ;;  %v2919_v8 = vand.u32 2147483647, %v2909_v44 }
0x330b   : > { %v2922_v55 = vor.u32 1.1754944e-38, %v2921_v33  ;;  %vm2920_vm2 = vcmp.eq.f32.partialorder %v2919_v8, 8.507059e+37 }
0x330f   : > { %v4566_v11 = vpop.eup %4565 }
0x3310   : > { %v2911_v63 = vmul.f32 %v4566_v11, %v2909_v44  ;;  %vm2916_vm14 = vweird.f32 %v4566_v11 }
0x3311   : > { %vm2917_vm5 = vmor %vm2915_vm4, %vm2916_vm14 }
0x3312   : > { %v2912_v4 = vsub.f32 1.0, %v2911_v63 }
0x3314   : > { %v2913_v7 = vmul.f32 %v4566_v11, %v2912_v4 }
0x3316   : > { %v2914_v24 = vadd.f32 %v4566_v11, %v2913_v7 }
0x3318   : > { %v2918_v0 = vsel %vm2917_vm5, %v4566_v11, %v2914_v24 }
0x3319   : > { %v2923_v52 = vsel %vm2920_vm2, %v2922_v55, %v2918_v0 }
0x331a   : > { %v2929_v25 = vmul.f32 %v2927_v12, %v2923_v52 }
0x335d   : > { %v2932_v13 = vpop.permute.xlu1 %2931 }
0x335e   : > { %v2934_v17 = vmul.f32 %v2932_v13, %v2923_v52 }
0x3360   : > { %2936 = vrot.lane.b32.xlu0 %v2934_v17, %s5174_s27  ;;  %v2737_v18 = vpop.permute.xlu2 %2736 }
0x3361   : > { %v6071_v49 = vmul.f32 %v2737_v18, %v2717_v36 }
0x3363   : > { %v2813_v42 = vpack.c.bf16 %v6071_v49, %v6071_v49 }
0x3365   : > { %2815 = vrot.lane.b32.xlu1 %v2813_v42, %s5175_s5 }
0x33d2   : > { %v2937_v23 = vpop.permute.xlu0 %2936 }
0x33d3   : > { %v6077_v15 = vadd.f32 %v2937_v23, %v2929_v25 }
0x33d5   : > { %4567 = vtanh.f32 %v6077_v15 }
0x33d7   : > { %v2816_v27 = vpop.permute.xlu1 %2815 }
0x33d8   : > { %4075 = vmatmul.msk.bf16.vlgmr.msra.gmra.mxu2 %vm318_vm3, %v2816_v27 }
0x33d9   : > { %3362 = vmatpush.bf16.msra.mxu2 %v6041_v21 }
0x33db   : > { %v4568_v28 = vpop.eup %4567 }
0x33dc   : > { %2942 = vrot.lane.b32.xlu2 %v4568_v28, %s5174_s27 }
0x3436   : > { %v2943_v43 = vpop.permute.xlu2 %2942 }
0x3437   : > { %v6083_v31 = vmul.f32 %v2943_v43, %v2923_v52 }
0x3439   : > { %v3012_v22 = vpack.c.bf16 %v6083_v31, %v6083_v31 }
0x343b   : > { %v3014_v62 = vrot.slane %v3012_v22, 3 }
0x343d   : > { %3015 = vrot.lane.b32.xlu0 %v3014_v62, %s5171_s13 }
0x345b   : > { %v2829_v37 = vpop.f32.mrf.mxu2 }
0x345c   : > { %v2834_v19 = vrot.slane %v2829_v37, 7  ;;  %v3060_v37 = vrot.slane %v6077_v15, 1 }
0x345e   : > { %v2836_v46 = vadd.f32 %v2834_v19, %v6057_v20 }
0x3460   : > { %4569 = vtanh.f32 %v2836_v46  ;;  %v4076_v54 = vmul.f32 -1.442695, %v2836_v46 }
0x3462   : > { %4571 = vpow2.f32 %v4076_v54 }
0x3463   : > { %v2831_v51 = vpop.f32.mrf.mxu2 }
0x3466   : > { %v4570_v53 = vpop.eup %4569 }
0x3467   : > { %2862 = vrot.lane.b32.xlu1 %v4570_v53, %s5173_s25 }
0x3468   : > { %v4572_v35 = vpop.eup %4571 }
0x3469   : > { %v2840_v14 = vadd.f32 1.0, %v4572_v35 }
0x346b   : > { %4573 = vrcp.f32 %v2840_v14  ;;  %v2852_v47 = vand.u32 2147483648, %v2840_v14  ;;  %vm2846_vm11 = vweird.f32 %v2840_v14  ;;  %v2850_v36 = vand.u32 2147483647, %v2840_v14 }
0x346d   : > { %v2853_v48 = vor.u32 1.1754944e-38, %v2852_v47  ;;  %vm2851_vm14 = vcmp.eq.f32.partialorder %v2850_v36, 8.507059e+37 }
0x3471   : > { %v4574_v39 = vpop.eup %4573 }
0x3472   : > { %v2842_v61 = vmul.f32 %v4574_v39, %v2840_v14  ;;  %vm2847_vm6 = vweird.f32 %v4574_v39 }
0x3473   : > { %vm2848_vm13 = vmor %vm2846_vm11, %vm2847_vm6 }
0x3474   : > { %v2843_v41 = vsub.f32 1.0, %v2842_v61 }
0x3476   : > { %v2844_v45 = vmul.f32 %v4574_v39, %v2843_v41 }
0x3478   : > { %v2845_v16 = vadd.f32 %v4574_v39, %v2844_v45 }
0x347a   : > { %v2849_v30 = vsel %vm2848_vm13, %v4574_v39, %v2845_v16 }
0x347b   : > { %v2854_v6 = vsel %vm2851_vm14, %v2853_v48, %v2849_v30 }
0x347c   : > { %v2860_v29 = vmul.f32 %v2858_v56, %v2854_v6 }
0x34af   : > { %v3016_v34 = vpop.permute.xlu0 %3015 }
0x34b0   : > { %4081 = vmatmul.msk.bf16.vlgmr.msrb.gmra.mxu1 %vm318_vm3, %v3016_v34 }
0x34b1   : > { %3563 = vmatpush.bf16.msrb.mxu1 %v6012_v59 }
0x34d9   : > { %v2863_v57 = vpop.permute.xlu1 %2862 }
0x34da   : > { %v2865_v10 = vmul.f32 %v2863_v57, %v2854_v6 }
0x34dc   : > { %2867 = vrot.lane.b32.xlu2 %v2865_v10, %s5174_s27 }
0x352d   : > { %v3029_v60 = vpop.f32.mrf.mxu1 }
0x352e   : > { %v3034_v40 = vrot.slane %v3029_v60, 3 }
0x3530   : > { %3035 = vrot.lane.b32.xlu0 %v3034_v40, %s5172_s11 }
0x3535   : > { %v3031_v26 = vpop.f32.mrf.mxu1 }
0x3536   : > { %v2868_v2 = vpop.permute.xlu2 %2867 }
0x3537   : > { %v6095_v3 = vadd.f32 %v2868_v2, %v2860_v29 }
0x3539   : > { %4575 = vtanh.f32 %v6095_v3 }
0x353f   : > { %v4576_v44 = vpop.eup %4575 }
0x3540   : > { %2873 = vrot.lane.b32.xlu1 %v4576_v44, %s5174_s27 }
0x35a2   : > { %v3036_v11 = vpop.permute.xlu0 %3035 }
0x35a3   : > { %v3038_v63 = vadd.f32 %v3036_v11, %v6029_v5 }
0x35a5   : > { %4577 = vtanh.f32 %v3038_v63  ;;  %v4082_v8 = vmul.f32 -1.442695, %v3038_v63 }
0x35a7   : > { %4579 = vpow2.f32 %v4082_v8 }
0x35ab   : > { %v4578_v4 = vpop.eup %4577 }
0x35ac   : > { %3064 = vrot.lane.b32.xlu2 %v4578_v4, %s5173_s25  ;;  %v2993_v4 = vrot.slane %v6095_v3, 7 }
0x35ad   : > { %v4580_v0 = vpop.eup %4579 }
0x35ae   : > { %v3042_v55 = vadd.f32 1.0, %v4580_v0 }
0x35b0   : > { %4581 = vrcp.f32 %v3042_v55  ;;  %v3054_v12 = vand.u32 2147483648, %v3042_v55  ;;  %vm3048_vm5 = vweird.f32 %v3042_v55  ;;  %v3052_v25 = vand.u32 2147483647, %v3042_v55 }
0x35b2   : > { %v2874_v7 = vpop.permute.xlu1 %2873  ;;  %v3055_v27 = vor.u32 1.1754944e-38, %v3054_v12  ;;  %vm3053_vm6 = vcmp.eq.f32.partialorder %v3052_v25, 8.507059e+37 }
0x35b3   : > { %v6101_v24 = vmul.f32 %v2874_v7, %v2854_v6 }
0x35b5   : > { %v2946_v1 = vpack.c.bf16 %v6101_v24, %v6101_v24 }
0x35b6   : > { %v4582_v13 = vpop.eup %4581 }
0x35b7   : > { %v2948_v33 = vshrl.u32 %v2946_v1, 16  ;;  %v3044_v52 = vmul.f32 %v4582_v13, %v3042_v55  ;;  %vm3049_vm4 = vweird.f32 %v4582_v13 }
0x35b8   : > { %vm3050_vm2 = vmor %vm3048_vm5, %vm3049_vm4 }
0x35b9   : > { %2950 = vrot.lane.b32.xlu0 %v2948_v33, %s5175_s5  ;;  %v3045_v17 = vsub.f32 1.0, %v3044_v52 }
0x35bb   : > { %v3046_v18 = vmul.f32 %v4582_v13, %v3045_v17 }
0x35bd   : > { %v3047_v42 = vadd.f32 %v4582_v13, %v3046_v18 }
0x35bf   : > { %v3051_v23 = vsel %vm3050_vm2, %v4582_v13, %v3047_v42 }
0x35c0   : > { %v3056_v28 = vsel %vm3053_vm6, %v3055_v27, %v3051_v23 }
0x35c1   : > { %v3062_v19 = vmul.f32 %v3060_v37, %v3056_v28 }
0x3606   : > { %v3065_v43 = vpop.permute.xlu2 %3064 }
0x3607   : > { %v3067_v22 = vmul.f32 %v3065_v43, %v3056_v28 }
0x3609   : > { %3069 = vrot.lane.b32.xlu1 %v3067_v22, %s5174_s27 }
0x362b   : > { %v2951_v62 = vpop.permute.xlu0 %2950 }
0x362c   : > { %4079 = vmatmul.msk.bf16.vlgmr.msrb.gmra.mxu0 %vm318_vm3, %v2951_v62 }
0x362d   : > { %3498 = vmatpush.bf16.msrb.mxu0 %v6041_v21 }
0x367b   : > { %v3070_v46 = vpop.permute.xlu1 %3069 }
0x367c   : > { %v6110_v51 = vadd.f32 %v3070_v46, %v3062_v19 }
0x367e   : > { %4583 = vtanh.f32 %v6110_v51 }
0x3684   : > { %v4584_v53 = vpop.eup %4583 }
0x3685   : > { %3075 = vrot.lane.b32.xlu2 %v4584_v53, %s5174_s27 }
0x36a9   : > { %v2964_v54 = vpop.f32.mrf.mxu0 }
0x36aa   : > { %v2969_v34 = vrot.slane %v2964_v54, 6 }
0x36ac   : > { %v2971_v35 = vadd.f32 %v2969_v34, %v6057_v20 }
0x36ae   : > { %4585 = vtanh.f32 %v2971_v35  ;;  %v4080_v47 = vmul.f32 -1.442695, %v2971_v35 }
0x36b0   : > { %4587 = vpow2.f32 %v4080_v47 }
0x36b1   : > { %v2966_v14 = vpop.f32.mrf.mxu0 }
0x36b4   : > { %v4586_v39 = vpop.eup %4585 }
0x36b5   : > { %2997 = vrot.lane.b32.xlu1 %v4586_v39, %s5173_s25 }
0x36b6   : > { %v4588_v36 = vpop.eup %4587 }
0x36b7   : > { %v2975_v30 = vadd.f32 1.0, %v4588_v36 }
0x36b9   : > { %4589 = vrcp.f32 %v2975_v30  ;;  %v2987_v40 = vand.u32 2147483648, %v2975_v30  ;;  %vm2981_vm13 = vweird.f32 %v2975_v30  ;;  %v2985_v56 = vand.u32 2147483647, %v2975_v30 }
0x36bb   : > { %v2988_v29 = vor.u32 1.1754944e-38, %v2987_v40  ;;  %vm2986_vm4 = vcmp.eq.f32.partialorder %v2985_v56, 8.507059e+37 }
0x36bf   : > { %v4590_v48 = vpop.eup %4589 }
0x36c0   : > { %v2977_v57 = vmul.f32 %v4590_v48, %v2975_v30  ;;  %vm2982_vm11 = vweird.f32 %v4590_v48  ;;  %v3194_v30 = vrot.slane %v6110_v51, 1 }
0x36c1   : > { %vm2983_vm14 = vmor %vm2981_vm13, %vm2982_vm11 }
0x36c2   : > { %v2978_v6 = vsub.f32 1.0, %v2977_v57 }
0x36c4   : > { %v2979_v10 = vmul.f32 %v4590_v48, %v2978_v6 }
0x36c6   : > { %v2980_v60 = vadd.f32 %v4590_v48, %v2979_v10 }
0x36c8   : > { %v2984_v26 = vsel %vm2983_vm14, %v4590_v48, %v2980_v60 }
0x36c9   : > { %v2989_v2 = vsel %vm2986_vm4, %v2988_v29, %v2984_v26 }
0x36ca   : > { %v2995_v7 = vmul.f32 %v2993_v4, %v2989_v2 }
0x36df   : > { %v3076_v61 = vpop.permute.xlu2 %3075 }
0x36e0   : > { %v6116_v15 = vmul.f32 %v3076_v61, %v3056_v28 }
0x36e2   : > { %v3144_v41 = vpack.c.bf16 %v6116_v15, %v6116_v15 }
0x36e4   : > { %v3146_v45 = vshrl.u32 %v3144_v41, 16 }
0x36e6   : > { %v3148_v16 = vrot.slane %v3146_v45, 2 }
0x36e8   : > { %3149 = vrot.lane.b32.xlu0 %v3148_v16, %s5171_s13 }
0x3727   : > { %v2998_v44 = vpop.permute.xlu1 %2997 }
0x3728   : > { %v3000_v11 = vmul.f32 %v2998_v44, %v2989_v2 }
0x372a   : > { %3002 = vrot.lane.b32.xlu2 %v3000_v11, %s5174_s27 }
0x375a   : > { %v3150_v63 = vpop.permute.xlu0 %3149 }
0x375b   : > { %4085 = vmatmul.msk.bf16.vlgmr.msrb.gmra.mxu3 %vm318_vm3, %v3150_v63 }
0x375c   : > { %3696 = vmatpush.bf16.msrb.mxu3 %v6012_v59  ;;  %v3748_v59 = vsel %vm1383_vm15, %v6071_v49, %v6101_v24 }
0x3784   : > { %v3003_v1 = vpop.permute.xlu2 %3002 }
0x3785   : > { %v6125_v33 = vadd.f32 %v3003_v1, %v2995_v7 }
0x3787   : > { %4591 = vtanh.f32 %v6125_v33 }
0x378d   : > { %v4592_v8 = vpop.eup %4591 }
0x378e   : > { %3008 = vrot.lane.b32.xlu0 %v4592_v8, %s5174_s27 }
0x37de   : > { %v3163_v0 = vpop.f32.mrf.mxu3 }
0x37df   : > { %v3168_v55 = vrot.slane %v3163_v0, 4 }
0x37e1   : > { %3169 = vrot.lane.b32.xlu1 %v3168_v55, %s5172_s11 }
0x37e6   : > { %v3165_v13 = vpop.f32.mrf.mxu3 }
0x3800   : > { %v3009_v52 = vpop.permute.xlu0 %3008 }
0x3801   : > { %v3011_v17 = vmul.f32 %v3009_v52, %v2989_v2  ;;  %v3125_v52 = vrot.slane %v6125_v33, 7 }
0x3803   : > { %v3079_v3 = vpack.c.bf16 %v3011_v17, %v3011_v17  ;;  %v6134_v18 = vsel %vm1385_vm1, %v3748_v59, %v3011_v17 }
0x3805   : > { %v3081_v42 = vrot.slane %v3079_v3, 1 }
0x3807   : > { %3082 = vrot.lane.b32.xlu2 %v3081_v42, %s5175_s5 }
0x3853   : > { %v3170_v12 = vpop.permute.xlu1 %3169 }
0x3854   : > { %v3172_v25 = vadd.f32 %v3170_v12, %v6029_v5 }
0x3856   : > { %4593 = vtanh.f32 %v3172_v25  ;;  %v4086_v49 = vmul.f32 -1.442695, %v3172_v25 }
0x3858   : > { %4595 = vpow2.f32 %v4086_v49 }
0x385c   : > { %v4594_v23 = vpop.eup %4593 }
0x385d   : > { %3198 = vrot.lane.b32.xlu0 %v4594_v23, %s5173_s25 }
0x385e   : > { %v4596_v24 = vpop.eup %4595 }
0x385f   : > { %v3176_v28 = vadd.f32 1.0, %v4596_v24 }
0x3861   : > { %v3083_v27 = vpop.permute.xlu2 %3082  ;;  %4597 = vrcp.f32 %v3176_v28  ;;  %v3188_v46 = vand.u32 2147483648, %v3176_v28  ;;  %vm3182_vm2 = vweird.f32 %v3176_v28  ;;  %v3186_v53 = vand.u32 2147483647, %v3176_v28 }
0x3862   : > { %4083 = vmatmul.msk.bf16.vlgmr.msrb.gmra.mxu2 %vm318_vm3, %v3083_v27 }
0x3863   : > { %3630 = vmatpush.bf16.msrb.mxu2 %v6041_v21  ;;  %v3189_v34 = vor.u32 1.1754944e-38, %v3188_v46  ;;  %vm3187_vm11 = vcmp.eq.f32.partialorder %v3186_v53, 8.507059e+37 }
0x3867   : > { %v4598_v43 = vpop.eup %4597 }
0x3868   : > { %v3178_v22 = vmul.f32 %v4598_v43, %v3176_v28  ;;  %vm3183_vm5 = vweird.f32 %v4598_v43 }
0x3869   : > { %vm3184_vm6 = vmor %vm3182_vm2, %vm3183_vm5 }
0x386a   : > { %v3179_v62 = vsub.f32 1.0, %v3178_v22 }
0x386c   : > { %v3180_v37 = vmul.f32 %v4598_v43, %v3179_v62 }
0x386e   : > { %v3181_v19 = vadd.f32 %v4598_v43, %v3180_v37 }
0x3870   : > { %v3185_v54 = vsel %vm3184_vm6, %v4598_v43, %v3181_v19 }
0x3871   : > { %v3190_v21 = vsel %vm3187_vm11, %v3189_v34, %v3185_v54 }
0x3872   : > { %v3196_v57 = vmul.f32 %v3194_v30, %v3190_v21 }
0x38cf   : > { %v3199_v35 = vpop.permute.xlu0 %3198 }
0x38d0   : > { %v3201_v14 = vmul.f32 %v3199_v35, %v3190_v21 }
0x38d2   : > { %3203 = vrot.lane.b32.xlu1 %v3201_v14, %s5174_s27 }
0x38e5   : > { %v3096_v39 = vpop.f32.mrf.mxu2 }
0x38e6   : > { %v3101_v61 = vrot.slane %v3096_v39, 5 }
0x38e8   : > { %v3103_v41 = vadd.f32 %v3101_v61, %v6057_v20 }
0x38ea   : > { %4599 = vtanh.f32 %v3103_v41  ;;  %v4084_v47 = vmul.f32 -1.442695, %v3103_v41 }
0x38ec   : > { %4601 = vpow2.f32 %v4084_v47 }
0x38ed   : > { %v3098_v45 = vpop.f32.mrf.mxu2 }
0x38f0   : > { %v4600_v16 = vpop.eup %4599 }
0x38f1   : > { %3129 = vrot.lane.b32.xlu1 %v4600_v16, %s5173_s25 }
0x38f2   : > { %v4602_v36 = vpop.eup %4601 }
0x38f3   : > { %v3107_v48 = vadd.f32 1.0, %v4602_v36 }
0x38f5   : > { %4603 = vrcp.f32 %v3107_v48  ;;  %v3119_v44 = vand.u32 2147483648, %v3107_v48  ;;  %vm3113_vm14 = vweird.f32 %v3107_v48  ;;  %v3117_v51 = vand.u32 2147483647, %v3107_v48 }
0x38f7   : > { %v3120_v63 = vor.u32 1.1754944e-38, %v3119_v44  ;;  %vm3118_vm5 = vcmp.eq.f32.partialorder %v3117_v51, 8.507059e+37 }
0x38fb   : > { %v4604_v60 = vpop.eup %4603 }
0x38fc   : > { %v3109_v56 = vmul.f32 %v4604_v60, %v3107_v48  ;;  %vm3114_vm13 = vweird.f32 %v4604_v60 }
0x38fd   : > { %vm3115_vm4 = vmor %vm3113_vm14, %vm3114_vm13 }
0x38fe   : > { %v3110_v26 = vsub.f32 1.0, %v3109_v56 }
0x3900   : > { %v3111_v29 = vmul.f32 %v4604_v60, %v3110_v26 }
0x3902   : > { %v3112_v2 = vadd.f32 %v4604_v60, %v3111_v29 }
0x3904   : > { %v3116_v11 = vsel %vm3115_vm4, %v4604_v60, %v3112_v2 }
0x3905   : > { %v3121_v4 = vsel %vm3118_vm5, %v3120_v63, %v3116_v11 }
0x3906   : > { %v3127_v17 = vmul.f32 %v3125_v52, %v3121_v4 }
0x3944   : > { %v3204_v6 = vpop.permute.xlu1 %3203 }
0x3945   : > { %v6145_v10 = vadd.f32 %v3204_v6, %v3196_v57 }
0x3947   : > { %4605 = vtanh.f32 %v6145_v10  ;;  %v3328_v51 = vrot.slane %v6145_v10, 1 }
0x394d   : > { %v4606_v40 = vpop.eup %4605 }
0x394e   : > { %3209 = vrot.lane.b32.xlu2 %v4606_v40, %s5174_s27 }
0x3963   : > { %v3130_v7 = vpop.permute.xlu1 %3129 }
0x3964   : > { %v3132_v1 = vmul.f32 %v3130_v7, %v3121_v4 }
0x3966   : > { %3134 = vrot.lane.b32.xlu2 %v3132_v1, %s5174_s27 }
0x39a8   : > { %v3210_v8 = vpop.permute.xlu2 %3209 }
0x39a9   : > { %v6150_v0 = vmul.f32 %v3210_v8, %v3190_v21 }
0x39ab   : > { %v3280_v55 = vpack.c.bf16 %v6150_v0, %v6150_v0 }
0x39ad   : > { %v3282_v13 = vrot.slane %v3280_v55, 2 }
0x39af   : > { %3283 = vrot.lane.b32.xlu0 %v3282_v13, %s5171_s13 }
0x39c0   : > { %v3135_v59 = vpop.permute.xlu2 %3134 }
0x39c1   : > { %v6156_v3 = vadd.f32 %v3135_v59, %v3127_v17 }
0x39c3   : > { %4607 = vtanh.f32 %v6156_v3 }
0x39c9   : > { %v4608_v42 = vpop.eup %4607 }
0x39ca   : > { %3140 = vrot.lane.b32.xlu0 %v4608_v42, %s5174_s27 }
0x3a21   : > { %v3284_v12 = vpop.permute.xlu0 %3283 }
0x3a22   : > { %4089 = vmatmul.msk.bf16.vlgmr.msra.gmra.mxu1 %vm318_vm3, %v3284_v12 }
0x3a3c   : > { %v3141_v25 = vpop.permute.xlu0 %3140 }
0x3a3d   : > { %v3143_v23 = vmul.f32 %v3141_v25, %v3121_v4 }
0x3a3f   : > { %v3213_v27 = vpack.c.bf16 %v3143_v23, %v3143_v23  ;;  %v6163_v49 = vsel %vm1387_vm12, %v6134_v18, %v3143_v23 }
0x3a41   : > { %v3215_v33 = vshrl.u32 %v3213_v27, 16 }
0x3a43   : > { %v3217_v24 = vrot.slane %v3215_v33, 1  ;;  %v3261_v33 = vrot.slane %v6156_v3, 7 }
0x3a45   : > { %3218 = vrot.lane.b32.xlu1 %v3217_v24, %s5175_s5 }
0x3a9f   : > { %v3297_v28 = vpop.f32.mrf.mxu1 }
0x3aa0   : > { %v3302_v43 = vrot.slane %v3297_v28, 5 }
0x3aa2   : > { %3303 = vrot.lane.b32.xlu2 %v3302_v43, %s5172_s11 }
0x3aa7   : > { %v3299_v22 = vpop.f32.mrf.mxu1 }
0x3ab7   : > { %v3219_v62 = vpop.permute.xlu1 %3218 }
0x3ab8   : > { %4087 = vmatmul.msk.bf16.vlgmr.msra.gmra.mxu0 %vm318_vm3, %v3219_v62 }
0x3afc   : > { %v3304_v37 = vpop.permute.xlu2 %3303 }
0x3afd   : > { %v3306_v19 = vadd.f32 %v3304_v37, %v6029_v5 }
0x3aff   : > { %4609 = vtanh.f32 %v3306_v19  ;;  %v4090_v21 = vmul.f32 -1.442695, %v3306_v19 }
0x3b05   : > { %v4610_v46 = vpop.eup %4609 }
0x3b06   : > { %3332 = vrot.lane.b32.xlu0 %v4610_v46, %s5173_s25 }
0x3b35   : > { %v3232_v18 = vpop.f32.mrf.mxu0 }
0x3b36   : > { %v3237_v53 = vrot.slane %v3232_v18, 4 }
0x3b38   : > { %v3239_v54 = vadd.f32 %v3237_v53, %v6057_v20 }
0x3b3a   : > { %4611 = vtanh.f32 %v3239_v54  ;;  %v4088_v56 = vmul.f32 -1.442695, %v3239_v54 }
0x3b3b   : > { %4613 = vpow2.f32 %v4090_v21 }
0x3b3d   : > { %v3234_v34 = vpop.f32.mrf.mxu0 }
0x3b40   : > { %v4612_v35 = vpop.eup %4611 }
0x3b41   : > { %3265 = vrot.lane.b32.xlu0 %v4612_v35, %s5173_s25  ;;  %v4614_v14 = vpop.eup %4613 }
0x3b42   : > { %v3310_v39 = vadd.f32 1.0, %v4614_v14 }
0x3b44   : > { %4615 = vrcp.f32 %v3310_v39  ;;  %v3322_v36 = vand.u32 2147483648, %v3310_v39  ;;  %vm3316_vm6 = vweird.f32 %v3310_v39  ;;  %v3320_v30 = vand.u32 2147483647, %v3310_v39 }
0x3b45   : > { %4617 = vpow2.f32 %v4088_v56 }
0x3b46   : > { %v3323_v57 = vor.u32 1.1754944e-38, %v3322_v36  ;;  %vm3321_vm13 = vcmp.eq.f32.partialorder %v3320_v30, 8.507059e+37 }
0x3b4a   : > { %v4616_v61 = vpop.eup %4615 }
0x3b4b   : > { %v3312_v41 = vmul.f32 %v4616_v61, %v3310_v39  ;;  %vm3317_vm2 = vweird.f32 %v4616_v61  ;;  %v4618_v26 = vpop.eup %4617 }
0x3b4c   : > { %vm3318_vm11 = vmor %vm3316_vm6, %vm3317_vm2  ;;  %v3243_v29 = vadd.f32 1.0, %v4618_v26 }
0x3b4d   : > { %v3313_v45 = vsub.f32 1.0, %v3312_v41 }
0x3b4e   : > { %4619 = vrcp.f32 %v3243_v29  ;;  %v3255_v13 = vand.u32 2147483648, %v3243_v29  ;;  %vm3249_vm4 = vweird.f32 %v3243_v29  ;;  %v3253_v52 = vand.u32 2147483647, %v3243_v29 }
0x3b4f   : > { %v3314_v16 = vmul.f32 %v4616_v61, %v3313_v45 }
0x3b50   : > { %v3256_v59 = vor.u32 1.1754944e-38, %v3255_v13  ;;  %vm3254_vm2 = vcmp.eq.f32.partialorder %v3253_v52, 8.507059e+37 }
0x3b51   : > { %v3315_v47 = vadd.f32 %v4616_v61, %v3314_v16 }
0x3b53   : > { %v3319_v48 = vsel %vm3318_vm11, %v4616_v61, %v3315_v47 }
0x3b54   : > { %v3324_v60 = vsel %vm3321_vm13, %v3323_v57, %v3319_v48  ;;  %v4620_v2 = vpop.eup %4619 }
0x3b55   : > { %v3245_v44 = vmul.f32 %v4620_v2, %v3243_v29  ;;  %v3330_v11 = vmul.f32 %v3328_v51, %v3324_v60  ;;  %vm3250_vm14 = vweird.f32 %v4620_v2 }
0x3b56   : > { %vm3251_vm5 = vmor %vm3249_vm4, %vm3250_vm14 }
0x3b57   : > { %v3246_v63 = vsub.f32 1.0, %v3245_v44 }
0x3b59   : > { %v3247_v1 = vmul.f32 %v4620_v2, %v3246_v63 }
0x3b5b   : > { %v3248_v8 = vadd.f32 %v4620_v2, %v3247_v1 }
0x3b5d   : > { %v3252_v17 = vsel %vm3251_vm5, %v4620_v2, %v3248_v8 }
0x3b5e   : > { %v3257_v42 = vsel %vm3254_vm2, %v3256_v59, %v3252_v17 }
0x3b5f   : > { %v3263_v43 = vmul.f32 %v3261_v33, %v3257_v42 }
0x3b78   : > { %v3333_v6 = vpop.permute.xlu0 %3332 }
0x3b79   : > { %v3335_v40 = vmul.f32 %v3333_v6, %v3324_v60 }
0x3b7b   : > { %3337 = vrot.lane.b32.xlu1 %v3335_v40, %s5174_s27 }
0x3bb3   : > { %v3266_v10 = vpop.permute.xlu0 %3265 }
0x3bb4   : > { %v3268_v12 = vmul.f32 %v3266_v10, %v3257_v42 }
0x3bed   : > { %v3338_v4 = vpop.permute.xlu1 %3337 }
0x3bee   : > { %v6174_v7 = vadd.f32 %v3338_v4, %v3330_v11 }
0x3bf0   : > { %4621 = vtanh.f32 %v6174_v7 }
0x3bf6   : > { %v4622_v55 = vpop.eup %4621 }
0x3bf7   : > { %3343 = vrot.lane.b32.xlu2 %v4622_v55, %s5174_s27 }
0x3bff   : > { %3270 = vrot.lane.b32.xlu2 %v3268_v12, %s5174_s27 }
0x3c51   : > { %v3344_v25 = vpop.permute.xlu2 %3343 }
0x3c52   : > { %v6179_v23 = vmul.f32 %v3344_v25, %v3324_v60 }
0x3c54   : > { %v3412_v27 = vpack.c.bf16 %v6179_v23, %v6179_v23 }
0x3c56   : > { %v3414_v24 = vshrl.u32 %v3412_v27, 16 }
0x3c58   : > { %v3416_v28 = vrot.slane %v3414_v24, 1 }
0x3c59   : > { %v3271_v22 = vpop.permute.xlu2 %3270 }
0x3c5a   : > { %v6184_v62 = vadd.f32 %v3271_v22, %v3263_v43  ;;  %3417 = vrot.lane.b32.xlu1 %v3416_v28, %s5171_s13  ;;  %v3462_v43 = vrot.slane %v6174_v7, 1 }
0x3c5c   : > { %4623 = vtanh.f32 %v6184_v62 }
0x3c62   : > { %v4624_v37 = vpop.eup %4623 }
0x3c63   : > { %3276 = vrot.lane.b32.xlu0 %v4624_v37, %s5174_s27 }
0x3ccc   : > { %v3418_v19 = vpop.permute.xlu1 %3417 }
0x3ccd   : > { %4093 = vmatmul.msk.bf16.vlgmr.msra.gmra.mxu3 %vm318_vm3, %v3418_v19 }
0x3cd5   : > { %v3277_v46 = vpop.permute.xlu0 %3276 }
0x3cd6   : > { %v3279_v18 = vmul.f32 %v3277_v46, %v3257_v42 }
0x3cd8   : > { %v3347_v53 = vpack.c.bf16 %v3279_v18, %v3279_v18  ;;  %v6192_v3 = vsel %vm213_vm0, %v6163_v49, %v3279_v18  ;;  %v3393_v18 = vrot.slane %v6184_v62, 7 }
0x3cda   : > { %v3349_v54 = vrot.slane %v3347_v53, 2 }
0x3cdc   : > { %3350 = vrot.lane.b32.xlu1 %v3349_v54, %s5175_s5 }
0x3d4e   : > { %v3351_v34 = vpop.permute.xlu1 %3350 }
0x3d4f   : > { %4091 = vmatmul.msk.bf16.vlgmr.msra.gmra.mxu2 %vm318_vm3, %v3351_v34 }
0x3d50   : > { %v3431_v35 = vpop.f32.mrf.mxu3 }
0x3d51   : > { %v3436_v21 = vrot.slane %v3431_v35, 6 }
0x3d53   : > { %3437 = vrot.lane.b32.xlu2 %v3436_v21, %s5172_s11 }
0x3d58   : > { %v3433_v14 = vpop.f32.mrf.mxu3 }
0x3dad   : > { %v3438_v39 = vpop.permute.xlu2 %3437 }
0x3dae   : > { %v3440_v61 = vadd.f32 %v3438_v39, %v6029_v5 }
0x3db0   : > { %4625 = vtanh.f32 %v3440_v61  ;;  %v4094_v30 = vmul.f32 -1.442695, %v3440_v61 }
0x3db6   : > { %v4626_v41 = vpop.eup %4625 }
0x3db7   : > { %3466 = vrot.lane.b32.xlu0 %v4626_v41, %s5173_s25 }
0x3dd2   : > { %v3364_v49 = vpop.f32.mrf.mxu2 }
0x3dd3   : > { %v3369_v45 = vrot.slane %v3364_v49, 3 }
0x3dd5   : > { %v3371_v16 = vadd.f32 %v3369_v45, %v6057_v20 }
0x3dd7   : > { %4627 = vtanh.f32 %v3371_v16  ;;  %v4092_v6 = vmul.f32 -1.442695, %v3371_v16 }
0x3dd8   : > { %4629 = vpow2.f32 %v4094_v30 }
0x3dda   : > { %v3366_v47 = vpop.f32.mrf.mxu2 }
0x3ddd   : > { %v4628_v36 = vpop.eup %4627 }
0x3dde   : > { %3397 = vrot.lane.b32.xlu2 %v4628_v36, %s5173_s25  ;;  %v4630_v48 = vpop.eup %4629 }
0x3ddf   : > { %v3444_v57 = vadd.f32 1.0, %v4630_v48 }
0x3de1   : > { %4631 = vrcp.f32 %v3444_v57  ;;  %v3456_v11 = vand.u32 2147483648, %v3444_v57  ;;  %vm3450_vm11 = vweird.f32 %v3444_v57  ;;  %v3454_v63 = vand.u32 2147483647, %v3444_v57 }
0x3de2   : > { %4633 = vpow2.f32 %v4092_v6 }
0x3de3   : > { %v3457_v8 = vor.u32 1.1754944e-38, %v3456_v11  ;;  %vm3455_vm14 = vcmp.eq.f32.partialorder %v3454_v63, 8.507059e+37 }
0x3de7   : > { %v4632_v60 = vpop.eup %4631 }
0x3de8   : > { %v4634_v40 = vpop.eup %4633  ;;  %v3446_v56 = vmul.f32 %v4632_v60, %v3444_v57  ;;  %vm3451_vm6 = vweird.f32 %v4632_v60 }
0x3de9   : > { %v3375_v26 = vadd.f32 1.0, %v4634_v40  ;;  %vm3452_vm13 = vmor %vm3450_vm11, %vm3451_vm6 }
0x3dea   : > { %v3447_v29 = vsub.f32 1.0, %v3446_v56 }
0x3deb   : > { %4635 = vrcp.f32 %v3375_v26  ;;  %v3387_v42 = vand.u32 2147483648, %v3375_v26  ;;  %vm3381_vm5 = vweird.f32 %v3375_v26  ;;  %v3385_v12 = vand.u32 2147483647, %v3375_v26 }
0x3dec   : > { %v3448_v2 = vmul.f32 %v4632_v60, %v3447_v29 }
0x3ded   : > { %v3388_v27 = vor.u32 1.1754944e-38, %v3387_v42  ;;  %vm3386_vm6 = vcmp.eq.f32.partialorder %v3385_v12, 8.507059e+37 }
0x3dee   : > { %v3449_v51 = vadd.f32 %v4632_v60, %v3448_v2 }
0x3df0   : > { %v3453_v1 = vsel %vm3452_vm13, %v4632_v60, %v3449_v51 }
0x3df1   : > { %v4636_v44 = vpop.eup %4635  ;;  %v3458_v13 = vsel %vm3455_vm14, %v3457_v8, %v3453_v1 }
0x3df2   : > { %v3377_v4 = vmul.f32 %v4636_v44, %v3375_v26  ;;  %vm3382_vm4 = vweird.f32 %v4636_v44  ;;  %v3464_v22 = vmul.f32 %v3462_v43, %v3458_v13 }
0x3df3   : > { %vm3383_vm2 = vmor %vm3381_vm5, %vm3382_vm4 }
0x3df4   : > { %v3378_v52 = vsub.f32 1.0, %v3377_v4 }
0x3df6   : > { %v3379_v59 = vmul.f32 %v4636_v44, %v3378_v52 }
0x3df8   : > { %v3380_v10 = vadd.f32 %v4636_v44, %v3379_v59 }
0x3dfa   : > { %v3384_v25 = vsel %vm3383_vm2, %v4636_v44, %v3380_v10 }
0x3dfb   : > { %v3389_v33 = vsel %vm3386_vm6, %v3388_v27, %v3384_v25 }
0x3dfc   : > { %v3395_v53 = vmul.f32 %v3393_v18, %v3389_v33 }
0x3e29   : > { %v3467_v55 = vpop.permute.xlu0 %3466 }
0x3e2a   : > { %v3469_v17 = vmul.f32 %v3467_v55, %v3458_v13 }
0x3e2c   : > { %3471 = vrot.lane.b32.xlu1 %v3469_v17, %s5174_s27 }
0x3e38   : > { %v3398_v24 = vpop.permute.xlu2 %3397 }
0x3e39   : > { %v3400_v28 = vmul.f32 %v3398_v24, %v3389_v33 }
0x3e3b   : > { %3402 = vrot.lane.b32.xlu1 %v3400_v28, %s5174_s27 }
0x3e9e   : > { %v3472_v37 = vpop.permute.xlu1 %3471 }
0x3e9f   : > { %v6204_v19 = vadd.f32 %v3472_v37, %v3464_v22 }
0x3ea1   : > { %4637 = vtanh.f32 %v6204_v19 }
0x3ea7   : > { %v4638_v46 = vpop.eup %4637 }
0x3ea8   : > { %3477 = vrot.lane.b32.xlu0 %v4638_v46, %s5174_s27 }
0x3ead   : > { %v3403_v54 = vpop.permute.xlu1 %3402 }
0x3eae   : > { %v6209_v34 = vadd.f32 %v3403_v54, %v3395_v53 }
0x3eb0   : > { %4639 = vtanh.f32 %v6209_v34 }
0x3eb6   : > { %v4640_v35 = vpop.eup %4639 }
0x3eb7   : > { %3408 = vrot.lane.b32.xlu0 %v4640_v35, %s5174_s27 }
0x3f1a   : > { %v3478_v7 = vpop.permute.xlu0 %3477 }
0x3f1b   : > { %v6213_v21 = vmul.f32 %v3478_v7, %v3458_v13 }
0x3f1d   : > { %v3548_v14 = vpack.c.bf16 %v6213_v21, %v6213_v21 }
0x3f1f   : > { %v3550_v39 = vrot.slane %v3548_v14, 1 }
0x3f21   : > { %3551 = vrot.lane.b32.xlu2 %v3550_v39, %s5171_s13  ;;  %v3529_v39 = vrot.slane %v6209_v34, 7 }
0x3f29   : > { %v3409_v61 = vpop.permute.xlu0 %3408 }
0x3f2a   : > { %v3411_v62 = vmul.f32 %v3409_v61, %v3389_v33 }
0x3f2c   : > { %v3481_v41 = vpack.c.bf16 %v3411_v62, %v3411_v62  ;;  %v6220_v49 = vsel %vm1390_vm8, %v6192_v3, %v3411_v62 }
0x3f2e   : > { %v3483_v45 = vshrl.u32 %v3481_v41, 16 }
0x3f30   : > { %v3485_v16 = vrot.slane %v3483_v45, 2 }
0x3f32   : > { %3486 = vrot.lane.b32.xlu1 %v3485_v16, %s5175_s5  ;;  %v3596_v16 = vrot.slane %v6204_v19, 1 }
0x3f7b   : > { %v3552_v47 = vpop.permute.xlu2 %3551 }
0x3f7c   : > { %4097 = vmatmul.msk.bf16.vlgmr.msrb.gmra.mxu1 %vm318_vm3, %v3552_v47 }
0x3fa4   : > { %v3487_v36 = vpop.permute.xlu1 %3486 }
0x3fa5   : > { %4095 = vmatmul.msk.bf16.vlgmr.msrb.gmra.mxu0 %vm318_vm3, %v3487_v36 }
0x3ff9   : > { %v3565_v30 = vpop.f32.mrf.mxu1 }
0x3ffa   : > { %v3570_v48 = vrot.slane %v3565_v30, 7 }
0x3ffc   : > { %3571 = vrot.lane.b32.xlu2 %v3570_v48, %s5172_s11 }
0x4001   : > { %v3567_v57 = vpop.f32.mrf.mxu1 }
0x4022   : > { %v3500_v6 = vpop.f32.mrf.mxu0 }
0x4023   : > { %v3505_v60 = vrot.slane %v3500_v6, 2 }
0x4025   : > { %v3507_v3 = vadd.f32 %v3505_v60, %v6057_v20 }
0x4027   : > { %4641 = vtanh.f32 %v3507_v3  ;;  %v4096_v2 = vmul.f32 -1.442695, %v3507_v3 }
0x402a   : > { %v3502_v40 = vpop.f32.mrf.mxu0 }
0x402d   : > { %v4642_v56 = vpop.eup %4641 }
0x402e   : > { %3533 = vrot.lane.b32.xlu2 %v4642_v56, %s5173_s25 }
0x4056   : > { %v3572_v26 = vpop.permute.xlu2 %3571 }
0x4057   : > { %v3574_v29 = vadd.f32 %v3572_v26, %v6029_v5 }
0x4059   : > { %4643 = vtanh.f32 %v3574_v29  ;;  %v4098_v25 = vmul.f32 -1.442695, %v3574_v29 }
0x405a   : > { %4645 = vpow2.f32 %v4096_v2 }
0x405f   : > { %v4644_v44 = vpop.eup %4643 }
0x4060   : > { %3600 = vrot.lane.b32.xlu0 %v4644_v44, %s5173_s25  ;;  %v4646_v51 = vpop.eup %4645 }
0x4061   : > { %v3511_v11 = vadd.f32 1.0, %v4646_v51 }
0x4063   : > { %4647 = vrcp.f32 %v3511_v11  ;;  %v3523_v13 = vand.u32 2147483648, %v3511_v11  ;;  %vm3517_vm13 = vweird.f32 %v3511_v11  ;;  %v3521_v52 = vand.u32 2147483647, %v3511_v11 }
0x4064   : > { %4649 = vpow2.f32 %v4098_v25 }
0x4065   : > { %v3524_v59 = vor.u32 1.1754944e-38, %v3523_v13  ;;  %vm3522_vm4 = vcmp.eq.f32.partialorder %v3521_v52, 8.507059e+37 }
0x4069   : > { %v4648_v63 = vpop.eup %4647 }
0x406a   : > { %v3513_v4 = vmul.f32 %v4648_v63, %v3511_v11  ;;  %vm3518_vm11 = vweird.f32 %v4648_v63  ;;  %v4650_v27 = vpop.eup %4649 }
0x406b   : > { %vm3519_vm14 = vmor %vm3517_vm13, %vm3518_vm11  ;;  %v3578_v33 = vadd.f32 1.0, %v4650_v27 }
0x406c   : > { %v3514_v1 = vsub.f32 1.0, %v3513_v4 }
0x406d   : > { %4651 = vrcp.f32 %v3578_v33  ;;  %v3590_v46 = vand.u32 2147483648, %v3578_v33  ;;  %vm3584_vm2 = vweird.f32 %v3578_v33  ;;  %v3588_v18 = vand.u32 2147483647, %v3578_v33 }
0x406e   : > { %v3515_v8 = vmul.f32 %v4648_v63, %v3514_v1 }
0x406f   : > { %v3591_v54 = vor.u32 1.1754944e-38, %v3590_v46  ;;  %vm3589_vm11 = vcmp.eq.f32.partialorder %v3588_v18, 8.507059e+37 }
0x4070   : > { %v3516_v55 = vadd.f32 %v4648_v63, %v3515_v8 }
0x4072   : > { %v3520_v17 = vsel %vm3519_vm14, %v4648_v63, %v3516_v55 }
0x4073   : > { %v3525_v10 = vsel %vm3522_vm4, %v3524_v59, %v3520_v17  ;;  %v4652_v24 = vpop.eup %4651 }
0x4074   : > { %v3580_v28 = vmul.f32 %v4652_v24, %v3578_v33  ;;  %vm3585_vm5 = vweird.f32 %v4652_v24  ;;  %v3531_v61 = vmul.f32 %v3529_v39, %v3525_v10 }
0x4075   : > { %vm3586_vm6 = vmor %vm3584_vm2, %vm3585_vm5 }
0x4076   : > { %v3581_v43 = vsub.f32 1.0, %v3580_v28 }
0x4078   : > { %v3582_v22 = vmul.f32 %v4652_v24, %v3581_v43 }
0x407a   : > { %v3583_v37 = vadd.f32 %v4652_v24, %v3582_v22 }
0x407c   : > { %v3587_v53 = vsel %vm3586_vm6, %v4652_v24, %v3583_v37 }
0x407d   : > { %v3592_v7 = vsel %vm3589_vm11, %v3591_v54, %v3587_v53 }
0x407e   : > { %v3598_v47 = vmul.f32 %v3596_v16, %v3592_v7 }
0x4088   : > { %v3534_v42 = vpop.permute.xlu2 %3533 }
0x4089   : > { %v3536_v12 = vmul.f32 %v3534_v42, %v3525_v10 }
0x408b   : > { %3538 = vrot.lane.b32.xlu0 %v3536_v12, %s5174_s27 }
0x40d2   : > { %v3601_v35 = vpop.permute.xlu0 %3600 }
0x40d3   : > { %v3603_v14 = vmul.f32 %v3601_v35, %v3592_v7 }
0x40d5   : > { %3605 = vrot.lane.b32.xlu1 %v3603_v14, %s5174_s27 }
0x40fd   : > { %v3539_v62 = vpop.permute.xlu0 %3538 }
0x40fe   : > { %v6233_v41 = vadd.f32 %v3539_v62, %v3531_v61 }
0x4100   : > { %4653 = vtanh.f32 %v6233_v41 }
0x4106   : > { %v4654_v45 = vpop.eup %4653 }
0x4107   : > { %3544 = vrot.lane.b32.xlu2 %v4654_v45, %s5174_s27 }
0x4147   : > { %v3606_v36 = vpop.permute.xlu1 %3605 }
0x4148   : > { %v6238_v30 = vadd.f32 %v3606_v36, %v3598_v47 }
0x414a   : > { %4655 = vtanh.f32 %v6238_v30 }
0x4150   : > { %v4656_v48 = vpop.eup %4655 }
0x4151   : > { %3611 = vrot.lane.b32.xlu1 %v4656_v48, %s5174_s27 }
0x4161   : > { %v3545_v34 = vpop.permute.xlu2 %3544 }
0x4162   : > { %v3547_v57 = vmul.f32 %v3545_v34, %v3525_v10  ;;  %v3661_v34 = vrot.slane %v6233_v41, 7  ;;  %v3775_v41 = vld [vmem:[%s3774_s29] sm:$0xff] }
0x4164   : > { %v3615_v6 = vpack.c.bf16 %v3547_v57, %v3547_v57  ;;  %v6244_v60 = vsel %vm1392_vm7, %v6220_v49, %v3547_v57 }
0x4166   : > { %v3617_v3 = vrot.slane %v3615_v6, 3 }
0x4168   : > { %3618 = vrot.lane.b32.xlu1 %v3617_v3, %s5175_s5 }
0x41c3   : > { %v3612_v19 = vpop.permute.xlu1 %3611 }
0x41c4   : > { %v6247_v40 = vmul.f32 %v3612_v19, %v3592_v7  ;;  %v3728_v19 = vrot.slane %v6238_v30, 1 }
0x41c6   : > { %v3680_v56 = vpack.c.bf16 %v6247_v40, %v6247_v40 }
0x41c8   : > { %v3682_v26 = vshrl.u32 %v3680_v56, 16 }
0x41ca   : > { %3684 = vrot.lane.b32.xlu0 %v3682_v26, %s5171_s13 }
0x41da   : > { %v3619_v29 = vpop.permute.xlu1 %3618 }
0x41db   : > { %4099 = vmatmul.msk.bf16.vlgmr.msrb.gmra.mxu2 %vm318_vm3, %v3619_v29 }
0x423c   : > { %v3685_v2 = vpop.permute.xlu0 %3684 }
0x423d   : > { %4101 = vmatmul.msk.bf16.vlgmr.msrb.gmra.mxu3 %vm318_vm3, %v3685_v2 }
0x425e   : > { %v3632_v49 = vpop.f32.mrf.mxu2 }
0x425f   : > { %v3637_v44 = vrot.slane %v3632_v49, 1 }
0x4261   : > { %v3639_v51 = vadd.f32 %v3637_v44, %v6057_v20 }
0x4263   : > { %4657 = vtanh.f32 %v3639_v51  ;;  %v4100_v8 = vmul.f32 -1.442695, %v3639_v51 }
0x4265   : > { %4659 = vpow2.f32 %v4100_v8 }
0x4266   : > { %v3634_v11 = vpop.f32.mrf.mxu2 }
0x4269   : > { %v4658_v63 = vpop.eup %4657 }
0x426a   : > { %3665 = vrot.lane.b32.xlu1 %v4658_v63, %s5173_s25 }
0x426b   : > { %v4660_v55 = vpop.eup %4659 }
0x426c   : > { %v3643_v13 = vadd.f32 1.0, %v4660_v55 }
0x426e   : > { %4661 = vrcp.f32 %v3643_v13  ;;  %v3655_v27 = vand.u32 2147483648, %v3643_v13  ;;  %vm3649_vm14 = vweird.f32 %v3643_v13  ;;  %v3653_v33 = vand.u32 2147483647, %v3643_v13 }
0x4270   : > { %v3656_v43 = vor.u32 1.1754944e-38, %v3655_v27  ;;  %vm3654_vm5 = vcmp.eq.f32.partialorder %v3653_v33, 8.507059e+37 }
0x4274   : > { %v4662_v52 = vpop.eup %4661 }
0x4275   : > { %v3645_v17 = vmul.f32 %v4662_v52, %v3643_v13  ;;  %vm3650_vm13 = vweird.f32 %v4662_v52 }
0x4276   : > { %vm3651_vm4 = vmor %vm3649_vm14, %vm3650_vm13 }
0x4277   : > { %v3646_v59 = vsub.f32 1.0, %v3645_v17 }
0x4279   : > { %v3647_v42 = vmul.f32 %v4662_v52, %v3646_v59 }
0x427b   : > { %v3648_v12 = vadd.f32 %v4662_v52, %v3647_v42 }
0x427d   : > { %v3652_v24 = vsel %vm3651_vm4, %v4662_v52, %v3648_v12 }
0x427e   : > { %v3657_v22 = vsel %vm3654_vm5, %v3656_v43, %v3652_v24 }
0x427f   : > { %v3663_v57 = vmul.f32 %v3661_v34, %v3657_v22 }
0x42c0   : > { %v3698_v4 = vpop.f32.mrf.mxu3 }
0x42c1   : > { %3703 = vrot.lane.b32.xlu2 %v3698_v4, %s5172_s11 }
0x42c8   : > { %v3700_v1 = vpop.f32.mrf.mxu3 }
0x42dc   : > { %v3666_v28 = vpop.permute.xlu1 %3665 }
0x42dd   : > { %v3668_v37 = vmul.f32 %v3666_v28, %v3657_v22 }
0x431b   : > { %v3704_v10 = vpop.permute.xlu2 %3703 }
0x431c   : > { %v3706_v20 = vadd.f32 %v3704_v10, %v6029_v5  ;;  %v3768_v5 = vld [vmem:[%s3767_s28] sm:$0xff] }
0x431e   : > { %4663 = vtanh.f32 %v3706_v20  ;;  %v4102_v46 = vmul.f32 -1.442695, %v3706_v20 }
0x4320   : > { %4665 = vpow2.f32 %v4102_v46 }
0x4324   : > { %v4664_v25 = vpop.eup %4663 }
0x4325   : > { %3732 = vrot.lane.b32.xlu0 %v4664_v25, %s5173_s25 }
0x4326   : > { %v4666_v18 = vpop.eup %4665 }
0x4327   : > { %v3710_v53 = vadd.f32 1.0, %v4666_v18 }
0x4329   : > { %4667 = vrcp.f32 %v3710_v53  ;;  %v3722_v61 = vand.u32 2147483648, %v3710_v53  ;;  %vm3716_vm6 = vweird.f32 %v3710_v53  ;;  %v3720_v62 = vand.u32 2147483647, %v3710_v53 }
0x432b   : > { %v3723_v16 = vor.u32 1.1754944e-38, %v3722_v61  ;;  %vm3721_vm13 = vcmp.eq.f32.partialorder %v3720_v62, 8.507059e+37 }
0x432d   : > { %3670 = vrot.lane.b32.xlu0 %v3668_v37, %s5174_s27 }
0x432f   : > { %v4668_v54 = vpop.eup %4667 }
0x4330   : > { %v3712_v35 = vmul.f32 %v4668_v54, %v3710_v53  ;;  %vm3717_vm2 = vweird.f32 %v4668_v54 }
0x4331   : > { %vm3718_vm11 = vmor %vm3716_vm6, %vm3717_vm2 }
0x4332   : > { %v3713_v7 = vsub.f32 1.0, %v3712_v35 }
0x4334   : > { %v3714_v14 = vmul.f32 %v4668_v54, %v3713_v7 }
0x4335   : > { %3770 = vrot.lane.b32.xlu0 %v3768_v5, %s5171_s13  ;;  %s3798_s13 = sshll.u32 (%p2648_p2), %s5180_s23, 4  ;;  %s3799_s13 = int_to_ptr.vmem [resolvable:$true] %s3798_s13 }
0x4336   : > { %v3715_v39 = vadd.f32 %v4668_v54, %v3714_v14  ;;  %3806 = dma.vmem_to_hbm [thread:$0]  (%p2648_p2), %s3799_s13, 256, %s3801_s18, [#allocation5], %s5178_s21, %s5178_s21, %s5179_s3  }
0x4338   : > { %v3719_v45 = vsel %vm3718_vm11, %v4668_v54, %v3715_v39 }
0x4339   : > { %v3724_v36 = vsel %vm3721_vm13, %v3723_v16, %v3719_v45 }
0x433a   : > { %v3730_v56 = vmul.f32 %v3728_v19, %v3724_v36 }
0x4397   : > { %v3733_v47 = vpop.permute.xlu0 %3732 }
0x4398   : > { %v3735_v48 = vmul.f32 %v3733_v47, %v3724_v36 }
0x439a   : > { %3737 = vrot.lane.b32.xlu2 %v3735_v48, %s5174_s27 }
0x439f   : > { %v3671_v6 = vpop.permute.xlu0 %3670 }
0x43a0   : > { %v3673_v33 = vadd.f32 %v3671_v6, %v3663_v57  }
0x43a2   : > { %4669 = vtanh.f32 %v3673_v33 }
0x43a7   : > { %v3771_v44 = vpop.permute.xlu0 %3770 }
0x43a8   : > { %v4670_v3 = vpop.eup %4669 }
0x43a9   : > { %3676 = vrot.lane.b32.xlu2 %v4670_v3, %s5174_s27 }
0x43f4   : > { %v3738_v26 = vpop.permute.xlu2 %3737 }
0x43f5   : > { %v3740_v39 = vadd.f32 %v3738_v26, %v3730_v56  }
0x43f7   : > { %4671 = vtanh.f32 %v3740_v39 }
0x43fd   : > { %v4672_v29 = vpop.eup %4671 }
0x43fe   : > { %3743 = vrot.lane.b32.xlu1 %v4672_v29, %s5174_s27 }
0x4403   : > { %v3677_v2 = vpop.permute.xlu2 %3676 }
0x4404   : > { %v3679_v49 = vmul.f32 %v3677_v2, %v3657_v22  }
0x4406   : > { %v3759_v51 = vsel %vm1394_vm9, %v6244_v60, %v3679_v49  ;;  %3777 = vrot.lane.b32.xlu1 %v3775_v41, %s5173_s25  ;;  %v6338_v41 = vmov %v3679_v49  ;;  %s5182_s25 = smov (%p2648_p2), [#allocation24]  }
0x4407   : > { %v3773_v11 = vadd.f32 %v3771_v44, %v3759_v51  ;;  %s3837_s27 = sshll.u32 (%p2648_p2), %s5182_s25, 4  ;;  %s3838_s27 = int_to_ptr.vmem [resolvable:$true] %s3837_s27 }
0x4409   : > { %3782 = vrot.lane.b32.xlu2 %v3773_v11, %s5175_s5 }
0x4463   : > { %v3783_v30 = vpop.permute.xlu2 %3782 }
0x4464   : > { %3786 = vst.msk [vmem:[%s3785_s0] sm:$0xff] %vm318_vm3, %v3783_v30 }
0x4470   : > { %v3744_v63 = vpop.permute.xlu1 %3743 }
0x4471   : > { %v3746_v61 = vmul.f32 %v3744_v63, %v3724_v36  }
0x4473   : > { %v3760_v4 = vsel %vm1383_vm15, %v3746_v61, %v6247_v40 }
0x4474   : > { %v3761_v1 = vsel %vm1385_vm1, %v3760_v4, %v6213_v21 }
0x4475   : > { %v3762_v60 = vsel %vm1387_vm12, %v3761_v1, %v6179_v23 }
0x4476   : > { %v3763_v8 = vsel %vm213_vm0, %v3762_v60, %v6150_v0 }
0x4477   : > { %v3764_v55 = vsel %vm1390_vm8, %v3763_v8, %v6116_v15 }
0x4478   : > { %v3765_v13 = vsel %vm1392_vm7, %v3764_v55, %v6083_v31  ;;  %v3778_v52 = vpop.permute.xlu1 %3777 }
0x4479   : > { %v3766_v17 = vsel %vm1394_vm9, %v3765_v13, %v6047_v50 }
0x447a   : > { %v3780_v40 = vadd.f32 %v3778_v52, %v3766_v17 }
0x447c   : > { %3788 = vrot.lane.b32.xlu0 %v3780_v40, %s5176_s6 }
0x44eb   :  { %2650 = sbr.rel (!%p2648_p2) target bundleno = 11976 (0x2ec8), region = 197 }
0x44ee   : > { %v3789_v21 = vpop.permute.xlu0 %3788 }
0x44ef   : > { %3793 = vst.msk [vmem:[%s3791_s7] sm:$0xff] %vm1414_vm10, %v3789_v21 }
0x44f0   :  { %3845 = dma.vmem_to_hbm [thread:$0]  %s3838_s27, 256, %s3840_s2, [#allocation25], %s5178_s21, %s5178_s21, %s5179_s3  }
0x44f1   :  { %5081 = dma.done.wait [#allocation5], 256  }
0x44f2   :  { %5082 = vsyncadd [#allocation5], 4294967040 }
0x44f3   :  { %5083 = dma.done.wait [#allocation22], 512  }
0x44f4   :  { %5084 = vsyncadd [#allocation22], 4294966784 }
0x44f5   :  { %5085 = dma.done.wait [#allocation25], 256  }
0x44f6   :  { %5086 = vsyncadd [#allocation25], 4294967040 }
0x44f7   :  { %3862 = vsyncpa [#allocation4], 1 }
0x44f8   :  { %3863 = vsyncpa [#allocation7], 1 }
0x44f9   :  { %3864 = vsyncpa [#allocation10], 1 }
0x44fa   :  { %3865 = vsyncpa [#allocation13], 1 }
0x44fb   :  { %3866 = vsyncpa [#allocation16], 1 }
0x44fc   :  { %3867 = vsyncpa [#allocation19], 1 }
0x44fd   :  { %3868 = vsyncpa [#allocation5], 1 }
0x44fe   :  { %3869 = vsyncpa [#allocation22], 1 }
0x44ff   :  { %3870 = vsyncpa [#allocation25], 1 }

</bundles_post_ra>
